<compile_context>
chip_gen: v5e
topology: v5e:2x2
jax: 0.10.0
libtpu: 0.0.40
codegen_flags: <defaults>
</compile_context>

<pallas_src>
import functools

import jax
import jax.numpy as jnp
from jax import lax
from jax.experimental import pallas as pl
from jax.experimental.pallas import tpu as pltpu


def _round_up(x, m):
    return (x + m - 1) // m * m


def _pick_lane_tile(c):
    """256-wide channel tiles for v6e/v7x's 256x256 MXU when they add no extra
    zero-padding; 128 otherwise (also the right choice on v5e's 128x128 MXU)."""
    c128 = _round_up(max(c, 1), 128)
    return 256 if (c128 >= 256 and c128 % 256 == 0) else 128


def _make_strips(Ho, strip_rows):
    strips, r = [], 0
    while r < Ho:
        rows = min(strip_rows, Ho - r)
        strips.append((r, rows))
        r += rows
    return tuple(strips)


# --------------------------------------------------------------------------------------
# Kernel: dilated conv (im2col strip -> single MXU contraction per Cin-tile)
#         + per-(batch, Cout-tile) partial BN statistics
# --------------------------------------------------------------------------------------
def _atrous_conv_stats_kernel(x_ref, w_ref, y_ref, stats_ref, acc_ref, patch_ref,
                              *, K, dilation, Wo, strips, TCI):
    # x_ref:     (1, Hp, Wp, TCI)   bf16  spatially padded input plane (one n, one Cin tile)
    # w_ref:     (1, K*K*TCI, TCO)  bf16  weights, rows ordered (tap, cin-within-tile)
    # y_ref:     (1, Ho*Wo, TCO)    bf16  conv output (written in the last-ci epilogue)
    # stats_ref: (1, 2, TCO)        f32   per-channel [sum, sum-of-squares]
    # acc_ref:   (Ho*Wo, TCO)       f32   accumulator, persists across the ci axis
    # patch_ref: (SR*Wo, K*K*TCI)   bf16  im2col scratch for one output-row strip
    ci = pl.program_id(2)

    @pl.when(ci == 0)
    def _():
        acc_ref[...] = jnp.zeros_like(acc_ref)

    w_blk = w_ref[0]                                            # (K*K*TCI, TCO)

    for r0, rows in strips:                                     # static Python loop
        m = rows * Wo
        # Build the im2col patch: one row-slab load per kh (hoisted out of the kw
        # loop), sliced along W per kw; columns are (tap, cin-within-tile) ordered.
        for kh in range(K):
            h0 = r0 + kh * dilation                             # stride == 1
            slab = x_ref[0, h0:h0 + rows, :, :]                 # (rows, Wp, TCI)
            for kw in range(K):
                w0 = kw * dilation
                col = (kh * K + kw) * TCI
                patch_ref[0:m, col:col + TCI] = (
                    slab[:, w0:w0 + Wo, :].reshape(m, TCI))
        # One MXU matmul with contraction K*K*TCI folds the K*K tap accumulations
        # (no per-tap f32 VPU adds).
        acc_ref[r0 * Wo:r0 * Wo + m, :] = (
            acc_ref[r0 * Wo:r0 * Wo + m, :]
            + jnp.dot(patch_ref[0:m, :], w_blk, preferred_element_type=jnp.float32))

    @pl.when(ci == pl.num_programs(2) - 1)
    def _():
        acc = acc_ref[...]
        y_ref[0] = acc.astype(y_ref.dtype)                      # bf16 HBM write
        # TODO(synk): a ones-row MXU dot could offload these row reductions from the
        # VPU/XLU onto the otherwise-idle MXU in the epilogue.
        s1 = jnp.sum(acc, axis=0, keepdims=True)                # (1, TCO)
        s2 = jnp.sum(acc * acc, axis=0, keepdims=True)          # (1, TCO)
        stats_ref[0] = jnp.concatenate([s1, s2], axis=0)        # (2, TCO)


# --------------------------------------------------------------------------------------
# Wrapper
# --------------------------------------------------------------------------------------
def aspp_module_forward(x_nchw, w_oihw, gamma, beta, *, kernel_size, padding, dilation,
                        eps=1e-5, lane_tile=None, strip_rows=None):
    """Forward of _ASPPModule.  x: (N,Cin,H,W) NCHW, w: (Cout,Cin,K,K) OIHW, f32 out."""
    N, Cin, H, W = x_nchw.shape
    Cout = w_oihw.shape[0]
    K = kernel_size

    TCI = lane_tile if lane_tile is not None else _pick_lane_tile(Cin)
    TCO = lane_tile if lane_tile is not None else _pick_lane_tile(Cout)
    Cin_p = _round_up(Cin, TCI)
    Cout_p = _round_up(Cout, TCO)
    nCI = Cin_p // TCI
    nCO = Cout_p // TCO
    KKTCI = K * K * TCI

    # ---- layout plumbing (outside the kernel): NCHW->NHWC, spatial + channel pad ----
    x = jnp.transpose(x_nchw, (0, 2, 3, 1))                     # NHWC
    x = jnp.pad(x, ((0, 0), (padding, padding), (padding, padding), (0, Cin_p - Cin)))
    x = x.astype(jnp.bfloat16)
    Hp, Wp = x.shape[1], x.shape[2]
    k_eff = (K - 1) * dilation + 1
    Ho, Wo = Hp - k_eff + 1, Wp - k_eff + 1                     # stride = 1

    # Weights -> (nCI, K*K*TCI, Cout_p); row order (tap, cin-within-tile) matches the
    # kernel's im2col patch columns.
    w = jnp.transpose(w_oihw, (2, 3, 1, 0)).reshape(K * K, Cin, Cout)
    w = jnp.pad(w, ((0, 0), (0, Cin_p - Cin), (0, Cout_p - Cout))).astype(jnp.bfloat16)
    w = w.reshape(K * K, nCI, TCI, Cout_p).transpose(1, 0, 2, 3).reshape(nCI, KKTCI, Cout_p)

    if strip_rows is None:
        strip_rows = max(1, min(Ho, 1024 // max(Wo, 1)))        # ~1K output rows per strip
    strip_rows = max(1, min(int(strip_rows), Ho))
    strips = _make_strips(Ho, strip_rows)

    # VMEM sized to actual need (double-buffered pipeline blocks + scratch) with
    # headroom, rather than requesting the whole v7x VMEM.
    need = (2 * Hp * Wp * TCI * 2 + 2 * KKTCI * TCO * 2 + 2 * Ho * Wo * TCO * 2
            + 2 * 2 * TCO * 4 + Ho * Wo * TCO * 4 + strip_rows * Wo * KKTCI * 2)
    vmem_limit = int(max(2 * need + (8 << 20), 32 << 20))

    kernel = functools.partial(_atrous_conv_stats_kernel, K=K, dilation=dilation,
                               Wo=Wo, strips=strips, TCI=TCI)
    y, stats = pl.pallas_call(
        kernel,
        grid=(N, nCO, nCI),
        in_specs=[
            pl.BlockSpec((1, Hp, Wp, TCI), lambda n, co, ci: (n, 0, 0, ci)),
            pl.BlockSpec((1, KKTCI, TCO), lambda n, co, ci: (ci, 0, co)),
        ],
        out_specs=[
            pl.BlockSpec((1, Ho * Wo, TCO), lambda n, co, ci: (n, 0, co)),
            pl.BlockSpec((1, 2, TCO), lambda n, co, ci: (n, 0, co)),
        ],
        out_shape=[
            jax.ShapeDtypeStruct((N, Ho * Wo, Cout_p), jnp.bfloat16),
            jax.ShapeDtypeStruct((N, 2, Cout_p), jnp.float32),
        ],
        scratch_shapes=[
            pltpu.VMEM((Ho * Wo, TCO), jnp.float32),            # f32 accumulator
            pltpu.VMEM((strip_rows * Wo, KKTCI), jnp.bfloat16), # im2col strip scratch
        ],
        compiler_params=pltpu.CompilerParams(
            dimension_semantics=("parallel", "parallel", "arbitrary"),
            vmem_limit_bytes=vmem_limit),
    )(x, w)

    # ---- BN fold (train-mode batch stats, biased variance) + ReLU + crop + NCHW ----
    # Left in plain JAX so XLA fuses the elementwise epilogue with the unavoidable
    # channel crop + NHWC->NCHW transpose (one HBM round trip instead of two).
    # Note: var = E[y^2]-E[y]^2 in f32; fine here, switch to a centered/Welford combine
    # if |mean| >> std and tighter tolerances are needed.
    count = N * Ho * Wo
    tot = jnp.sum(stats, axis=0)                                # (2, Cout_p)
    mean = tot[0] / count
    var = jnp.maximum(tot[1] / count - mean * mean, 0.0)
    scale = gamma.astype(jnp.float32) * lax.rsqrt(var[:Cout] + eps)
    shift = beta.astype(jnp.float32) - mean[:Cout] * scale
    y = y.reshape(N, Ho, Wo, Cout_p)[..., :Cout].astype(jnp.float32)
    out = jnp.maximum(y * scale + shift, 0.0)
    return jnp.transpose(out, (0, 3, 1, 2))                     # NHWC -> NCHW


# --------------------------------------------------------------------------------------
# Pure-JAX reference mirroring the PyTorch forward (NCHW)
# --------------------------------------------------------------------------------------
def reference_forward(x_nchw, w_oihw, gamma, beta, *, kernel_size, padding, dilation, eps=1e-5):
    y = lax.conv_general_dilated(
        x_nchw, w_oihw, window_strides=(1, 1),
        padding=((padding, padding), (padding, padding)),
        rhs_dilation=(dilation, dilation),
        dimension_numbers=('NCHW', 'OIHW', 'NCHW'),
        precision=lax.Precision.HIGHEST)
    mean = jnp.mean(y, axis=(0, 2, 3), keepdims=True)
    var = jnp.mean((y - mean) ** 2, axis=(0, 2, 3), keepdims=True)
    yn = (y - mean) * lax.rsqrt(var + eps) * gamma.reshape(1, -1, 1, 1) \
        + beta.reshape(1, -1, 1, 1)
    return jnp.maximum(yn, 0.0)


if __name__ == "__main__":
    # Small shapes consistent with the module: batch=2, inplanes=4, planes=8, spatial=16.
    N, Cin, Cout, H, W = 2, 4, 8, 16, 16

    key = jax.random.PRNGKey(0)
    kx, kw1, kw2, kg, kb = jax.random.split(key, 5)
    x = jax.random.normal(kx, (N, Cin, H, W), jnp.float32)
    gamma = 1.0 + 0.1 * jax.random.normal(kg, (Cout,), jnp.float32)   # BN weight
    beta = 0.1 * jax.random.normal(kb, (Cout,), jnp.float32)          # BN bias

    # Kernel stores activations/weights in bf16; quantize once so the f32 reference
    # sees the same values (remaining diff: bf16 y intermediate + accumulation order).
    x_q = x.astype(jnp.bfloat16).astype(jnp.float32)

    configs = [
        dict(kernel_size=3, padding=2, dilation=2, strip_rows=6),  # atrous 3x3; ragged strips
        dict(kernel_size=1, padding=0, dilation=1),                # 1x1 ASPP branch
    ]
    wkeys = [kw1, kw2]

    for cfg, wk in zip(configs, wkeys):
        K = cfg["kernel_size"]
        w_oihw = 0.2 * jax.random.normal(wk, (Cout, Cin, K, K), jnp.float32)
        w_q = w_oihw.astype(jnp.bfloat16).astype(jnp.float32)

        fwd = jax.jit(lambda a, b, g, c, cfg=cfg: aspp_module_forward(a, b, g, c, **cfg))
        out = jax.block_until_ready(fwd(x_q, w_q, gamma, beta))

        ref_kwargs = {k: cfg[k] for k in ("kernel_size", "padding", "dilation")}
        ref = jax.block_until_ready(reference_forward(x_q, w_q, gamma, beta, **ref_kwargs))

        assert out.shape == ref.shape == (N, Cout, H, W), (out.shape, ref.shape)
        max_err = float(jnp.max(jnp.abs(out - ref)))
        # bf16 conv intermediate => a few 1e-3 absolute error after normalization.
        assert jnp.allclose(out, ref, atol=2e-2, rtol=2e-2), (cfg, max_err)

    print("KERNEL_OK")
</pallas_src>

<mosaic_0001>
module attributes {stable_mosaic.version = 11 : i64} {
  func.func @_atrous_conv_stats_kernel(%arg0: i32, %arg1: i32, %arg2: i32, %arg3: memref<1x20x20x128xbf16, #tpu.memory_space<vmem>>, %arg4: memref<1x1152x128xbf16, #tpu.memory_space<vmem>>, %arg5: memref<1x256x128xbf16, #tpu.memory_space<vmem>>, %arg6: memref<1x2x128xf32, #tpu.memory_space<vmem>>, %arg7: memref<256x128xf32, #tpu.memory_space<vmem>>, %arg8: memref<96x1152xbf16, #tpu.memory_space<vmem>>) attributes {dimension_semantics = [#tpu.dimension_semantics<parallel>, #tpu.dimension_semantics<parallel>, #tpu.dimension_semantics<arbitrary>], iteration_bounds = array<i64: 2, 1, 1>, scalar_prefetch = 0 : i64, scratch_operands = 2 : i64, tpu.core_type = #tpu.core_type<tc>, window_params = [{transform_indices = @transform_0, window_bounds = array<i64: 1, 20, 20, 128>}, {transform_indices = @transform_1, window_bounds = array<i64: 1, 1152, 128>}, {transform_indices = @transform_2, window_bounds = array<i64: 1, 256, 128>}, {transform_indices = @transform_3, window_bounds = array<i64: 1, 2, 128>}]} {
    %c0_i32 = arith.constant 0 : i32
    %0 = arith.cmpi eq, %arg2, %c0_i32 : i32
    %1 = arith.extui %0 : i1 to i32
    %c0_i32_0 = arith.constant 0 : i32
    %2 = arith.cmpi ne, %1, %c0_i32_0 : i32
    scf.if %2 {
      %cst_97 = arith.constant 0.000000e+00 : f32
      %122 = vector.broadcast %cst_97 : f32 to vector<256x128xf32>
      %c0_98 = arith.constant 0 : index
      %c0_99 = arith.constant 0 : index
      %123 = vector.load %arg7[%c0_98, %c0_99] : memref<256x128xf32, #tpu.memory_space<vmem>>, vector<256x128xf32>
      tpu.vector_store %arg7[%c0_98, %c0_99], %122 {strides = array<i32>} : memref<256x128xf32, #tpu.memory_space<vmem>>, vector<256x128xf32>,
    } else {
    }
    %c0 = arith.constant 0 : index
    %c0_1 = arith.constant 0 : index
    %c0_2 = arith.constant 0 : index
    %3 = vector.load %arg4[%c0, %c0_1, %c0_2] : memref<1x1152x128xbf16, #tpu.memory_space<vmem>>, vector<1x1152x128xbf16>
    %4 = vector.shape_cast %3 : vector<1x1152x128xbf16> to vector<1152x128xbf16>
    %c0_3 = arith.constant 0 : index
    %c0_4 = arith.constant 0 : index
    %c0_5 = arith.constant 0 : index
    %c0_6 = arith.constant 0 : index
    %5 = vector.load %arg3[%c0_3, %c0_4, %c0_5, %c0_6] : memref<1x20x20x128xbf16, #tpu.memory_space<vmem>>, vector<1x6x20x128xbf16>
    %6 = vector.shape_cast %5 : vector<1x6x20x128xbf16> to vector<6x20x128xbf16>
    %7 = vector.extract_strided_slice %6 {offsets = [0, 0, 0], sizes = [6, 16, 128], strides = [1, 1, 1]} : vector<6x20x128xbf16> to vector<6x16x128xbf16>
    %8 = vector.shape_cast %7 : vector<6x16x128xbf16> to vector<96x128xbf16>
    %c0_7 = arith.constant 0 : index
    %c0_8 = arith.constant 0 : index
    %9 = vector.load %arg8[%c0_7, %c0_8] : memref<96x1152xbf16, #tpu.memory_space<vmem>>, vector<96x128xbf16>
    tpu.vector_store %arg8[%c0_7, %c0_8], %8 {strides = array<i32>} : memref<96x1152xbf16, #tpu.memory_space<vmem>>, vector<96x128xbf16>,
    %10 = vector.extract_strided_slice %6 {offsets = [0, 2, 0], sizes = [6, 16, 128], strides = [1, 1, 1]} : vector<6x20x128xbf16> to vector<6x16x128xbf16>
    %11 = vector.shape_cast %10 : vector<6x16x128xbf16> to vector<96x128xbf16>
    %c0_9 = arith.constant 0 : index
    %c128 = arith.constant 128 : index
    %12 = vector.load %arg8[%c0_9, %c128] : memref<96x1152xbf16, #tpu.memory_space<vmem>>, vector<96x128xbf16>
    tpu.vector_store %arg8[%c0_9, %c128], %11 {strides = array<i32>} : memref<96x1152xbf16, #tpu.memory_space<vmem>>, vector<96x128xbf16>,
    %13 = vector.extract_strided_slice %6 {offsets = [0, 4, 0], sizes = [6, 16, 128], strides = [1, 1, 1]} : vector<6x20x128xbf16> to vector<6x16x128xbf16>
    %14 = vector.shape_cast %13 : vector<6x16x128xbf16> to vector<96x128xbf16>
    %c0_10 = arith.constant 0 : index
    %c256 = arith.constant 256 : index
    %15 = vector.load %arg8[%c0_10, %c256] : memref<96x1152xbf16, #tpu.memory_space<vmem>>, vector<96x128xbf16>
    tpu.vector_store %arg8[%c0_10, %c256], %14 {strides = array<i32>} : memref<96x1152xbf16, #tpu.memory_space<vmem>>, vector<96x128xbf16>,
    %c0_11 = arith.constant 0 : index
    %c2 = arith.constant 2 : index
    %c0_12 = arith.constant 0 : index
    %c0_13 = arith.constant 0 : index
    %16 = vector.load %arg3[%c0_11, %c2, %c0_12, %c0_13] : memref<1x20x20x128xbf16, #tpu.memory_space<vmem>>, vector<1x6x20x128xbf16>
    %17 = vector.shape_cast %16 : vector<1x6x20x128xbf16> to vector<6x20x128xbf16>
    %18 = vector.extract_strided_slice %17 {offsets = [0, 0, 0], sizes = [6, 16, 128], strides = [1, 1, 1]} : vector<6x20x128xbf16> to vector<6x16x128xbf16>
    %19 = vector.shape_cast %18 : vector<6x16x128xbf16> to vector<96x128xbf16>
    %c0_14 = arith.constant 0 : index
    %c384 = arith.constant 384 : index
    %20 = vector.load %arg8[%c0_14, %c384] : memref<96x1152xbf16, #tpu.memory_space<vmem>>, vector<96x128xbf16>
    tpu.vector_store %arg8[%c0_14, %c384], %19 {strides = array<i32>} : memref<96x1152xbf16, #tpu.memory_space<vmem>>, vector<96x128xbf16>,
    %21 = vector.extract_strided_slice %17 {offsets = [0, 2, 0], sizes = [6, 16, 128], strides = [1, 1, 1]} : vector<6x20x128xbf16> to vector<6x16x128xbf16>
    %22 = vector.shape_cast %21 : vector<6x16x128xbf16> to vector<96x128xbf16>
    %c0_15 = arith.constant 0 : index
    %c512 = arith.constant 512 : index
    %23 = vector.load %arg8[%c0_15, %c512] : memref<96x1152xbf16, #tpu.memory_space<vmem>>, vector<96x128xbf16>
    tpu.vector_store %arg8[%c0_15, %c512], %22 {strides = array<i32>} : memref<96x1152xbf16, #tpu.memory_space<vmem>>, vector<96x128xbf16>,
    %24 = vector.extract_strided_slice %17 {offsets = [0, 4, 0], sizes = [6, 16, 128], strides = [1, 1, 1]} : vector<6x20x128xbf16> to vector<6x16x128xbf16>
    %25 = vector.shape_cast %24 : vector<6x16x128xbf16> to vector<96x128xbf16>
    %c0_16 = arith.constant 0 : index
    %c640 = arith.constant 640 : index
    %26 = vector.load %arg8[%c0_16, %c640] : memref<96x1152xbf16, #tpu.memory_space<vmem>>, vector<96x128xbf16>
    tpu.vector_store %arg8[%c0_16, %c640], %25 {strides = array<i32>} : memref<96x1152xbf16, #tpu.memory_space<vmem>>, vector<96x128xbf16>,
    %c0_17 = arith.constant 0 : index
    %c4 = arith.constant 4 : index
    %c0_18 = arith.constant 0 : index
    %c0_19 = arith.constant 0 : index
    %27 = vector.load %arg3[%c0_17, %c4, %c0_18, %c0_19] : memref<1x20x20x128xbf16, #tpu.memory_space<vmem>>, vector<1x6x20x128xbf16>
    %28 = vector.shape_cast %27 : vector<1x6x20x128xbf16> to vector<6x20x128xbf16>
    %29 = vector.extract_strided_slice %28 {offsets = [0, 0, 0], sizes = [6, 16, 128], strides = [1, 1, 1]} : vector<6x20x128xbf16> to vector<6x16x128xbf16>
    %30 = vector.shape_cast %29 : vector<6x16x128xbf16> to vector<96x128xbf16>
    %c0_20 = arith.constant 0 : index
    %c768 = arith.constant 768 : index
    %31 = vector.load %arg8[%c0_20, %c768] : memref<96x1152xbf16, #tpu.memory_space<vmem>>, vector<96x128xbf16>
    tpu.vector_store %arg8[%c0_20, %c768], %30 {strides = array<i32>} : memref<96x1152xbf16, #tpu.memory_space<vmem>>, vector<96x128xbf16>,
    %32 = vector.extract_strided_slice %28 {offsets = [0, 2, 0], sizes = [6, 16, 128], strides = [1, 1, 1]} : vector<6x20x128xbf16> to vector<6x16x128xbf16>
    %33 = vector.shape_cast %32 : vector<6x16x128xbf16> to vector<96x128xbf16>
    %c0_21 = arith.constant 0 : index
    %c896 = arith.constant 896 : index
    %34 = vector.load %arg8[%c0_21, %c896] : memref<96x1152xbf16, #tpu.memory_space<vmem>>, vector<96x128xbf16>
    tpu.vector_store %arg8[%c0_21, %c896], %33 {strides = array<i32>} : memref<96x1152xbf16, #tpu.memory_space<vmem>>, vector<96x128xbf16>,
    %35 = vector.extract_strided_slice %28 {offsets = [0, 4, 0], sizes = [6, 16, 128], strides = [1, 1, 1]} : vector<6x20x128xbf16> to vector<6x16x128xbf16>
    %36 = vector.shape_cast %35 : vector<6x16x128xbf16> to vector<96x128xbf16>
    %c0_22 = arith.constant 0 : index
    %c1024 = arith.constant 1024 : index
    %37 = vector.load %arg8[%c0_22, %c1024] : memref<96x1152xbf16, #tpu.memory_space<vmem>>, vector<96x128xbf16>
    tpu.vector_store %arg8[%c0_22, %c1024], %36 {strides = array<i32>} : memref<96x1152xbf16, #tpu.memory_space<vmem>>, vector<96x128xbf16>,
    %c0_23 = arith.constant 0 : index
    %c0_24 = arith.constant 0 : index
    %38 = vector.load %arg7[%c0_23, %c0_24] : memref<256x128xf32, #tpu.memory_space<vmem>>, vector<96x128xf32>
    %c0_25 = arith.constant 0 : index
    %c0_26 = arith.constant 0 : index
    %39 = vector.load %arg8[%c0_25, %c0_26] : memref<96x1152xbf16, #tpu.memory_space<vmem>>, vector<96x1152xbf16>
    %cst = arith.constant dense<0.000000e+00> : vector<96x128xf32>
    %40 = tpu.matmul %39, %4, %cst {dimension_numbers = #tpu.dot_dimension_numbers<[1], [0], [0], [1], [0, 0, 1, 1], [], []>} : vector<96x1152xbf16>, vector<1152x128xbf16>, vector<96x128xf32> -> vector<96x128xf32>
    %41 = arith.addf %38, %40 : vector<96x128xf32>
    %c0_27 = arith.constant 0 : index
    %c0_28 = arith.constant 0 : index
    %42 = vector.load %arg7[%c0_27, %c0_28] : memref<256x128xf32, #tpu.memory_space<vmem>>, vector<96x128xf32>
    tpu.vector_store %arg7[%c0_27, %c0_28], %41 {strides = array<i32>} : memref<256x128xf32, #tpu.memory_space<vmem>>, vector<96x128xf32>,
    %c0_29 = arith.constant 0 : index
    %c6 = arith.constant 6 : index
    %c0_30 = arith.constant 0 : index
    %c0_31 = arith.constant 0 : index
    %43 = vector.load %arg3[%c0_29, %c6, %c0_30, %c0_31] : memref<1x20x20x128xbf16, #tpu.memory_space<vmem>>, vector<1x6x20x128xbf16>
    %44 = vector.shape_cast %43 : vector<1x6x20x128xbf16> to vector<6x20x128xbf16>
    %45 = vector.extract_strided_slice %44 {offsets = [0, 0, 0], sizes = [6, 16, 128], strides = [1, 1, 1]} : vector<6x20x128xbf16> to vector<6x16x128xbf16>
    %46 = vector.shape_cast %45 : vector<6x16x128xbf16> to vector<96x128xbf16>
    %c0_32 = arith.constant 0 : index
    %c0_33 = arith.constant 0 : index
    %47 = vector.load %arg8[%c0_32, %c0_33] : memref<96x1152xbf16, #tpu.memory_space<vmem>>, vector<96x128xbf16>
    tpu.vector_store %arg8[%c0_32, %c0_33], %46 {strides = array<i32>} : memref<96x1152xbf16, #tpu.memory_space<vmem>>, vector<96x128xbf16>,
    %48 = vector.extract_strided_slice %44 {offsets = [0, 2, 0], sizes = [6, 16, 128], strides = [1, 1, 1]} : vector<6x20x128xbf16> to vector<6x16x128xbf16>
    %49 = vector.shape_cast %48 : vector<6x16x128xbf16> to vector<96x128xbf16>
    %c0_34 = arith.constant 0 : index
    %c128_35 = arith.constant 128 : index
    %50 = vector.load %arg8[%c0_34, %c128_35] : memref<96x1152xbf16, #tpu.memory_space<vmem>>, vector<96x128xbf16>
    tpu.vector_store %arg8[%c0_34, %c128_35], %49 {strides = array<i32>} : memref<96x1152xbf16, #tpu.memory_space<vmem>>, vector<96x128xbf16>,
    %51 = vector.extract_strided_slice %44 {offsets = [0, 4, 0], sizes = [6, 16, 128], strides = [1, 1, 1]} : vector<6x20x128xbf16> to vector<6x16x128xbf16>
    %52 = vector.shape_cast %51 : vector<6x16x128xbf16> to vector<96x128xbf16>
    %c0_36 = arith.constant 0 : index
    %c256_37 = arith.constant 256 : index
    %53 = vector.load %arg8[%c0_36, %c256_37] : memref<96x1152xbf16, #tpu.memory_space<vmem>>, vector<96x128xbf16>
    tpu.vector_store %arg8[%c0_36, %c256_37], %52 {strides = array<i32>} : memref<96x1152xbf16, #tpu.memory_space<vmem>>, vector<96x128xbf16>,
    %c0_38 = arith.constant 0 : index
    %c8 = arith.constant 8 : index
    %c0_39 = arith.constant 0 : index
    %c0_40 = arith.constant 0 : index
    %54 = vector.load %arg3[%c0_38, %c8, %c0_39, %c0_40] : memref<1x20x20x128xbf16, #tpu.memory_space<vmem>>, vector<1x6x20x128xbf16>
    %55 = vector.shape_cast %54 : vector<1x6x20x128xbf16> to vector<6x20x128xbf16>
    %56 = vector.extract_strided_slice %55 {offsets = [0, 0, 0], sizes = [6, 16, 128], strides = [1, 1, 1]} : vector<6x20x128xbf16> to vector<6x16x128xbf16>
    %57 = vector.shape_cast %56 : vector<6x16x128xbf16> to vector<96x128xbf16>
    %c0_41 = arith.constant 0 : index
    %c384_42 = arith.constant 384 : index
    %58 = vector.load %arg8[%c0_41, %c384_42] : memref<96x1152xbf16, #tpu.memory_space<vmem>>, vector<96x128xbf16>
    tpu.vector_store %arg8[%c0_41, %c384_42], %57 {strides = array<i32>} : memref<96x1152xbf16, #tpu.memory_space<vmem>>, vector<96x128xbf16>,
    %59 = vector.extract_strided_slice %55 {offsets = [0, 2, 0], sizes = [6, 16, 128], strides = [1, 1, 1]} : vector<6x20x128xbf16> to vector<6x16x128xbf16>
    %60 = vector.shape_cast %59 : vector<6x16x128xbf16> to vector<96x128xbf16>
    %c0_43 = arith.constant 0 : index
    %c512_44 = arith.constant 512 : index
    %61 = vector.load %arg8[%c0_43, %c512_44] : memref<96x1152xbf16, #tpu.memory_space<vmem>>, vector<96x128xbf16>
    tpu.vector_store %arg8[%c0_43, %c512_44], %60 {strides = array<i32>} : memref<96x1152xbf16, #tpu.memory_space<vmem>>, vector<96x128xbf16>,
    %62 = vector.extract_strided_slice %55 {offsets = [0, 4, 0], sizes = [6, 16, 128], strides = [1, 1, 1]} : vector<6x20x128xbf16> to vector<6x16x128xbf16>
    %63 = vector.shape_cast %62 : vector<6x16x128xbf16> to vector<96x128xbf16>
    %c0_45 = arith.constant 0 : index
    %c640_46 = arith.constant 640 : index
    %64 = vector.load %arg8[%c0_45, %c640_46] : memref<96x1152xbf16, #tpu.memory_space<vmem>>, vector<96x128xbf16>
    tpu.vector_store %arg8[%c0_45, %c640_46], %63 {strides = array<i32>} : memref<96x1152xbf16, #tpu.memory_space<vmem>>, vector<96x128xbf16>,
    %c0_47 = arith.constant 0 : index
    %c10 = arith.constant 10 : index
    %c0_48 = arith.constant 0 : index
    %c0_49 = arith.constant 0 : index
    %65 = vector.load %arg3[%c0_47, %c10, %c0_48, %c0_49] : memref<1x20x20x128xbf16, #tpu.memory_space<vmem>>, vector<1x6x20x128xbf16>
    %66 = vector.shape_cast %65 : vector<1x6x20x128xbf16> to vector<6x20x128xbf16>
    %67 = vector.extract_strided_slice %66 {offsets = [0, 0, 0], sizes = [6, 16, 128], strides = [1, 1, 1]} : vector<6x20x128xbf16> to vector<6x16x128xbf16>
    %68 = vector.shape_cast %67 : vector<6x16x128xbf16> to vector<96x128xbf16>
    %c0_50 = arith.constant 0 : index
    %c768_51 = arith.constant 768 : index
    %69 = vector.load %arg8[%c0_50, %c768_51] : memref<96x1152xbf16, #tpu.memory_space<vmem>>, vector<96x128xbf16>
    tpu.vector_store %arg8[%c0_50, %c768_51], %68 {strides = array<i32>} : memref<96x1152xbf16, #tpu.memory_space<vmem>>, vector<96x128xbf16>,
    %70 = vector.extract_strided_slice %66 {offsets = [0, 2, 0], sizes = [6, 16, 128], strides = [1, 1, 1]} : vector<6x20x128xbf16> to vector<6x16x128xbf16>
    %71 = vector.shape_cast %70 : vector<6x16x128xbf16> to vector<96x128xbf16>
    %c0_52 = arith.constant 0 : index
    %c896_53 = arith.constant 896 : index
    %72 = vector.load %arg8[%c0_52, %c896_53] : memref<96x1152xbf16, #tpu.memory_space<vmem>>, vector<96x128xbf16>
    tpu.vector_store %arg8[%c0_52, %c896_53], %71 {strides = array<i32>} : memref<96x1152xbf16, #tpu.memory_space<vmem>>, vector<96x128xbf16>,
    %73 = vector.extract_strided_slice %66 {offsets = [0, 4, 0], sizes = [6, 16, 128], strides = [1, 1, 1]} : vector<6x20x128xbf16> to vector<6x16x128xbf16>
    %74 = vector.shape_cast %73 : vector<6x16x128xbf16> to vector<96x128xbf16>
    %c0_54 = arith.constant 0 : index
    %c1024_55 = arith.constant 1024 : index
    %75 = vector.load %arg8[%c0_54, %c1024_55] : memref<96x1152xbf16, #tpu.memory_space<vmem>>, vector<96x128xbf16>
    tpu.vector_store %arg8[%c0_54, %c1024_55], %74 {strides = array<i32>} : memref<96x1152xbf16, #tpu.memory_space<vmem>>, vector<96x128xbf16>,
    %c96 = arith.constant 96 : index
    %c0_56 = arith.constant 0 : index
    %76 = vector.load %arg7[%c96, %c0_56] : memref<256x128xf32, #tpu.memory_space<vmem>>, vector<96x128xf32>
    %c0_57 = arith.constant 0 : index
    %c0_58 = arith.constant 0 : index
    %77 = vector.load %arg8[%c0_57, %c0_58] : memref<96x1152xbf16, #tpu.memory_space<vmem>>, vector<96x1152xbf16>
    %cst_59 = arith.constant dense<0.000000e+00> : vector<96x128xf32>
    %78 = tpu.matmul %77, %4, %cst_59 {dimension_numbers = #tpu.dot_dimension_numbers<[1], [0], [0], [1], [0, 0, 1, 1], [], []>} : vector<96x1152xbf16>, vector<1152x128xbf16>, vector<96x128xf32> -> vector<96x128xf32>
    %79 = arith.addf %76, %78 : vector<96x128xf32>
    %c96_60 = arith.constant 96 : index
    %c0_61 = arith.constant 0 : index
    %80 = vector.load %arg7[%c96_60, %c0_61] : memref<256x128xf32, #tpu.memory_space<vmem>>, vector<96x128xf32>
    tpu.vector_store %arg7[%c96_60, %c0_61], %79 {strides = array<i32>} : memref<256x128xf32, #tpu.memory_space<vmem>>, vector<96x128xf32>,
    %c0_62 = arith.constant 0 : index
    %c12 = arith.constant 12 : index
    %c0_63 = arith.constant 0 : index
    %c0_64 = arith.constant 0 : index
    %81 = vector.load %arg3[%c0_62, %c12, %c0_63, %c0_64] : memref<1x20x20x128xbf16, #tpu.memory_space<vmem>>, vector<1x4x20x128xbf16>
    %82 = vector.shape_cast %81 : vector<1x4x20x128xbf16> to vector<4x20x128xbf16>
    %83 = vector.extract_strided_slice %82 {offsets = [0, 0, 0], sizes = [4, 16, 128], strides = [1, 1, 1]} : vector<4x20x128xbf16> to vector<4x16x128xbf16>
    %84 = vector.shape_cast %83 : vector<4x16x128xbf16> to vector<64x128xbf16>
    %c0_65 = arith.constant 0 : index
    %c0_66 = arith.constant 0 : index
    %85 = vector.load %arg8[%c0_65, %c0_66] : memref<96x1152xbf16, #tpu.memory_space<vmem>>, vector<64x128xbf16>
    tpu.vector_store %arg8[%c0_65, %c0_66], %84 {strides = array<i32>} : memref<96x1152xbf16, #tpu.memory_space<vmem>>, vector<64x128xbf16>,
    %86 = vector.extract_strided_slice %82 {offsets = [0, 2, 0], sizes = [4, 16, 128], strides = [1, 1, 1]} : vector<4x20x128xbf16> to vector<4x16x128xbf16>
    %87 = vector.shape_cast %86 : vector<4x16x128xbf16> to vector<64x128xbf16>
    %c0_67 = arith.constant 0 : index
    %c128_68 = arith.constant 128 : index
    %88 = vector.load %arg8[%c0_67, %c128_68] : memref<96x1152xbf16, #tpu.memory_space<vmem>>, vector<64x128xbf16>
    tpu.vector_store %arg8[%c0_67, %c128_68], %87 {strides = array<i32>} : memref<96x1152xbf16, #tpu.memory_space<vmem>>, vector<64x128xbf16>,
    %89 = vector.extract_strided_slice %82 {offsets = [0, 4, 0], sizes = [4, 16, 128], strides = [1, 1, 1]} : vector<4x20x128xbf16> to vector<4x16x128xbf16>
    %90 = vector.shape_cast %89 : vector<4x16x128xbf16> to vector<64x128xbf16>
    %c0_69 = arith.constant 0 : index
    %c256_70 = arith.constant 256 : index
    %91 = vector.load %arg8[%c0_69, %c256_70] : memref<96x1152xbf16, #tpu.memory_space<vmem>>, vector<64x128xbf16>
    tpu.vector_store %arg8[%c0_69, %c256_70], %90 {strides = array<i32>} : memref<96x1152xbf16, #tpu.memory_space<vmem>>, vector<64x128xbf16>,
    %c0_71 = arith.constant 0 : index
    %c14 = arith.constant 14 : index
    %c0_72 = arith.constant 0 : index
    %c0_73 = arith.constant 0 : index
    %92 = vector.load %arg3[%c0_71, %c14, %c0_72, %c0_73] : memref<1x20x20x128xbf16, #tpu.memory_space<vmem>>, vector<1x4x20x128xbf16>
    %93 = vector.shape_cast %92 : vector<1x4x20x128xbf16> to vector<4x20x128xbf16>
    %94 = vector.extract_strided_slice %93 {offsets = [0, 0, 0], sizes = [4, 16, 128], strides = [1, 1, 1]} : vector<4x20x128xbf16> to vector<4x16x128xbf16>
    %95 = vector.shape_cast %94 : vector<4x16x128xbf16> to vector<64x128xbf16>
    %c0_74 = arith.constant 0 : index
    %c384_75 = arith.constant 384 : index
    %96 = vector.load %arg8[%c0_74, %c384_75] : memref<96x1152xbf16, #tpu.memory_space<vmem>>, vector<64x128xbf16>
    tpu.vector_store %arg8[%c0_74, %c384_75], %95 {strides = array<i32>} : memref<96x1152xbf16, #tpu.memory_space<vmem>>, vector<64x128xbf16>,
    %97 = vector.extract_strided_slice %93 {offsets = [0, 2, 0], sizes = [4, 16, 128], strides = [1, 1, 1]} : vector<4x20x128xbf16> to vector<4x16x128xbf16>
    %98 = vector.shape_cast %97 : vector<4x16x128xbf16> to vector<64x128xbf16>
    %c0_76 = arith.constant 0 : index
    %c512_77 = arith.constant 512 : index
    %99 = vector.load %arg8[%c0_76, %c512_77] : memref<96x1152xbf16, #tpu.memory_space<vmem>>, vector<64x128xbf16>
    tpu.vector_store %arg8[%c0_76, %c512_77], %98 {strides = array<i32>} : memref<96x1152xbf16, #tpu.memory_space<vmem>>, vector<64x128xbf16>,
    %100 = vector.extract_strided_slice %93 {offsets = [0, 4, 0], sizes = [4, 16, 128], strides = [1, 1, 1]} : vector<4x20x128xbf16> to vector<4x16x128xbf16>
    %101 = vector.shape_cast %100 : vector<4x16x128xbf16> to vector<64x128xbf16>
    %c0_78 = arith.constant 0 : index
    %c640_79 = arith.constant 640 : index
    %102 = vector.load %arg8[%c0_78, %c640_79] : memref<96x1152xbf16, #tpu.memory_space<vmem>>, vector<64x128xbf16>
    tpu.vector_store %arg8[%c0_78, %c640_79], %101 {strides = array<i32>} : memref<96x1152xbf16, #tpu.memory_space<vmem>>, vector<64x128xbf16>,
    %c0_80 = arith.constant 0 : index
    %c16 = arith.constant 16 : index
    %c0_81 = arith.constant 0 : index
    %c0_82 = arith.constant 0 : index
    %103 = vector.load %arg3[%c0_80, %c16, %c0_81, %c0_82] : memref<1x20x20x128xbf16, #tpu.memory_space<vmem>>, vector<1x4x20x128xbf16>
    %104 = vector.shape_cast %103 : vector<1x4x20x128xbf16> to vector<4x20x128xbf16>
    %105 = vector.extract_strided_slice %104 {offsets = [0, 0, 0], sizes = [4, 16, 128], strides = [1, 1, 1]} : vector<4x20x128xbf16> to vector<4x16x128xbf16>
    %106 = vector.shape_cast %105 : vector<4x16x128xbf16> to vector<64x128xbf16>
    %c0_83 = arith.constant 0 : index
    %c768_84 = arith.constant 768 : index
    %107 = vector.load %arg8[%c0_83, %c768_84] : memref<96x1152xbf16, #tpu.memory_space<vmem>>, vector<64x128xbf16>
    tpu.vector_store %arg8[%c0_83, %c768_84], %106 {strides = array<i32>} : memref<96x1152xbf16, #tpu.memory_space<vmem>>, vector<64x128xbf16>,
    %108 = vector.extract_strided_slice %104 {offsets = [0, 2, 0], sizes = [4, 16, 128], strides = [1, 1, 1]} : vector<4x20x128xbf16> to vector<4x16x128xbf16>
    %109 = vector.shape_cast %108 : vector<4x16x128xbf16> to vector<64x128xbf16>
    %c0_85 = arith.constant 0 : index
    %c896_86 = arith.constant 896 : index
    %110 = vector.load %arg8[%c0_85, %c896_86] : memref<96x1152xbf16, #tpu.memory_space<vmem>>, vector<64x128xbf16>
    tpu.vector_store %arg8[%c0_85, %c896_86], %109 {strides = array<i32>} : memref<96x1152xbf16, #tpu.memory_space<vmem>>, vector<64x128xbf16>,
    %111 = vector.extract_strided_slice %104 {offsets = [0, 4, 0], sizes = [4, 16, 128], strides = [1, 1, 1]} : vector<4x20x128xbf16> to vector<4x16x128xbf16>
    %112 = vector.shape_cast %111 : vector<4x16x128xbf16> to vector<64x128xbf16>
    %c0_87 = arith.constant 0 : index
    %c1024_88 = arith.constant 1024 : index
    %113 = vector.load %arg8[%c0_87, %c1024_88] : memref<96x1152xbf16, #tpu.memory_space<vmem>>, vector<64x128xbf16>
    tpu.vector_store %arg8[%c0_87, %c1024_88], %112 {strides = array<i32>} : memref<96x1152xbf16, #tpu.memory_space<vmem>>, vector<64x128xbf16>,
    %c192 = arith.constant 192 : index
    %c0_89 = arith.constant 0 : index
    %114 = vector.load %arg7[%c192, %c0_89] : memref<256x128xf32, #tpu.memory_space<vmem>>, vector<64x128xf32>
    %c0_90 = arith.constant 0 : index
    %c0_91 = arith.constant 0 : index
    %115 = vector.load %arg8[%c0_90, %c0_91] : memref<96x1152xbf16, #tpu.memory_space<vmem>>, vector<64x1152xbf16>
    %cst_92 = arith.constant dense<0.000000e+00> : vector<64x128xf32>
    %116 = tpu.matmul %115, %4, %cst_92 {dimension_numbers = #tpu.dot_dimension_numbers<[1], [0], [0], [1], [0, 0, 1, 1], [], []>} : vector<64x1152xbf16>, vector<1152x128xbf16>, vector<64x128xf32> -> vector<64x128xf32>
    %117 = arith.addf %114, %116 : vector<64x128xf32>
    %c192_93 = arith.constant 192 : index
    %c0_94 = arith.constant 0 : index
    %118 = vector.load %arg7[%c192_93, %c0_94] : memref<256x128xf32, #tpu.memory_space<vmem>>, vector<64x128xf32>
    tpu.vector_store %arg7[%c192_93, %c0_94], %117 {strides = array<i32>} : memref<256x128xf32, #tpu.memory_space<vmem>>, vector<64x128xf32>,
    %c0_i32_95 = arith.constant 0 : i32
    %119 = arith.cmpi eq, %arg2, %c0_i32_95 : i32
    %120 = arith.extui %119 : i1 to i32
    %c0_i32_96 = arith.constant 0 : i32
    %121 = arith.cmpi ne, %120, %c0_i32_96 : i32
    scf.if %121 {
      %c0_97 = arith.constant 0 : index
      %c0_98 = arith.constant 0 : index
      %122 = vector.load %arg7[%c0_97, %c0_98] : memref<256x128xf32, #tpu.memory_space<vmem>>, vector<256x128xf32>
      %123 = arith.truncf %122 : vector<256x128xf32> to vector<256x128xbf16>
      %c0_99 = arith.constant 0 : index
      %c0_100 = arith.constant 0 : index
      %c0_101 = arith.constant 0 : index
      %124 = vector.load %arg5[%c0_99, %c0_100, %c0_101] : memref<1x256x128xbf16, #tpu.memory_space<vmem>>, vector<1x256x128xbf16>
      %125 = vector.shape_cast %124 : vector<1x256x128xbf16> to vector<256x128xbf16>
      %126 = vector.shape_cast %123 : vector<256x128xbf16> to vector<1x256x128xbf16>
      tpu.vector_store %arg5[%c0_99, %c0_100, %c0_101], %126 {strides = array<i32>} : memref<1x256x128xbf16, #tpu.memory_space<vmem>>, vector<1x256x128xbf16>,
      %cst_102 = arith.constant dense<0.000000e+00> : vector<128xf32>
      %127 = vector.multi_reduction <add>, %122, %cst_102 [0] : vector<256x128xf32> to vector<128xf32>
      %128 = vector.shape_cast %127 : vector<128xf32> to vector<1x128xf32>
      %129 = arith.mulf %122, %122 : vector<256x128xf32>
      %cst_103 = arith.constant dense<0.000000e+00> : vector<128xf32>
      %130 = vector.multi_reduction <add>, %129, %cst_103 [0] : vector<256x128xf32> to vector<128xf32>
      %131 = vector.shape_cast %130 : vector<128xf32> to vector<1x128xf32>
      %132 = tpu.concatenate %128, %131 in 0 : vector<1x128xf32>, vector<1x128xf32> -> vector<2x128xf32>
      %c0_104 = arith.constant 0 : index
      %c0_105 = arith.constant 0 : index
      %c0_106 = arith.constant 0 : index
      %133 = vector.load %arg6[%c0_104, %c0_105, %c0_106] : memref<1x2x128xf32, #tpu.memory_space<vmem>>, vector<1x2x128xf32>
      %134 = vector.shape_cast %133 : vector<1x2x128xf32> to vector<2x128xf32>
      %135 = vector.shape_cast %132 : vector<2x128xf32> to vector<1x2x128xf32>
      tpu.vector_store %arg6[%c0_104, %c0_105, %c0_106], %135 {strides = array<i32>} : memref<1x2x128xf32, #tpu.memory_space<vmem>>, vector<1x2x128xf32>,
    } else {
    }
    return
  }
  func.func @transform_0(%arg0: i32, %arg1: i32, %arg2: i32) -> (i32, i32, i32, i32) {
    %c0_i32 = arith.constant 0 : i32
    %c0_i32_0 = arith.constant 0 : i32
    %c0_i32_1 = arith.constant 0 : i32
    return %arg0, %c0_i32, %c0_i32_0, %arg2 : i32, i32, i32, i32
  }
  func.func @transform_1(%arg0: i32, %arg1: i32, %arg2: i32) -> (i32, i32, i32) {
    %c0_i32 = arith.constant 0 : i32
    %c0_i32_0 = arith.constant 0 : i32
    return %arg2, %c0_i32, %arg1 : i32, i32, i32
  }
  func.func @transform_2(%arg0: i32, %arg1: i32, %arg2: i32) -> (i32, i32, i32) {
    %c0_i32 = arith.constant 0 : i32
    %c0_i32_0 = arith.constant 0 : i32
    return %arg0, %c0_i32, %arg1 : i32, i32, i32
  }
  func.func @transform_3(%arg0: i32, %arg1: i32, %arg2: i32) -> (i32, i32, i32) {
    %c0_i32 = arith.constant 0 : i32
    %c0_i32_0 = arith.constant 0 : i32
    return %arg0, %c0_i32, %arg1 : i32, i32, i32
  }
}

</mosaic_0001>

<bundles_post_ra>
// kernel: _lambda_.1
= control target key start
LH: loop header
LB: loop body
LE: loop exit
PB: predicated region body
PF: predicated region fallthrough
CT: control target
= control target key end

     0   :  { %s6242_s12 = smov 0   ;;  %s6244_s13 = smov 0   ;;  %s9291_s0 = inlined_call_operand.vmem [shape: bf16[2,20,20,128], index: 0, kind: input, shape index: {}]   ;;  %s9292_s1 = inlined_call_operand.vmem [shape: bf16[1,1152,128], index: 1, kind: input, shape index: {}]   ;;  %s9293_s2 = inlined_call_operand.vmem [shape: bf16[2,256,128], index: 2, kind: output, shape index: {0}]   ;;  %s9294_s3 = inlined_call_operand.vmem [shape: f32[2,2,128], index: 3, kind: output, shape index: {1}]  }
   0x1   :  { %s6246_s14 = smov 0  }
   0x2 LB: > { %s33_s15 = sadd.s32 1, %s6216_s13  ;;  %p4642_p0 = scmp.ge.s32.totalorder %s6220_s14, 1  ;;  %s6220_s14 = sphi %s6246_s14, %s14_s14   ;;  %s6216_s13 = sphi %s6244_s13, %s9530_s13   ;;  %s6212_s12 = sphi %s6242_s12, %s9529_s12  }
   0x3   : > { %p35_p1 = scmp.ge.s32.totalorder %s33_s15, 2  ;;  %p183_p2 = scmp.lt.s32.totalorder %s6220_s14, 3 }
   0x5   : > { %s9532_s15 = smov (%p35_p1, %s33_s15), 0  ;;  %p184_p3 = pnand %p4642_p0, %p183_p2 }
   0x7   : > { %187 = sbr.rel (%p184_p3) target bundleno = 830 (0x33e), region = 28 }
   0xc   : > { %v5743_v0 = vld [vmem:[%s9292_s1 + $0x38] sm:$0xff]  ;;  %p228_p4 = scmp.lt.s32.totalorder %s6212_s12, 1  ;;  %v5742_v3 = vld [vmem:[%s9292_s1 + $0x30] sm:$0xff]  ;;  %v5741_v6 = vld [vmem:[%s9292_s1 + $0x28] sm:$0xff]  ;;  %vm556_vm0 = vcmask 1041408   ;;  %vm557_vm1 = vcmask 1045508  }
   0xd   : > { %v5759_v1 = vld [vmem:[%s9292_s1 + $0xb8] sm:$0xff]  ;;  %1767 = vmatpush.bf16.msra.mxu0 %v5743_v0  ;;  %6047 = vmatpush.bf16.msra.mxu1 %v5743_v0  ;;  %v5758_v4 = vld [vmem:[%s9292_s1 + $0xb0] sm:$0xff]  ;;  %v5757_v7 = vld [vmem:[%s9292_s1 + $0xa8] sm:$0xff]  ;;  %vm487_vm3 = vcmask 1042432   ;;  %vm488_vm4 = vcmask 1046532   ;;  %vm4485_vm6 = vcmask 1040384  }
   0xe   : > { %v5767_v2 = vld [vmem:[%s9292_s1 + $0xf8] sm:$0xff]  ;;  %s9534_s12 = smov (!%p228_p4, %s6212_s12), 1  ;;  %1845 = vmatpush.bf16.msra.mxu2 %v5759_v1  ;;  %v5766_v5 = vld [vmem:[%s9292_s1 + $0xf0] sm:$0xff]  ;;  %v5765_v8 = vld [vmem:[%s9292_s1 + $0xe8] sm:$0xff] }
   0xf   : > { %1884 = vmatpush.bf16.msra.mxu3 %v5767_v2  ;;  %s6055_s28 = smul.u32 240, %s9534_s12  ;;  %v5740_v11 = vld [vmem:[%s9292_s1 + $0x20] sm:$0xff]  ;;  %vm6319_vm2 = vmor %vm556_vm0, %vm557_vm1  ;;  %v5739_v18 = vld [vmem:[%s9292_s1 + $0x18] sm:$0xff]  ;;  %s5735_s9 = sshll.u32 %s9534_s12, 7 }
  0x10   : > { %v5756_v12 = vld [vmem:[%s9292_s1 + $0xa0] sm:$0xff]  ;;  %v5755_v20 = vld [vmem:[%s9292_s1 + $0x98] sm:$0xff]  ;;  %v5738_v27 = vld [vmem:[%s9292_s1 + $0x10] sm:$0xff]  ;;  %s8628_s20 = scalar_lea.vmem %s9293_s2, %s5735_s9  ;;  %s4646_s26 = sshll.u32 %s9534_s12, 1 }
  0x11   : > { %1768 = vmatpush.bf16.msra.mxu0 %v5742_v3  ;;  %6048 = vmatpush.bf16.msra.mxu1 %v5742_v3  ;;  %s6287_s6 = scalar_lea.vmem %s9291_s0, %s6055_s28  ;;  %v5764_v13 = vld [vmem:[%s9292_s1 + $0xe0] sm:$0xff]  ;;  %v5763_v21 = vld [vmem:[%s9292_s1 + $0xd8] sm:$0xff]  ;;  %v5754_v30 = vld [vmem:[%s9292_s1 + $0x90] sm:$0xff]  ;;  %s258_s29 = scalar_lea.vmem %s9294_s3, %s4646_s26 }
  0x12   : > { %1846 = vmatpush.bf16.msra.mxu2 %v5758_v4  ;;  %v6296_v9 = vld [vmem:[%s6287_s6] sm:$0xf]  ;;  %v6299_v10 = vld [vmem:[%s6287_s6 + $0x4] sm:$0xf]  ;;  %v6314_v15 = vld [vmem:[%s6287_s6 + $0x30] sm:$0xf] }
  0x13   : > { %1885 = vmatpush.bf16.msra.mxu3 %v5766_v5  ;;  %457 = vst [vmem:[#allocation3] sm:$0xf] %v6296_v9  ;;  %v4653_v14 = vrot.slane %v6296_v9, 10  ;;  %v6317_v16 = vld [vmem:[%s6287_s6 + $0x34] sm:$0xf]  ;;  %v561_v19 = vrot.slane %v6299_v10, 6  ;;  %vm6608_vm5 = vmor %vm487_vm3, %vm488_vm4 }
  0x14   : > { %458 = vst [vmem:[#allocation3 + $0x24] sm:$0xf] %v6299_v10  ;;  %v6338_v23 = vld [vmem:[%s6287_s6 + $0x48] sm:$0xf]  ;;  %v6345_v26 = vld [vmem:[%s6287_s6 + $0x4c] sm:$0xf] }
  0x15   : > { %1769 = vmatpush.bf16.msra.mxu0 %v5741_v6  ;;  %6049 = vmatpush.bf16.msra.mxu1 %v5741_v6  ;;  %465 = vst [vmem:[#allocation3 + $0x120] sm:$0xf] %v6314_v15  ;;  %v562_v24 = vsel %vm6319_vm2, %v4653_v14, %v561_v19  ;;  %v6353_v28 = vld [vmem:[%s6287_s6 + $0x8] sm:$0x3]  ;;  %v563_v29 = vrot.slane %v561_v19, 4  ;;  %v5762_v31 = vld [vmem:[%s9292_s1 + $0xd0] sm:$0xff] }
  0x16   : > { %1847 = vmatpush.bf16.msra.mxu2 %v5757_v7  ;;  %466 = vst [vmem:[#allocation3 + $0x144] sm:$0xf] %v6317_v16  ;;  %v564_v32 = vrot.slane %v6353_v28, 6  ;;  %v5737_v33 = vld [vmem:[%s9292_s1 + $0x8] sm:$0xff]  ;;  %v5247_v34 = vrot.slane %v6338_v23, 10  ;;  %v2259_v35 = vrot.slane %v6345_v26, 6 }
  0x17   : > { %1886 = vmatpush.bf16.msra.mxu3 %v5765_v8  ;;  %613 = vst [vmem:[#allocation3 + $0x8] sm:$0xf] %v562_v24  ;;  %v5753_v36 = vld [vmem:[%s9292_s1 + $0x88] sm:$0xff]  ;;  %v6376_v39 = vld [vmem:[%s6287_s6 + $0x78] sm:$0xf]  ;;  %v5736_v46 = vld [vmem:[%s9292_s1] sm:$0xff] }
  0x18   : > { %v5761_v37 = vld [vmem:[%s9292_s1 + $0xc8] sm:$0xff]  ;;  %v6379_v40 = vld [vmem:[%s6287_s6 + $0x7c] sm:$0xf]  ;;  %v565_v41 = vsel %vm6319_vm2, %v563_v29, %v564_v32  ;;  %v6385_v43 = vld [vmem:[%s6287_s6 + $0x50] sm:$0x3]  ;;  %v2260_v48 = vsel %vm6319_vm2, %v5247_v34, %v2259_v35  ;;  %v2261_v50 = vrot.slane %v2259_v35, 4 }
  0x19   : > { %1770 = vmatpush.bf16.msra.mxu0 %v5740_v11  ;;  %6050 = vmatpush.bf16.msra.mxu1 %v5740_v11  ;;  %v6388_v44 = vld [vmem:[%s6287_s6 + $0x90] sm:$0xf]  ;;  %v6391_v45 = vld [vmem:[%s6287_s6 + $0x94] sm:$0xf]  ;;  %614 = vst [vmem:[#allocation3 + $0x2c] sm:$0xf] %v565_v41 }
  0x1a   : > { %1848 = vmatpush.bf16.msra.mxu2 %v5756_v12  ;;  %v6335_v22 = vld [vmem:[#allocation3] sm:$0xf]  ;;  %v6402_v49 = vld [vmem:[%s6287_s6 + $0x18] sm:$0xf]  ;;  %v2262_v52 = vrot.slane %v6385_v43, 6  ;;  %v5545_v57 = vrot.slane %v6388_v44, 10 }
  0x1b   : > { %1887 = vmatpush.bf16.msra.mxu3 %v5764_v13  ;;  %v6342_v25 = vld [vmem:[#allocation3 + $0x20] sm:$0xf0]  ;;  %2161 = vst [vmem:[#allocation3] sm:$0xf] %v6338_v23  ;;  %v6410_v54 = vld [vmem:[%s6287_s6 + $0x1c] sm:$0xf] }
  0x1c   : > { %2162 = vst [vmem:[#allocation3 + $0x24] sm:$0xf] %v6345_v26  ;;  %v6373_v38 = vld [vmem:[#allocation3 + $0x120] sm:$0xf]  ;;  %v6422_v58 = vld [vmem:[%s9292_s1 + $0x78] sm:$0xff]  ;;  %v3487_v59 = vrot.slane %v6391_v45, 6  ;;  %v4722_v62 = vor.u32 %v6342_v25, %v6335_v22  ;;  %v2263_v0 = vsel %vm6319_vm2, %v2261_v50, %v2262_v52 }
  0x1d   : > { %1771 = vmatpush.bf16.msra.mxu0 %v5739_v18  ;;  %6051 = vmatpush.bf16.msra.mxu1 %v5739_v18  ;;  %v5848_v42 = vld [vmem:[#allocation3 + $0x140] sm:$0xf0]  ;;  %2169 = vst [vmem:[#allocation3 + $0x120] sm:$0xf] %v6376_v39  ;;  %v6427_v60 = vld [vmem:[%s6287_s6 + $0xa8] sm:$0xf] }
  0x1e   : > { %1849 = vmatpush.bf16.msra.mxu2 %v5755_v20  ;;  %2170 = vst [vmem:[#allocation3 + $0x144] sm:$0xf] %v6379_v40  ;;  %v4729_v53 = vld [vmem:[#allocation3 + $0x8] sm:$0xf]  ;;  %v5752_v55 = vld [vmem:[%s9292_s1 + $0x80] sm:$0xff]  ;;  %v5791_v61 = vld [vmem:[%s9292_s1 + $0x1b8] sm:$0xff]  ;;  %v4866_v63 = vor.u32 %v5848_v42, %v6373_v38  ;;  %v3488_v7 = vsel %vm6319_vm2, %v5545_v57, %v3487_v59 }
  0x1f   : > { %1888 = vmatpush.bf16.msra.mxu3 %v5763_v21  ;;  %v5760_v56 = vld [vmem:[%s9292_s1 + $0xc0] sm:$0xff]  ;;  %2311 = vst [vmem:[#allocation3 + $0x8] sm:$0xf] %v2260_v48  ;;  %v6439_v1 = vld [vmem:[%s6287_s6 + $0xac] sm:$0xf]  ;;  %v5565_v2 = vrot.slane %v6427_v60, 10 }
  0x20   : > { %644 = vst [vmem:[#allocation3 + $0xc] sm:$0xf] %v6402_v49  ;;  %v9295_v3 = vrot.slane %v6439_v1, 6  ;;  %v5799_v4 = vld [vmem:[%s9292_s1 + $0x1f8] sm:$0xff]  ;;  %v5813_v5 = vld [vmem:[#allocation3 + $0x28] sm:$0xf0] }
  0x21   : > { %1772 = vmatpush.bf16.msra.mxu0 %v5738_v27  ;;  %6052 = vmatpush.bf16.msra.mxu1 %v5738_v27  ;;  %645 = vst [vmem:[#allocation3 + $0x30] sm:$0xf] %v6410_v54  ;;  %v6447_v6 = vld [vmem:[%s6287_s6 + $0x98] sm:$0x3]  ;;  %v3489_v11 = vrot.slane %v3487_v59, 4  ;;  %v4730_v12 = vor.u32 %v5813_v5, %v4729_v53  ;;  %v6465_v18 = vld [vmem:[%s9292_s1 + $0x70] sm:$0xff] }
  0x22   : > { %1850 = vmatpush.bf16.msra.mxu2 %v5754_v30  ;;  %v6397_v47 = vld [vmem:[#allocation3] sm:$0xf]  ;;  %9347 = vst [vmem:[#allocation6_spill] sm:$0xff] %v6439_v1  ;;  %v5775_v8 = vld [vmem:[%s9292_s1 + $0x138] sm:$0xff]  ;;  %v3490_v13 = vrot.slane %v6447_v6, 6  ;;  %v6459_v14 = vsel %vm6319_vm2, %v5565_v2, %v9295_v3  ;;  %v5790_v19 = vld [vmem:[%s9292_s1 + $0x1b0] sm:$0xff] }
  0x23   : > { %1889 = vmatpush.bf16.msra.mxu3 %v5762_v31  ;;  %9345 = vst [vmem:[#allocation4_spill] sm:$0xff] %v6397_v47  ;;  %v6404_v51 = vld [vmem:[#allocation3 + $0x20] sm:$0xf0]  ;;  %v6471_v20 = vld [vmem:[%s6287_s6 + $0x60] sm:$0xf]  ;;  %v5798_v25 = vld [vmem:[%s9292_s1 + $0x1f0] sm:$0xff] }
  0x24   : > { %9346 = vst [vmem:[#allocation5_spill] sm:$0xff] %v6404_v51  ;;  %v6474_v21 = vld [vmem:[%s6287_s6 + $0x64] sm:$0xf]  ;;  %v6477_v22 = vld [vmem:[%s6287_s6 + $0xc] sm:$0xf]  ;;  %v3491_v32 = vsel %vm6319_vm2, %v3489_v11, %v3490_v13  ;;  %v5774_v34 = vld [vmem:[%s9292_s1 + $0x130] sm:$0xff] }
  0x25   : > { %3421 = vst [vmem:[#allocation3] sm:$0xf] %v6388_v44  ;;  %1773 = vmatpush.bf16.msra.mxu0 %v5737_v33  ;;  %6053 = vmatpush.bf16.msra.mxu1 %v5737_v33  ;;  %v6488_v29 = vld [vmem:[%s9292_s1 + $0x68] sm:$0xff]  ;;  %v6493_v31 = vld [vmem:[%s6287_s6 + $0x10] sm:$0xf]  ;;  %v6512_v38 = vld [vmem:[%s9292_s1 + $0x60] sm:$0xff] }
  0x26   : > { %3422 = vst [vmem:[#allocation3 + $0x24] sm:$0xf] %v6391_v45  ;;  %1851 = vmatpush.bf16.msra.mxu2 %v5753_v36  ;;  %v6479_v24 = vld [vmem:[#allocation3 + $0x8] sm:$0xf]  ;;  %v6503_v35 = vld [vmem:[%s6287_s6 + $0x3c] sm:$0xf] }
  0x27   : > { %1890 = vmatpush.bf16.msra.mxu3 %v5761_v37  ;;  %2312 = vst [vmem:[#allocation3 + $0x2c] sm:$0xf] %v2263_v0  ;;  %v5809_v27 = vld [vmem:[#allocation3 + $0xc] sm:$0xf]  ;;  %v568_v37 = vrot.slane %v6493_v31, 6  ;;  %v4654_v41 = vrot.slane %v6477_v22, 10 }
  0x28   : > { %9348 = vst [vmem:[#allocation7_spill] sm:$0xff] %v6459_v14  ;;  %v4731_v30 = vld [vmem:[#allocation3 + $0x2c] sm:$0xf0]  ;;  %v6516_v42 = vld [vmem:[%s6287_s6 + $0x40] sm:$0xf]  ;;  %v9359_v14 = vrot.slane %v6345_v26, 5 }
  0x29   : > { %1774 = vmatpush.bf16.msra.mxu0 %v5736_v46  ;;  %6054 = vmatpush.bf16.msra.mxu1 %v5736_v46  ;;  %9349 = vst [vmem:[#allocation8_spill] sm:$0xff] %v6479_v24  ;;  %v4734_v33 = vor.u32 %v5809_v27, %v4731_v30  ;;  %v6519_v48 = vld [vmem:[%s6287_s6 + $0x54] sm:$0xf]  ;;  %v6523_v50 = vld [vmem:[%s6287_s6 + $0x58] sm:$0xf]  ;;  %v570_v53 = vrot.slane %v568_v37, 4  ;;  %v569_v59 = vsel %vm6319_vm2, %v4654_v41, %v568_v37 }
  0x2a   : > { %1852 = vmatpush.bf16.msra.mxu2 %v5752_v55  ;;  %459 = vst [vmem:[#allocation3 + $0x48] sm:$0xf] %v6477_v22  ;;  %v6532_v55 = vld [vmem:[%s9292_s1 + $0x58] sm:$0xff]  ;;  %v6539_v57 = vld [vmem:[%s6287_s6 + $0x14] sm:$0x3]  ;;  %v492_v27 = vrot.slane %v6299_v10, 5 }
  0x2b   : > { %1891 = vmatpush.bf16.msra.mxu3 %v5760_v56  ;;  %3521 = vst [vmem:[#allocation3 + $0x8] sm:$0xf] %v3488_v7  ;;  %v571_v0 = vrot.slane %v6539_v57, 6  ;;  %v6550_v2 = vld [vmem:[%s6287_s6 + $0x5c] sm:$0x3]  ;;  %v5789_v7 = vld [vmem:[%s9292_s1 + $0x1a8] sm:$0xff] }
  0x2c   : > { %1775 = vmatmul.bf16.vlgmr.msra.gmra.mxu0 %v4722_v62  ;;  %1795 = vmatmul.bf16.vlgmr.msra.gmra.mxu1 %v4866_v63  ;;  %2342 = vst [vmem:[#allocation3 + $0xc] sm:$0xf] %v6471_v20  ;;  %v6546_v63 = vld [vmem:[%s6287_s6 + $0x84] sm:$0xf]  ;;  %v6567_v13 = vld [vmem:[%s9292_s1 + $0x50] sm:$0xff]  ;;  %v2269_v37 = vrot.slane %v6550_v2, 6 }
  0x2d   : > { %1806 = vmatpush.bf16.msrb.mxu1 %v6422_v58  ;;  %1853 = vmatmul.bf16.vlgmr.msra.gmra.mxu2 %v4730_v12  ;;  %2343 = vst [vmem:[#allocation3 + $0x30] sm:$0xf] %v6474_v21  ;;  %v6554_v5 = vld [vmem:[%s6287_s6 + $0x24] sm:$0xf]  ;;  %v572_v12 = vsel %vm6319_vm2, %v570_v53, %v571_v0  ;;  %v6586_v10 = vld [vmem:[%s6287_s6 + $0x6c] sm:$0xf] }
  0x2e   : > { %2001 = vmatpush.bf16.msrb.mxu2 %v5791_v61  ;;  %1923 = vmatpush.bf16.msrb.mxu0 %v5775_v8  ;;  %460 = vst [vmem:[#allocation3 + $0x6c] sm:$0xf] %v6493_v31  ;;  %v6505_v36 = vld [vmem:[#allocation3 + $0x28] sm:$0xf0]  ;;  %v5248_v8 = vrot.slane %v6519_v48, 10  ;;  %v9362_v24 = vrot.slane %v6345_v26, 5 }
  0x2f   : > { %2040 = vmatpush.bf16.msrb.mxu3 %v5799_v4  ;;  %9350 = vst [vmem:[#allocation9_spill] sm:$0xff] %v6505_v36  ;;  %v2266_v4 = vrot.slane %v6523_v50, 6  ;;  %v5797_v53 = vld [vmem:[%s9292_s1 + $0x1e8] sm:$0xff]  ;;  %v5771_v26 = vld [vmem:[%s9292_s1 + $0x118] sm:$0xff] }
  0x30   : > { %1892 = vmatmul.bf16.vlgmr.msra.gmra.mxu3 %v4734_v33  ;;  %3522 = vst [vmem:[#allocation3 + $0x2c] sm:$0xf] %v3491_v32  ;;  %v5773_v32 = vld [vmem:[%s9292_s1 + $0x128] sm:$0xff] }
  0x31   : > { %1807 = vmatpush.bf16.msrb.mxu1 %v6465_v18  ;;  %v4757_v46 = vld [vmem:[#allocation3 + $0x48] sm:$0xf]  ;;  %467 = vst [vmem:[#allocation3 + $0x168] sm:$0xf] %v6503_v35  ;;  %v2268_v33 = vrot.slane %v2266_v4, 4  ;;  %v2267_v41 = vsel %vm6319_vm2, %v5248_v8, %v2266_v4  ;;  %v495_v8 = vrot.slane %v6353_v28, 5 }
  0x32   : > { %2002 = vmatpush.bf16.msrb.mxu2 %v5790_v19  ;;  %1924 = vmatpush.bf16.msrb.mxu0 %v5774_v34  ;;  %2163 = vst [vmem:[#allocation3 + $0x48] sm:$0xf] %v6519_v48  ;;  %v6570_v19 = vld [vmem:[%s6287_s6 + $0x88] sm:$0xf]  ;;  %v6602_v4 = vld [vmem:[%s6287_s6 + $0x1c] sm:$0xf] }
  0x33   : > { %2041 = vmatpush.bf16.msrb.mxu3 %v5798_v25  ;;  %v6526_v52 = vld [vmem:[#allocation3 + $0xc] sm:$0xf]  ;;  %468 = vst [vmem:[#allocation3 + $0x18c] sm:$0xf] %v6516_v42  ;;  %v6574_v25 = vld [vmem:[%s6287_s6 + $0x28] sm:$0xf] }
  0x34   : > { %9351 = vst [vmem:[#allocation10_spill] sm:$0xff] %v6526_v52  ;;  %v6534_v56 = vld [vmem:[#allocation3 + $0x2c] sm:$0xf0]  ;;  %v6618_v28 = vld [vmem:[%s9292_s1 + $0x40] sm:$0xff]  ;;  %v2195_v52 = vrot.slane %v9359_v14, 4 }
  0x35   : > { %1808 = vmatpush.bf16.msrb.mxu1 %v6488_v29  ;;  %9352 = vst [vmem:[#allocation11_spill] sm:$0xff] %v6532_v55  ;;  %v5821_v61 = vld [vmem:[#allocation3 + $0x68] sm:$0xf0] }
  0x36   : > { %9353 = vst [vmem:[#allocation12_spill] sm:$0xff] %v6534_v56  ;;  %v4758_v62 = vor.u32 %v5821_v61, %v4757_v46  ;;  %2003 = vmatpush.bf16.msrb.mxu2 %v5789_v7  ;;  %v6592_v46 = vld [vmem:[%s9292_s1 + $0x48] sm:$0xff]  ;;  %1925 = vmatpush.bf16.msrb.mxu0 %v5773_v32  ;;  %v4647_v61 = vrot.slane %v6296_v9, 9  ;;  %v5241_v9 = vrot.slane %v6338_v23, 9  ;;  %v5772_v7 = vld [vmem:[%s9292_s1 + $0x120] sm:$0xff] }
  0x37   : > { %3542 = vst [vmem:[#allocation3 + $0xc] sm:$0xf] %v6427_v60  ;;  %2042 = vmatpush.bf16.msrb.mxu3 %v5797_v53  ;;  %v6628_v53 = vld [vmem:[%s6287_s6 + $0x64] sm:$0xf] }
  0x38   : > { %3543 = vst [vmem:[#allocation3 + $0x30] sm:$0xf] %v6439_v1  ;;  %v4901_v11 = vld [vmem:[#allocation3 + $0x168] sm:$0xf]  ;;  %v493_v3 = vsel %vm6608_vm5, %v4647_v61, %v492_v27  ;;  %v6651_v61 = vld [vmem:[%s9292_s1 + $0x178] sm:$0xff] }
  0x39   : > { %1809 = vmatpush.bf16.msrb.mxu1 %v6512_v38  ;;  %2164 = vst [vmem:[#allocation3 + $0x6c] sm:$0xf] %v6523_v50 }
  0x3a   : > { %615 = vst [vmem:[#allocation3 + $0x50] sm:$0xf] %v569_v59  ;;  %v5857_v30 = vld [vmem:[#allocation3 + $0x188] sm:$0xf0]  ;;  %v6598_v59 = vld [vmem:[%s6287_s6 + $0x18] sm:$0xf]  ;;  %1926 = vmatpush.bf16.msrb.mxu0 %v5772_v7 }
  0x3b   : > { %646 = vst [vmem:[#allocation3 + $0x54] sm:$0xf] %v6554_v5  ;;  %v4902_v34 = vor.u32 %v5857_v30, %v4901_v11  ;;  %v2270_v11 = vsel %vm6319_vm2, %v2268_v33, %v2269_v37  ;;  %v4655_v32 = vrot.slane %v6598_v59, 10  ;;  %v575_v33 = vrot.slane %v6602_v4, 6  ;;  %v6623_v37 = vld [vmem:[%s6287_s6 + $0x70] sm:$0xf] }
  0x3c   : > { %9354 = vst [vmem:[#allocation13_spill] sm:$0xff] %v6567_v13  ;;  %1780 = vmatmul.bf16.gmra.mxu0 %v4758_v62  ;;  %v494_v62 = vrot.slane %v492_v27, 4  ;;  %v6644_v27 = vld [vmem:[%s6287_s6 + $0x20] sm:$0x3] }
  0x3d   : > { %1810 = vmatpush.bf16.msrb.mxu1 %v6532_v55  ;;  %2171 = vst [vmem:[#allocation3 + $0x168] sm:$0xf] %v6546_v63  ;;  %v576_v14 = vsel %vm6319_vm2, %v4655_v32, %v575_v33  ;;  %v5788_v32 = vld [vmem:[%s9292_s1 + $0x1a0] sm:$0xff] }
  0x3e   : > { %616 = vst [vmem:[#allocation3 + $0x74] sm:$0xf] %v572_v12  ;;  %1800 = vmatmul.bf16.gmra.mxu1 %v4902_v34  ;;  %2004 = vmatpush.bf16.msrb.mxu2 %v5788_v32 }
  0x3f   : > { %2172 = vst [vmem:[#allocation3 + $0x18c] sm:$0xf] %v6570_v19  ;;  %1927 = vmatpush.bf16.msrb.mxu0 %v5771_v26  ;;  %v6735_v26 = vld [vmem:[%s9292_s1 + $0x170] sm:$0xff] }
  0x40   : > { %647 = vst [vmem:[#allocation3 + $0x78] sm:$0xf] %v6574_v25 }
  0x41   : > { %1811 = vmatpush.bf16.msrb.mxu1 %v6567_v13  ;;  %9355 = vst [vmem:[#allocation14_spill] sm:$0xff] %v6592_v46  ;;  %v4765_v0 = vld [vmem:[#allocation3 + $0x50] sm:$0xf] }
  0x42   : > { %2313 = vst [vmem:[#allocation3 + $0x50] sm:$0xf] %v2267_v41  ;;  %v5818_v12 = vld [vmem:[#allocation3 + $0x54] sm:$0xf] }
  0x43   : > { %2344 = vst [vmem:[#allocation3 + $0x54] sm:$0xf] %v6586_v10 }
  0x44   : > { %9358 = vst [vmem:[#allocation15_spill] sm:$0xff] %v6618_v28 }
  0x45   : > { %1812 = vmatpush.bf16.msrb.mxu1 %v6592_v46  ;;  %v5822_v34 = vld [vmem:[#allocation3 + $0x70] sm:$0xf0]  ;;  %461 = vst [vmem:[#allocation3 + $0x90] sm:$0xf] %v6598_v59  ;;  %v6814_v46 = vld [vmem:[%s6287_s6 + $0x40] sm:$0xf] }
  0x46   : > { %v4766_v41 = vor.u32 %v5822_v34, %v4765_v0  ;;  %2314 = vst [vmem:[#allocation3 + $0x74] sm:$0xf] %v2270_v11  ;;  %v496_v0 = vsel %vm6608_vm5, %v494_v62, %v495_v8  ;;  %v577_v11 = vrot.slane %v575_v33, 4  ;;  %v6654_v62 = vld [vmem:[%s6287_s6 + $0x60] sm:$0xf]  ;;  %v2273_v8 = vrot.slane %v6628_v53, 6 }
  0x47   : > { %v4767_v56 = vld [vmem:[#allocation3 + $0x74] sm:$0xf0]  ;;  %462 = vst [vmem:[#allocation3 + $0xb4] sm:$0xf] %v6602_v4  ;;  %v6671_v34 = vld [vmem:[%s6287_s6 + $0x30] sm:$0xf] }
  0x48   : > { %1858 = vmatmul.bf16.gmra.mxu2 %v4766_v41  ;;  %v4770_v23 = vor.u32 %v5818_v12, %v4767_v56  ;;  %2345 = vst [vmem:[#allocation3 + $0x78] sm:$0xf] %v6623_v37  ;;  %v578_v56 = vrot.slane %v6644_v27, 6  ;;  %v4657_v12 = vrot.slane %v6314_v15, 10  ;;  %v6660_v41 = vld [vmem:[%s6287_s6 + $0x68] sm:$0x3] }
  0x49   : > { %1813 = vmatpush.bf16.msrb.mxu1 %v6618_v28  ;;  %9360 = vst [vmem:[#allocation16_spill] sm:$0xff] %v6651_v61  ;;  %v5249_v47 = vrot.slane %v6654_v62, 10  ;;  %v2275_v36 = vrot.slane %v2273_v8, 4  ;;  %v2276_v33 = vrot.slane %v6660_v41, 6  ;;  %v5796_v28 = vld [vmem:[%s9292_s1 + $0x1e0] sm:$0xff] }
  0x4a   : > { %544 = vst [vmem:[#allocation3 + $0x4] sm:$0xf] %v493_v3  ;;  %1897 = vmatmul.bf16.gmra.mxu3 %v4770_v23  ;;  %v2196_v3 = vrot.slane %v6385_v43, 5  ;;  %v579_v7 = vsel %vm6319_vm2, %v577_v11, %v578_v56  ;;  %v9361_v23 = vrot.slane %v6391_v45, 5  ;;  %v6679_v43 = vld [vmem:[%s6287_s6 + $0x34] sm:$0xf] }
  0x4b   : > { %545 = vst [vmem:[#allocation3 + $0x28] sm:$0xf] %v496_v0  ;;  %v2277_v32 = vsel %vm6319_vm2, %v2275_v36, %v2276_v33  ;;  %2043 = vmatpush.bf16.msrb.mxu3 %v5796_v28  ;;  %v6724_v28 = vld [vmem:[%s6287_s6 + $0x7c] sm:$0xf]  ;;  %v6727_v33 = vld [vmem:[%s6287_s6 + $0x28] sm:$0xf] }
  0x4c   : > { %617 = vst [vmem:[#allocation3 + $0x98] sm:$0xf] %v576_v14  ;;  %v3445_v0 = vrot.slane %v9361_v23, 4  ;;  %v4793_v51 = vld [vmem:[#allocation3 + $0x90] sm:$0xf]  ;;  %v4677_v14 = vrot.slane %v6402_v49, 9  ;;  %v2194_v23 = vsel %vm6608_vm5, %v5241_v9, %v9362_v24  ;;  %v2197_v11 = vsel %vm6608_vm5, %v2195_v52, %v2196_v3 }
  0x4d   : > { %1962 = vmatpush.bf16.msra.mxu1 %v6651_v61  ;;  %618 = vst [vmem:[#allocation3 + $0xbc] sm:$0xf] %v579_v7  ;;  %v3446_v7 = vrot.slane %v6447_v6, 5  ;;  %v499_v9 = vrot.slane %v6493_v31, 5  ;;  %v4648_v3 = vrot.slane %v6477_v22, 9  ;;  %v9363_v31 = vrot.slane %v6317_v16, 6 }
  0x4e   : > { %2165 = vst [vmem:[#allocation3 + $0x90] sm:$0xf] %v6654_v62  ;;  %v5830_v56 = vld [vmem:[#allocation3 + $0xb0] sm:$0xf0]  ;;  %v6715_v24 = vld [vmem:[%s6287_s6 + $0x78] sm:$0xf] }
  0x4f   : > { %648 = vst [vmem:[#allocation3 + $0x9c] sm:$0xf] %v6671_v34  ;;  %v4794_v61 = vor.u32 %v5830_v56, %v4793_v51  ;;  %v2274_v51 = vsel %vm6319_vm2, %v5249_v47, %v2273_v8  ;;  %v6712_v47 = vsel %vm6319_vm2, %v4657_v12, %v9363_v31  ;;  %v9364_v22 = vrot.slane %v6410_v54, 5 }
  0x50   : > { %2166 = vst [vmem:[#allocation3 + $0xb4] sm:$0xf] %v6628_v53  ;;  %v9366_v31 = vrot.slane %v6391_v45, 5 }
  0x51   : > { %v5808_v6 = vld [vmem:[#allocation3 + $0x4] sm:$0xf]  ;;  %649 = vst [vmem:[#allocation3 + $0xc0] sm:$0xf] %v6679_v43  ;;  %1785 = vmatmul.bf16.gmra.mxu0 %v4794_v61  ;;  %v6721_v61 = vsel %vm6608_vm5, %v4677_v14, %v9364_v22  ;;  %v582_v14 = vrot.slane %v6727_v33, 6  ;;  %1963 = vmatpush.bf16.msra.mxu1 %v6735_v26 }
  0x52   : > { %v4723_v56 = vld [vmem:[#allocation3 + $0x24] sm:$0xf0]  ;;  %2245 = vst [vmem:[#allocation3 + $0x4] sm:$0xf] %v2194_v23  ;;  %v501_v23 = vrot.slane %v499_v9, 4 }
  0x53   : > { %v4726_v8 = vor.u32 %v5808_v6, %v4723_v56  ;;  %2246 = vst [vmem:[#allocation3 + $0x28] sm:$0xf] %v2197_v11  ;;  %v4801_v52 = vld [vmem:[#allocation3 + $0x98] sm:$0xf]  ;;  %v6730_v11 = vld [vmem:[%s6287_s6 + $0x24] sm:$0xf] }
  0x54   : > { %v5831_v36 = vld [vmem:[#allocation3 + $0xb8] sm:$0xf0]  ;;  %2315 = vst [vmem:[#allocation3 + $0x98] sm:$0xf] %v2274_v51  ;;  %v502_v51 = vrot.slane %v6539_v57, 5  ;;  %v4656_v45 = vrot.slane %v6730_v11, 10 }
  0x55   : > { %1814 = vmatmul.bf16.vlgmr.msrb.gmra.mxu1 %v4726_v8  ;;  %v4802_v12 = vor.u32 %v5831_v36, %v4801_v52  ;;  %2316 = vst [vmem:[#allocation3 + $0xbc] sm:$0xf] %v2277_v32  ;;  %v2200_v52 = vrot.slane %v6523_v50, 5  ;;  %v9367_v8 = vrot.slane %v6388_v44, 9  ;;  %v3447_v36 = vsel %vm6608_vm5, %v3445_v0, %v3446_v7 }
  0x56   : > { %9365 = vst [vmem:[#allocation17_spill] sm:$0xff] %v6735_v26  ;;  %v5827_v6 = vld [vmem:[#allocation3 + $0x9c] sm:$0xf]  ;;  %v5242_v0 = vrot.slane %v6519_v48, 9  ;;  %v503_v32 = vsel %vm6608_vm5, %v501_v23, %v502_v51  ;;  %v584_v57 = vrot.slane %v582_v14, 4  ;;  %v9372_v48 = vrot.slane %v6376_v39, 10 }
  0x57   : > { %463 = vst [vmem:[#allocation3 + $0xd8] sm:$0xf] %v6730_v11  ;;  %v3444_v22 = vsel %vm6608_vm5, %v9367_v8, %v9366_v31  ;;  %v6760_v31 = vld [vmem:[%s6287_s6 + $0x70] sm:$0xf]  ;;  %v500_v8 = vsel %vm6608_vm5, %v4648_v3, %v499_v9  ;;  %v9371_v9 = vrot.slane %v6379_v40, 6  ;;  %v583_v51 = vsel %vm6319_vm2, %v4656_v45, %v582_v14 }
  0x58   : > { %2346 = vst [vmem:[#allocation3 + $0x9c] sm:$0xf] %v6715_v24  ;;  %v4803_v56 = vld [vmem:[#allocation3 + $0xbc] sm:$0xf0]  ;;  %1863 = vmatmul.bf16.gmra.mxu2 %v4802_v12  ;;  %v6770_v12 = vld [vmem:[%s6287_s6 + $0x2c] sm:$0x3] }
  0x59   : > { %464 = vst [vmem:[#allocation3 + $0xfc] sm:$0xf] %v6727_v33  ;;  %v6756_v50 = vld [vmem:[#allocation3 + $0x4] sm:$0xf]  ;;  %v4806_v44 = vor.u32 %v5827_v6, %v4803_v56  ;;  %v6775_v6 = vld [vmem:[%s9292_s1 + $0x198] sm:$0xff]  ;;  %v6783_v3 = vsel %vm6319_vm2, %v9372_v48, %v9371_v9  ;;  %v585_v56 = vrot.slane %v6770_v12, 6 }
  0x5a   : > { %9368 = vst [vmem:[#allocation18_spill] sm:$0xff] %v6756_v50  ;;  %v6765_v7 = vld [vmem:[#allocation3 + $0x24] sm:$0xf0]  ;;  %v2202_v50 = vrot.slane %v2200_v52, 4  ;;  %v6786_v23 = vld [vmem:[%s6287_s6 + $0x6c] sm:$0xf]  ;;  %2005 = vmatpush.bf16.msrb.mxu2 %v6775_v6 }
  0x5b   : > { %2347 = vst [vmem:[#allocation3 + $0xc0] sm:$0xf] %v6724_v28  ;;  %1902 = vmatmul.bf16.gmra.mxu3 %v4806_v44  ;;  %v2280_v14 = vrot.slane %v6760_v31, 6  ;;  %v2203_v45 = vrot.slane %v6550_v2, 5  ;;  %v586_v9 = vsel %vm6319_vm2, %v584_v57, %v585_v56  ;;  %v6805_v48 = vld [vmem:[%s6287_s6 + $0x74] sm:$0x3] }
  0x5c   : > { %9369 = vst [vmem:[#allocation19_spill] sm:$0xff] %v6765_v7  ;;  %v4658_v7 = vrot.slane %v6503_v35, 10  ;;  %v5250_v26 = vrot.slane %v6786_v23, 10  ;;  %v9374_v2 = vrot.slane %v6474_v21, 5  ;;  %v9375_v57 = vrot.slane %v6471_v20, 9 }
  0x5d   : > { %3477 = vst [vmem:[#allocation3 + $0x4] sm:$0xf] %v3444_v22  ;;  %v5770_v22 = vld [vmem:[%s9292_s1 + $0x110] sm:$0xff]  ;;  %v2204_v13 = vsel %vm6608_vm5, %v2202_v50, %v2203_v45  ;;  %v2283_v55 = vrot.slane %v6805_v48, 6  ;;  %v5243_v45 = vrot.slane %v6654_v62, 9 }
  0x5e   : > { %3478 = vst [vmem:[#allocation3 + $0x28] sm:$0xf] %v3447_v36  ;;  %v4649_v36 = vrot.slane %v6598_v59, 9  ;;  %v4829_v44 = vld [vmem:[#allocation3 + $0xd8] sm:$0xf]  ;;  %1928 = vmatpush.bf16.msrb.mxu0 %v5770_v22  ;;  %v6822_v56 = vsel %vm6608_vm5, %v9375_v57, %v9374_v2  ;;  %v4678_v22 = vrot.slane %v6554_v5, 9  ;;  %v2281_v57 = vsel %vm6319_vm2, %v5250_v26, %v2280_v14 }
  0x5f   : > { %9370 = vst [vmem:[#allocation20_spill] sm:$0xff] %v6775_v6  ;;  %v5769_v2 = vld [vmem:[%s9292_s1 + $0x108] sm:$0xff]  ;;  %v6846_v50 = vld [vmem:[%s9292_s1 + $0x190] sm:$0xff] }
  0x60   : > { %546 = vst [vmem:[#allocation3 + $0x4c] sm:$0xf] %v500_v8  ;;  %v5795_v8 = vld [vmem:[%s9292_s1 + $0x1d8] sm:$0xff]  ;;  %2006 = vmatpush.bf16.msrb.mxu2 %v6846_v50  ;;  %v5794_v62 = vld [vmem:[%s9292_s1 + $0x1d0] sm:$0xff] }
  0x61   : > { %547 = vst [vmem:[#allocation3 + $0x70] sm:$0xf] %v503_v32  ;;  %v5839_v59 = vld [vmem:[#allocation3 + $0xf8] sm:$0xf0]  ;;  %2044 = vmatpush.bf16.msrb.mxu3 %v5795_v8  ;;  %v2201_v8 = vsel %vm6608_vm5, %v5242_v0, %v2200_v52  ;;  %v5768_v52 = vld [vmem:[%s9292_s1 + $0x100] sm:$0xff] }
  0x62   : > { %2167 = vst [vmem:[#allocation3 + $0xd8] sm:$0xf] %v6786_v23  ;;  %v6808_v32 = vld [vmem:[%s6287_s6 + $0x3c] sm:$0xf]  ;;  %v4830_v6 = vor.u32 %v5839_v59, %v4829_v44  ;;  %v506_v44 = vrot.slane %v6602_v4, 5  ;;  %v2282_v59 = vrot.slane %v2280_v14, 4  ;;  %1929 = vmatpush.bf16.msrb.mxu0 %v5769_v2 }
  0x63   : > { %619 = vst [vmem:[#allocation3 + $0xe0] sm:$0xf] %v583_v51  ;;  %v6839_v4 = vld [vmem:[%s9292_s1 + $0x168] sm:$0xff]  ;;  %v2207_v51 = vrot.slane %v6628_v53, 5  ;;  %v509_v14 = vrot.slane %v6644_v27, 5 }
  0x64   : > { %2168 = vst [vmem:[#allocation3 + $0xfc] sm:$0xf] %v6760_v31  ;;  %1790 = vmatmul.bf16.gmra.mxu0 %v4830_v6  ;;  %v507_v6 = vsel %vm6608_vm5, %v4649_v36, %v506_v44  ;;  %1964 = vmatpush.bf16.msra.mxu1 %v6839_v4  ;;  %v6859_v36 = vld [vmem:[%s6287_s6 + $0x84] sm:$0xf]  ;;  %v508_v26 = vrot.slane %v506_v44, 4  ;;  %v2284_v2 = vsel %vm6319_vm2, %v2282_v59, %v2283_v55  ;;  %v9382_v44 = vrot.slane %v6574_v25, 5 }
  0x65   : > { %9373 = vst [vmem:[#allocation21_spill] sm:$0xff] %v6814_v46  ;;  %v6869_v53 = vld [vmem:[%s6287_s6 + $0x38] sm:$0x3]  ;;  %v6892_v59 = vld [vmem:[%s6287_s6 + $0x88] sm:$0xf]  ;;  %2045 = vmatpush.bf16.msrb.mxu3 %v5794_v62 }
  0x66   : > { %620 = vst [vmem:[#allocation3 + $0x104] sm:$0xf] %v586_v9  ;;  %v6889_v55 = vsel %vm6608_vm5, %v4678_v22, %v9382_v44  ;;  %1930 = vmatpush.bf16.msrb.mxu0 %v5768_v52  ;;  %v2209_v22 = vrot.slane %v2207_v51, 4 }
  0x67   : > { %650 = vst [vmem:[#allocation3 + $0xe4] sm:$0xf] %v6808_v32  ;;  %v5817_v0 = vld [vmem:[#allocation3 + $0x4c] sm:$0xf] }
  0x68   : > { %9376 = vst [vmem:[#allocation22_spill] sm:$0xff] %v6839_v4  ;;  %v4759_v9 = vld [vmem:[#allocation3 + $0x6c] sm:$0xf0] }
  0x69   : > { %651 = vst [vmem:[#allocation3 + $0x108] sm:$0xf] %v6814_v46  ;;  %v4762_v46 = vor.u32 %v5817_v0, %v4759_v9  ;;  %v9380_v0 = vrot.slane %v6427_v60, 9  ;;  %v510_v60 = vsel %vm6608_vm5, %v508_v26, %v509_v14  ;;  %v2210_v26 = vrot.slane %v6660_v41, 5  ;;  %v6920_v41 = vld [vmem:[%s9292_s1 + $0x188] sm:$0xff] }
  0x6a   : > { %9377 = vst [vmem:[#allocation23_spill] sm:$0xff] %v6846_v50  ;;  %v9381_v50 = vrot.slane %v6516_v42, 6  ;;  %v9306_v14 = vrot.slane %v6570_v19, 6  ;;  %2007 = vmatpush.bf16.msrb.mxu2 %v6920_v41 }
  0x6b   : > { %2247 = vst [vmem:[#allocation3 + $0x4c] sm:$0xf] %v2201_v8  ;;  %v4837_v8 = vld [vmem:[#allocation3 + $0xe0] sm:$0xf]  ;;  %1819 = vmatmul.bf16.gmra.mxu1 %v4762_v46 }
  0x6c   : > { %2248 = vst [vmem:[#allocation3 + $0x70] sm:$0xf] %v2204_v13  ;;  %v9379_v13 = vrot.slane %v6439_v1, 5  ;;  %v6883_v27 = vsel %vm6319_vm2, %v4658_v7, %v9381_v50  ;;  %v592_v7 = vrot.slane %v6869_v53, 6  ;;  %v5252_v50 = vrot.slane %v6546_v63, 10  ;;  %v6903_v46 = vld [vmem:[%s9292_s1 + $0x160] sm:$0xff] }
  0x6d   : > { %9378 = vst [vmem:[#allocation24_spill] sm:$0xff] %v6859_v36  ;;  %1965 = vmatpush.bf16.msra.mxu1 %v6903_v46 }
  0x6e   : > { %548 = vst [vmem:[#allocation3 + $0x94] sm:$0xf] %v507_v6  ;;  %v6877_v9 = vsel %vm6608_vm5, %v9380_v0, %v9379_v13  ;;  %v9383_v6 = vrot.slane %v6317_v16, 6  ;;  %v5840_v0 = vld [vmem:[#allocation3 + $0x100] sm:$0xf0] }
  0x6f   : > { %2317 = vst [vmem:[#allocation3 + $0xe0] sm:$0xf] %v2281_v57  ;;  %v4838_v57 = vor.u32 %v5840_v0, %v4837_v8  ;;  %v5836_v62 = vld [vmem:[#allocation3 + $0xe4] sm:$0xf]  ;;  %v2208_v8 = vsel %vm6608_vm5, %v5243_v45, %v2207_v51  ;;  %v6933_v51 = vsel %vm6319_vm2, %v5252_v50, %v9306_v14  ;;  %v9387_v45 = vrot.slane %v6379_v40, 6 }
  0x70   : > { %v591_v13 = vrot.slane %v9383_v6, 4  ;;  %549 = vst [vmem:[#allocation3 + $0xb8] sm:$0xf] %v510_v60  ;;  %v4839_v44 = vld [vmem:[#allocation3 + $0x104] sm:$0xf0]  ;;  %v516_v14 = vrot.slane %v6770_v12, 5 }
  0x71   : > { %9384 = vst [vmem:[#allocation25_spill] sm:$0xff] %v6903_v46  ;;  %1868 = vmatmul.bf16.gmra.mxu2 %v4838_v57  ;;  %v4842_v60 = vor.u32 %v5836_v62, %v4839_v44  ;;  %v6924_v6 = vld [vmem:[%s6287_s6 + $0x48] sm:$0xf]  ;;  %v9388_v57 = vrot.slane %v6410_v54, 5  ;;  %v6944_v50 = vld [vmem:[%s6287_s6 + $0x4c] sm:$0xf] }
  0x72   : > { %2318 = vst [vmem:[#allocation3 + $0x104] sm:$0xf] %v2284_v2  ;;  %v593_v52 = vsel %vm6319_vm2, %v591_v13, %v592_v7  ;;  %v6915_v2 = vld [vmem:[%s6287_s6 + $0x80] sm:$0x3]  ;;  %v5793_v13 = vld [vmem:[%s9292_s1 + $0x1c8] sm:$0xff]  ;;  %v2289_v7 = vrot.slane %v9387_v45, 4 }
  0x73   : > { %2348 = vst [vmem:[#allocation3 + $0xe4] sm:$0xf] %v6859_v36  ;;  %1907 = vmatmul.bf16.gmra.mxu3 %v4842_v60  ;;  %v678_v62 = vrot.slane %v9388_v57, 4  ;;  %v2290_v44 = vrot.slane %v6915_v2, 6  ;;  %v513_v45 = vrot.slane %v6727_v33, 5  ;;  %v2221_v57 = vrot.slane %v6379_v40, 5 }
  0x74   : > { %2349 = vst [vmem:[#allocation3 + $0x108] sm:$0xf] %v6892_v59  ;;  %2046 = vmatpush.bf16.msrb.mxu3 %v5793_v13  ;;  %v4650_v13 = vrot.slane %v6730_v11, 9  ;;  %v6967_v46 = vld [vmem:[%s6287_s6 + $0x90] sm:$0xf]  ;;  %v2214_v36 = vrot.slane %v6760_v31, 5 }
  0x75   : > { %9385 = vst [vmem:[#allocation26_spill] sm:$0xff] %v6920_v41  ;;  %v5826_v0 = vld [vmem:[#allocation3 + $0x94] sm:$0xf]  ;;  %v5245_v41 = vrot.slane %v6376_v39, 9  ;;  %v6990_v12 = vld [vmem:[%s6287_s6 + $0x44] sm:$0x3] }
  0x76   : > { %621 = vst [vmem:[#allocation3 + $0x128] sm:$0xf] %v6712_v47  ;;  %v2211_v47 = vsel %vm6608_vm5, %v2209_v22, %v2210_v26  ;;  %v5807_v22 = vld [vmem:[%s9292_s1 + $0x238] sm:$0xff]  ;;  %v5272_v26 = vrot.slane %v6586_v10, 9  ;;  %v6974_v39 = vld [vmem:[%s6287_s6 + $0x94] sm:$0xf] }
  0x77   : > { %9386 = vst [vmem:[#allocation27_spill] sm:$0xff] %v6924_v6  ;;  %v4795_v60 = vld [vmem:[#allocation3 + $0xb4] sm:$0xf0]  ;;  %2079 = vmatpush.bf16.msra.mxu0 %v5807_v22  ;;  %v515_v22 = vrot.slane %v513_v45, 4  ;;  %v5551_v31 = vld [vmem:[%s6287_s6 + $0xb0] sm:$0x3] }
  0x78   : > { %622 = vst [vmem:[#allocation3 + $0x14c] sm:$0xf] %v593_v52  ;;  %v6953_v52 = vld [vmem:[%s6287_s6 + $0x20] sm:$0x3]  ;;  %v4798_v40 = vor.u32 %v5826_v0, %v4795_v60  ;;  %v6985_v0 = vrot.slane %v2221_v57, 4  ;;  %v9393_v60 = vrot.slane %v6516_v42, 6 }
  0x79   : > { %2249 = vst [vmem:[#allocation3 + $0x94] sm:$0xf] %v2208_v8  ;;  %v4651_v8 = vrot.slane %v6314_v15, 9  ;;  %v679_v33 = vrot.slane %v6953_v52, 5  ;;  %v2291_v15 = vsel %vm6319_vm2, %v2289_v7, %v2290_v44  ;;  %v9392_v7 = vrot.slane %v6623_v37, 5 }
  0x7a   : > { %9389 = vst [vmem:[#allocation28_spill] sm:$0xff] %v6944_v50 }
  0x7b   : > { %652 = vst [vmem:[#allocation3 + $0x12c] sm:$0xf] %v6924_v6  ;;  %1824 = vmatmul.bf16.gmra.mxu1 %v4798_v40  ;;  %v5244_v40 = vrot.slane %v6786_v23, 9  ;;  %v9396_v23 = vrot.slane %v6439_v1, 5 }
  0x7c   : > { %2250 = vst [vmem:[#allocation3 + $0xb8] sm:$0xf] %v2211_v47  ;;  %v6977_v47 = vld [vmem:[%s6287_s6 + $0x68] sm:$0x3] }
  0x7d   : > { %9390 = vst [vmem:[#allocation29_spill] sm:$0xff] %v6953_v52  ;;  %v4873_v11 = vld [vmem:[#allocation3 + $0x128] sm:$0xf]  ;;  %v680_v52 = vsel %vm6608_vm5, %v678_v62, %v679_v33  ;;  %v514_v62 = vsel %vm6608_vm5, %v4650_v13, %v513_v45  ;;  %v598_v33 = vrot.slane %v9393_v60, 4  ;;  %v9395_v45 = vrot.slane %v6474_v21, 5 }
  0x7e   : > { %653 = vst [vmem:[#allocation3 + $0x150] sm:$0xf] %v6944_v50  ;;  %v7012_v60 = vsel %vm6608_vm5, %v5245_v41, %v2221_v57  ;;  %v7044_v50 = vld [vmem:[%s6287_s6 + $0x54] sm:$0xf] }
  0x7f   : > { %728 = vst [vmem:[#allocation3 + $0x10] sm:$0xf] %v6721_v61  ;;  %v5849_v6 = vld [vmem:[#allocation3 + $0x148] sm:$0xf0]  ;;  %v6983_v61 = vsel %vm6608_vm5, %v5272_v26, %v9392_v7  ;;  %v599_v26 = vrot.slane %v6990_v12, 6  ;;  %v9394_v7 = vrot.slane %v6317_v16, 5 }
  0x80   : > { %9391 = vst [vmem:[#allocation30_spill] sm:$0xff] %v6967_v46  ;;  %v2376_v13 = vrot.slane %v9395_v45, 4  ;;  %v4874_v4 = vor.u32 %v5849_v6, %v4873_v11  ;;  %v9318_v6 = vrot.slane %v6410_v54, 6 }
  0x81   : > { %2319 = vst [vmem:[#allocation3 + $0x128] sm:$0xf] %v6783_v3  ;;  %v6995_v3 = vld [vmem:[%s9292_s1 + $0x158] sm:$0xff] }
  0x82   : > { %2320 = vst [vmem:[#allocation3 + $0x14c] sm:$0xf] %v2291_v15  ;;  %v5845_v44 = vld [vmem:[#allocation3 + $0x12c] sm:$0xf]  ;;  %v7004_v15 = vsel %vm6608_vm5, %v4651_v8, %v9394_v7  ;;  %v517_v7 = vsel %vm6608_vm5, %v515_v22, %v516_v14  ;;  %1966 = vmatpush.bf16.msra.mxu1 %v6995_v3  ;;  %v600_v14 = vsel %vm6319_vm2, %v598_v33, %v599_v26  ;;  %v7030_v22 = vld [vmem:[%s9292_s1 + $0x180] sm:$0xff]  ;;  %v2216_v33 = vrot.slane %v2214_v36, 4 }
  0x83   : > { %729 = vst [vmem:[#allocation3 + $0x34] sm:$0xf] %v680_v52  ;;  %v2377_v52 = vrot.slane %v6977_v47, 5  ;;  %1873 = vmatmul.bf16.gmra.mxu2 %v4874_v4  ;;  %v2217_v26 = vrot.slane %v6805_v48, 5  ;;  %v3567_v4 = vrot.slane %v5551_v31, 5 }
  0x84   : > { %2350 = vst [vmem:[#allocation3 + $0x12c] sm:$0xf] %v6967_v46  ;;  %2008 = vmatpush.bf16.msrb.mxu2 %v7030_v22 }
  0x85   : > { %v4875_v8 = vld [vmem:[#allocation3 + $0x14c] sm:$0xf0]  ;;  %550 = vst [vmem:[#allocation3 + $0xdc] sm:$0xf] %v514_v62  ;;  %v3566_v62 = vrot.slane %v9396_v23, 4 }
  0x86   : > { %v4878_v11 = vor.u32 %v5845_v44, %v4875_v8  ;;  %2351 = vst [vmem:[#allocation3 + $0x150] sm:$0xf] %v6974_v39  ;;  %v4737_v41 = vld [vmem:[#allocation3 + $0x10] sm:$0xf]  ;;  %v9397_v44 = vrot.slane %v6570_v19, 6  ;;  %v2378_v8 = vsel %vm6608_vm5, %v2376_v13, %v2377_v52  ;;  %v2215_v13 = vsel %vm6608_vm5, %v5244_v40, %v2214_v36  ;;  %v5792_v52 = vld [vmem:[%s9292_s1 + $0x1c0] sm:$0xff] }
  0x87   : > { %2426 = vst [vmem:[#allocation3 + $0x10] sm:$0xf] %v6822_v56  ;;  %v7039_v56 = vld [vmem:[%s6287_s6 + $0x8c] sm:$0x3]  ;;  %2047 = vmatpush.bf16.msrb.mxu3 %v5792_v52  ;;  %v4652_v40 = vrot.slane %v6503_v35, 9  ;;  %v690_v35 = vrot.slane %v6679_v43, 5 }
  0x88   : > { %v2296_v45 = vrot.slane %v9397_v44, 4  ;;  %551 = vst [vmem:[#allocation3 + $0x100] sm:$0xf] %v517_v7  ;;  %1912 = vmatmul.bf16.gmra.mxu3 %v4878_v11  ;;  %3072 = vmatpush.bf16.msra.mxu2 %v6422_v58  ;;  %v7055_v7 = vld [vmem:[%s6287_s6 + $0x58] sm:$0xf]  ;;  %v5806_v11 = vld [vmem:[%s9292_s1 + $0x230] sm:$0xff] }
  0x89   : > { %623 = vst [vmem:[#allocation3 + $0x170] sm:$0xf] %v6883_v27  ;;  %v2297_v27 = vrot.slane %v7039_v56, 6  ;;  %v7062_v36 = vld [vmem:[%s6287_s6 + $0x2c] sm:$0x3]  ;;  %v9319_v58 = vrot.slane %v6516_v42, 5  ;;  %2080 = vmatpush.bf16.msra.mxu0 %v5806_v11 }
  0x8a   : > { %v5814_v23 = vld [vmem:[#allocation3 + $0x30] sm:$0xf0]  ;;  %624 = vst [vmem:[#allocation3 + $0x194] sm:$0xf] %v600_v14  ;;  %v2218_v14 = vsel %vm6608_vm5, %v2216_v33, %v2217_v26  ;;  %v6080_v44 = vld [vmem:[%s9292_s1 + $0xb8] sm:$0xff]  ;;  %v686_v52 = vrot.slane %v7062_v36, 5 }
  0x8b   : > { %v4738_v48 = vor.u32 %v5814_v23, %v4737_v41  ;;  %2427 = vst [vmem:[#allocation3 + $0x34] sm:$0xf] %v2378_v8  ;;  %v5246_v41 = vrot.slane %v6546_v63, 9  ;;  %3111 = vmatpush.bf16.msra.mxu3 %v6080_v44  ;;  %v2228_v8 = vrot.slane %v6570_v19, 5  ;;  %v2298_v33 = vsel %vm6319_vm2, %v2296_v45, %v2297_v27  ;;  %v7082_v26 = vld [vmem:[%s6287_s6 + $0x9c] sm:$0xf] }
  0x8c   : > { %v5835_v31 = vld [vmem:[#allocation3 + $0xdc] sm:$0xf]  ;;  %654 = vst [vmem:[#allocation3 + $0x174] sm:$0xf] %v7044_v50  ;;  %3073 = vmatpush.bf16.msra.mxu2 %v6465_v18  ;;  %v9399_v19 = vrot.slane %v6574_v25, 5  ;;  %v7097_v45 = vld [vmem:[%s9292_s1 + $0x150] sm:$0xff] }
  0x8d   : > { %1931 = vmatmul.bf16.vlgmr.msrb.gmra.mxu0 %v4738_v48  ;;  %2251 = vst [vmem:[#allocation3 + $0xdc] sm:$0xf] %v2215_v13  ;;  %v3568_v48 = vsel %vm6608_vm5, %v3566_v62, %v3567_v4  ;;  %v7090_v11 = vld [vmem:[%s6287_s6 + $0x38] sm:$0x3]  ;;  %v6081_v62 = vld [vmem:[%s9292_s1 + $0xb0] sm:$0xff]  ;;  %v9401_v27 = vrot.slane %v6317_v16, 5  ;;  %1967 = vmatpush.bf16.msra.mxu1 %v7097_v45 }
  0x8e   : > { %v7074_v23 = vld [vmem:[#allocation3 + $0x10] sm:$0xf]  ;;  %655 = vst [vmem:[#allocation3 + $0x198] sm:$0xf] %v7055_v7  ;;  %v685_v13 = vrot.slane %v9399_v19, 4  ;;  %v693_v16 = vrot.slane %v7090_v11, 5 }
  0x8f   : > { %9398 = vst [vmem:[#allocation31_spill] sm:$0xff] %v7074_v23  ;;  %v4831_v63 = vld [vmem:[#allocation3 + $0xfc] sm:$0xf0]  ;;  %3112 = vmatpush.bf16.msra.mxu3 %v6081_v62  ;;  %v692_v62 = vrot.slane %v690_v35, 4  ;;  %v7206_v23 = vld [vmem:[%s6287_s6 + $0x7c] sm:$0xf] }
  0x90   : > { %3598 = vst [vmem:[#allocation3 + $0x10] sm:$0xf] %v6877_v9  ;;  %v4834_v44 = vor.u32 %v5835_v31, %v4831_v63  ;;  %v4909_v18 = vld [vmem:[#allocation3 + $0x170] sm:$0xf]  ;;  %v4679_v9 = vrot.slane %v6671_v34, 9  ;;  %v522_v31 = vrot.slane %v9401_v27, 4  ;;  %3074 = vmatpush.bf16.msra.mxu2 %v6488_v29 }
  0x91   : > { %2252 = vst [vmem:[#allocation3 + $0x100] sm:$0xf] %v2218_v14  ;;  %v5858_v57 = vld [vmem:[#allocation3 + $0x190] sm:$0xf0]  ;;  %v523_v14 = vrot.slane %v6869_v53, 5  ;;  %v7118_v29 = vrot.slane %v9318_v6, 4 }
  0x92   : > { %2321 = vst [vmem:[#allocation3 + $0x170] sm:$0xf] %v6933_v51  ;;  %v7102_v4 = vld [vmem:[#allocation3 + $0x30] sm:$0xf0]  ;;  %v7109_v63 = vld [vmem:[%s6287_s6 + $0xa0] sm:$0xf]  ;;  %1829 = vmatmul.bf16.gmra.mxu1 %v4834_v44  ;;  %v4910_v19 = vor.u32 %v5858_v57, %v4909_v18  ;;  %v7133_v18 = vsel %vm6608_vm5, %v4652_v40, %v9319_v58 }
  0x93   : > { %9400 = vst [vmem:[#allocation32_spill] sm:$0xff] %v7102_v4  ;;  %v5854_v51 = vld [vmem:[#allocation3 + $0x174] sm:$0xf]  ;;  %v6082_v57 = vld [vmem:[%s9292_s1 + $0xa8] sm:$0xff]  ;;  %v524_v44 = vsel %vm6608_vm5, %v522_v31, %v523_v14  ;;  %v691_v31 = vsel %vm6608_vm5, %v4679_v9, %v690_v35  ;;  %v7149_v14 = vsel %vm6608_vm5, %v5246_v41, %v2228_v8  ;;  %v9317_v41 = vrot.slane %v6623_v37, 6  ;;  %v6083_v9 = vld [vmem:[%s9292_s1 + $0xa0] sm:$0xff] }
  0x94   : > { %2322 = vst [vmem:[#allocation3 + $0x194] sm:$0xf] %v2298_v33  ;;  %v687_v33 = vsel %vm6608_vm5, %v685_v13, %v686_v52  ;;  %3113 = vmatpush.bf16.msra.mxu3 %v6082_v57  ;;  %v2388_v13 = vrot.slane %v6724_v28, 5  ;;  %3075 = vmatpush.bf16.msra.mxu2 %v6512_v38  ;;  %v7140_v57 = vrot.slane %v2228_v8, 4  ;;  %v9404_v38 = vrot.slane %v6623_v37, 5 }
  0x95   : > { %3599 = vst [vmem:[#allocation3 + $0x34] sm:$0xf] %v3568_v48  ;;  %v4911_v48 = vld [vmem:[#allocation3 + $0x194] sm:$0xf0]  ;;  %1878 = vmatmul.bf16.gmra.mxu2 %v4910_v19  ;;  %v7161_v8 = vld [vmem:[%s6287_s6 + $0x34] sm:$0xf] }
  0x96   : > { %2352 = vst [vmem:[#allocation3 + $0x174] sm:$0xf] %v7082_v26  ;;  %v4914_v52 = vor.u32 %v5854_v51, %v4911_v48  ;;  %v7143_v51 = vld [vmem:[%s6287_s6 + $0x74] sm:$0x3]  ;;  %v2383_v48 = vrot.slane %v9404_v38, 4  ;;  %v2390_v38 = vrot.slane %v2388_v13, 4 }
  0x97   : > { %730 = vst [vmem:[#allocation3 + $0x58] sm:$0xf] %v6889_v55  ;;  %v9402_v55 = vrot.slane %v6474_v21, 6  ;;  %v7174_v40 = vld [vmem:[%s6287_s6 + $0x30] sm:$0xf] }
  0x98   : > { %2353 = vst [vmem:[#allocation3 + $0x198] sm:$0xf] %v7109_v63  ;;  %3114 = vmatpush.bf16.msra.mxu3 %v6083_v9  ;;  %v4707_v6 = vrot.slane %v7174_v40, 9  ;;  %v5607_v17 = vld [vmem:[#allocation3 + $0x10] sm:$0xf] }
  0x99   : > { %v7138_v27 = vrot.slane %v9402_v55, 4  ;;  %731 = vst [vmem:[#allocation3 + $0x7c] sm:$0xf] %v687_v33  ;;  %v2384_v55 = vrot.slane %v7143_v51, 5  ;;  %v694_v33 = vsel %vm6608_vm5, %v692_v62, %v693_v16  ;;  %1917 = vmatmul.bf16.gmra.mxu3 %v4914_v52  ;;  %v2224_v62 = vrot.slane %v6915_v2, 5  ;;  %v9405_v16 = vld [vmem:[#allocation11_spill] sm:$0xff] }
  0x9a   : > { %9403 = vst [vmem:[#allocation33_spill] sm:$0xff] %v7143_v51  ;;  %3076 = vmatpush.bf16.msra.mxu2 %v9405_v16  ;;  %v857_v52 = vrot.slane %v7161_v8, 5  ;;  %v7183_v2 = vrot.slane %v9317_v41, 4 }
  0x9b   : > { %552 = vst [vmem:[#allocation3 + $0x124] sm:$0xf] %v7004_v15  ;;  %v5273_v15 = vrot.slane %v6715_v24, 9  ;;  %v2385_v9 = vsel %vm6608_vm5, %v2383_v48, %v2384_v55  ;;  %v6084_v48 = vld [vmem:[%s9292_s1 + $0x98] sm:$0xff]  ;;  %v2225_v41 = vsel %vm6608_vm5, %v6985_v0, %v2224_v62 }
  0x9c   : > { %553 = vst [vmem:[#allocation3 + $0x148] sm:$0xf] %v524_v44  ;;  %v7171_v44 = vld [vmem:[%s6287_s6 + $0x80] sm:$0x3]  ;;  %3115 = vmatpush.bf16.msra.mxu3 %v6084_v48  ;;  %v9407_v55 = vld [vmem:[#allocation21_spill] sm:$0xff]  ;;  %v859_v62 = vrot.slane %v857_v52, 4 }
  0x9d   : > { %732 = vst [vmem:[#allocation3 + $0xa0] sm:$0xf] %v691_v31  ;;  %v2391_v19 = vrot.slane %v7171_v44, 5  ;;  %v697_v16 = vrot.slane %v9407_v55, 5  ;;  %v9408_v31 = vld [vmem:[#allocation13_spill] sm:$0xff]  ;;  %v2389_v4 = vsel %vm6608_vm5, %v5273_v15, %v2388_v13  ;;  %v5805_v13 = vld [vmem:[%s9292_s1 + $0x228] sm:$0xff] }
  0x9e   : > { %733 = vst [vmem:[#allocation3 + $0xc4] sm:$0xf] %v694_v33  ;;  %v4773_v35 = vld [vmem:[#allocation3 + $0x58] sm:$0xf]  ;;  %3077 = vmatpush.bf16.msra.mxu2 %v9408_v31  ;;  %2081 = vmatpush.bf16.msra.mxu0 %v5805_v13  ;;  %v9413_v13 = vld [vmem:[#allocation15_spill] sm:$0xff] }
  0x9f   : > { %825 = vst [vmem:[#allocation3 + $0x18] sm:$0xf] %v7174_v40  ;;  %v7188_v33 = vld [vmem:[%s6287_s6 + $0x38] sm:$0x3]  ;;  %v2392_v0 = vsel %vm6608_vm5, %v2390_v38, %v2391_v19  ;;  %v6085_v19 = vld [vmem:[%s9292_s1 + $0x90] sm:$0xff] }
  0xa0   : > { %9406 = vst [vmem:[#allocation11_spill] sm:$0xff] %v7183_v2  ;;  %v5823_v53 = vld [vmem:[#allocation3 + $0x78] sm:$0xf0]  ;;  %v7203_v48 = vld [vmem:[%s6287_s6 + $0x78] sm:$0xf]  ;;  %v860_v2 = vrot.slane %v7188_v33, 5  ;;  %3116 = vmatpush.bf16.msra.mxu3 %v6085_v19 }
  0xa1   : > { %2428 = vst [vmem:[#allocation3 + $0x58] sm:$0xf] %v6983_v61  ;;  %v4774_v61 = vor.u32 %v5823_v53, %v4773_v35  ;;  %v530_v19 = vrot.slane %v6990_v12, 5 }
  0xa2   : > { %826 = vst [vmem:[#allocation3 + $0x3c] sm:$0xf] %v7161_v8  ;;  %v5844_v58 = vld [vmem:[#allocation3 + $0x124] sm:$0xf] }
  0xa3   : > { %2429 = vst [vmem:[#allocation3 + $0x7c] sm:$0xf] %v2385_v9  ;;  %v4867_v1 = vld [vmem:[#allocation3 + $0x144] sm:$0xf0]  ;;  %1936 = vmatmul.bf16.gmra.mxu0 %v4774_v61  ;;  %v9410_v9 = vld [vmem:[#allocation14_spill] sm:$0xff] }
  0xa4   : > { %2253 = vst [vmem:[#allocation3 + $0x124] sm:$0xf] %v7012_v60  ;;  %v4870_v53 = vor.u32 %v5844_v58, %v4867_v1  ;;  %v7212_v35 = vld [vmem:[#allocation3 + $0xa0] sm:$0xf]  ;;  %v7220_v60 = vld [vmem:[%s9292_s1 + $0x148] sm:$0xff]  ;;  %v2555_v1 = vrot.slane %v7206_v23, 5  ;;  %v858_v58 = vsel %vm6608_vm5, %v4707_v6, %v857_v52  ;;  %3078 = vmatpush.bf16.msra.mxu2 %v9410_v9 }
  0xa5   : > { %2254 = vst [vmem:[#allocation3 + $0x148] sm:$0xf] %v2225_v41  ;;  %v7225_v15 = vld [vmem:[#allocation3 + $0xc0] sm:$0xf0]  ;;  %v9409_v41 = vrot.slane %v6516_v42, 5  ;;  %1968 = vmatpush.bf16.msra.mxu1 %v7220_v60  ;;  %v861_v42 = vsel %vm6608_vm5, %v859_v62, %v860_v2  ;;  %v699_v52 = vrot.slane %v697_v16, 4 }
  0xa6   : > { %2430 = vst [vmem:[#allocation3 + $0xa0] sm:$0xf] %v2389_v4  ;;  %v4745_v31 = vld [vmem:[#allocation3 + $0x18] sm:$0xf]  ;;  %v7234_v61 = vld [vmem:[%s6287_s6 + $0x80] sm:$0x3]  ;;  %1834 = vmatmul.bf16.gmra.mxu1 %v4870_v53 }
  0xa7   : > { %v529_v38 = vrot.slane %v9409_v41, 4  ;;  %2431 = vst [vmem:[#allocation3 + $0xc4] sm:$0xf] %v2392_v0  ;;  %v5804_v4 = vld [vmem:[%s9292_s1 + $0x220] sm:$0xff]  ;;  %v6086_v53 = vld [vmem:[%s9292_s1 + $0x88] sm:$0xff]  ;;  %v5301_v9 = vrot.slane %v7203_v48, 9 }
  0xa8   : > { %9411 = vst [vmem:[#allocation21_spill] sm:$0xff] %v7234_v61  ;;  %v7245_v6 = vld [vmem:[%s6287_s6 + $0x44] sm:$0x3]  ;;  %3117 = vmatpush.bf16.msra.mxu3 %v6086_v53  ;;  %3079 = vmatpush.bf16.msra.mxu2 %v9413_v13  ;;  %v9415_v53 = vrot.slane %v6808_v32, 9  ;;  %v2558_v2 = vrot.slane %v7234_v61, 5  ;;  %v9421_v61 = vrot.slane %v6402_v49, 10 }
  0xa9   : > { %2523 = vst [vmem:[#allocation3 + $0x18] sm:$0xf] %v7203_v48  ;;  %v7250_v0 = vld [vmem:[%s9292_s1 + $0x140] sm:$0xff]  ;;  %v5815_v41 = vld [vmem:[#allocation3 + $0x38] sm:$0xf0]  ;;  %v700_v12 = vrot.slane %v7245_v6, 5  ;;  %v531_v51 = vsel %vm6608_vm5, %v529_v38, %v530_v19  ;;  %2082 = vmatpush.bf16.msra.mxu0 %v5804_v4 }
  0xaa   : > { %9412 = vst [vmem:[#allocation13_spill] sm:$0xff] %v7245_v6  ;;  %v4746_v62 = vor.u32 %v5815_v41, %v4745_v31  ;;  %v7265_v6 = vld [vmem:[%s6287_s6 + $0xc4] sm:$0xf]  ;;  %v698_v31 = vsel %vm6608_vm5, %v9415_v53, %v697_v16  ;;  %1969 = vmatpush.bf16.msra.mxu1 %v7250_v0  ;;  %v5803_v38 = vld [vmem:[%s9292_s1 + $0x218] sm:$0xff]  ;;  %v9416_v19 = vld [vmem:[#allocation24_spill] sm:$0xff]  ;;  %v2557_v41 = vrot.slane %v2555_v1, 4 }
  0xab   : > { %909 = vst [vmem:[#allocation3 + $0x1c] sm:$0xf] %v858_v58  ;;  %v5274_v13 = vrot.slane %v9416_v19, 9  ;;  %v701_v4 = vsel %vm6608_vm5, %v699_v52, %v700_v12  ;;  %v6087_v16 = vld [vmem:[%s9292_s1 + $0x38] sm:$0xff]  ;;  %v9418_v58 = vld [vmem:[#allocation28_spill] sm:$0xff]  ;;  %v6088_v12 = vld [vmem:[%s9292_s1 + $0x80] sm:$0xff] }
  0xac   : > { %2524 = vst [vmem:[#allocation3 + $0x3c] sm:$0xf] %v7206_v23  ;;  %2009 = vmatmul.bf16.vlgmr.msrb.gmra.mxu2 %v4746_v62  ;;  %v7287_v19 = vld [vmem:[%s6287_s6 + $0xc0] sm:$0xf]  ;;  %3118 = vmatpush.bf16.msra.mxu3 %v6088_v12  ;;  %v7306_v49 = vld [vmem:[%s6287_s6 + $0x8c] sm:$0x3] }
  0xad   : > { %9414 = vst [vmem:[#allocation14_spill] sm:$0xff] %v7265_v6  ;;  %v7312_v62 = vld [vmem:[%s6287_s6 + $0x40] sm:$0xf]  ;;  %2083 = vmatpush.bf16.msra.mxu0 %v5803_v38  ;;  %v5581_v12 = vrot.slane %v7287_v19, 9 }
  0xae   : > { %910 = vst [vmem:[#allocation3 + $0x40] sm:$0xf] %v861_v42  ;;  %3033 = vmatpush.bf16.msrb.mxu1 %v6087_v16  ;;  %v9417_v42 = vrot.slane %v6892_v59, 5  ;;  %v9422_v16 = vld [vmem:[#allocation16_spill] sm:$0xff] }
  0xaf   : > { %554 = vst [vmem:[#allocation3 + $0x16c] sm:$0xf] %v7133_v18  ;;  %v9420_v18 = vrot.slane %v6410_v54, 6  ;;  %3228 = vmatpush.bf16.msrb.mxu2 %v9422_v16  ;;  %v2231_v54 = vrot.slane %v7039_v56, 5  ;;  %v2398_v56 = vrot.slane %v7306_v49, 5 }
  0xb0   : > { %v2397_v53 = vrot.slane %v9417_v42, 4  ;;  %9419 = vst [vmem:[#allocation15_spill] sm:$0xff] %v7287_v19  ;;  %v3685_v42 = vrot.slane %v7265_v6, 5 }
  0xb1   : > { %555 = vst [vmem:[#allocation3 + $0x190] sm:$0xf] %v531_v51  ;;  %v7295_v52 = vsel %vm6319_vm2, %v9421_v61, %v9420_v18  ;;  %v2556_v51 = vsel %vm6608_vm5, %v5301_v9, %v2555_v1  ;;  %v7308_v61 = vld [vmem:[#allocation3 + $0x18] sm:$0xf]  ;;  %v5571_v18 = vld [vmem:[%s6287_s6 + $0xc8] sm:$0x3]  ;;  %v2559_v1 = vsel %vm6608_vm5, %v2557_v41, %v2558_v2 }
  0xb2   : > { %734 = vst [vmem:[#allocation3 + $0xe8] sm:$0xf] %v698_v31  ;;  %v5811_v16 = vld [vmem:[#allocation3 + $0x1c] sm:$0xf]  ;;  %v6089_v9 = vld [vmem:[%s9292_s1 + $0x30] sm:$0xff]  ;;  %v4810_v31 = vor.u32 %v7225_v15, %v7212_v35  ;;  %v3687_v2 = vrot.slane %v3685_v42, 4 }
  0xb3   : > { %9423 = vst [vmem:[#allocation28_spill] sm:$0xff] %v7306_v49  ;;  %3034 = vmatpush.bf16.msrb.mxu1 %v6089_v9  ;;  %v7324_v38 = vld [vmem:[#allocation3 + $0x38] sm:$0xf0]  ;;  %v864_v9 = vrot.slane %v7312_v62, 5  ;;  %v9427_v15 = vrot.slane %v6892_v59, 5 }
  0xb4   : > { %9424 = vst [vmem:[#allocation16_spill] sm:$0xff] %v7308_v61  ;;  %v2232_v61 = vsel %vm6608_vm5, %v7140_v57, %v2231_v54  ;;  %v2399_v57 = vsel %vm6608_vm5, %v2397_v53, %v2398_v56  ;;  %1941 = vmatmul.bf16.gmra.mxu0 %v4810_v31  ;;  %v9430_v31 = vrot.slane %v6471_v20, 10  ;;  %v9329_v20 = vrot.slane %v6974_v39, 5  ;;  %v9525_v30 = vld [vmem:[#allocation14_spill] sm:$0xff] }
  0xb5   : > { %735 = vst [vmem:[#allocation3 + $0x10c] sm:$0xf] %v701_v4  ;;  %v7327_v4 = vld [vmem:[%s6287_s6 + $0x3c] sm:$0xf]  ;;  %v4747_v41 = vld [vmem:[#allocation3 + $0x3c] sm:$0xf0] }
  0xb6   : > { %3663 = vst [vmem:[#allocation3 + $0x18] sm:$0xf] %v7287_v19  ;;  %v9426_v19 = vld [vmem:[#allocation17_spill] sm:$0xff]  ;;  %v4750_v49 = vor.u32 %v5811_v16, %v4747_v41  ;;  %v5853_v35 = vld [vmem:[#allocation3 + $0x16c] sm:$0xf]  ;;  %v4708_v54 = vrot.slane %v7327_v4, 9 }
  0xb7   : > { %9425 = vst [vmem:[#allocation34_spill] sm:$0xff] %v7324_v38  ;;  %3229 = vmatpush.bf16.msrb.mxu2 %v9426_v19  ;;  %v7340_v19 = vld [vmem:[%s6287_s6 + $0x44] sm:$0x3]  ;;  %v6090_v16 = vld [vmem:[%s9292_s1 + $0x28] sm:$0xff]  ;;  %v866_v53 = vrot.slane %v864_v9, 4 }
  0xb8   : > { %2607 = vst [vmem:[#allocation3 + $0x1c] sm:$0xf] %v2556_v51  ;;  %v2396_v51 = vsel %vm6608_vm5, %v5274_v13, %v9427_v15  ;;  %v4903_v38 = vld [vmem:[#allocation3 + $0x18c] sm:$0xf0]  ;;  %3035 = vmatpush.bf16.msrb.mxu1 %v6090_v16  ;;  %2048 = vmatmul.bf16.vlgmr.msrb.gmra.mxu3 %v4750_v49  ;;  %v867_v56 = vrot.slane %v7340_v19, 5  ;;  %v9429_v15 = vrot.slane %v6474_v21, 6 }
  0xb9   : > { %3664 = vst [vmem:[#allocation3 + $0x3c] sm:$0xf] %v7265_v6  ;;  %v3688_v6 = vrot.slane %v5571_v18, 5  ;;  %v7349_v13 = vld [vmem:[#allocation3 + $0xe8] sm:$0xf] }
  0xba   : > { %2608 = vst [vmem:[#allocation3 + $0x40] sm:$0xf] %v2559_v1  ;;  %v4906_v1 = vor.u32 %v5853_v35, %v4903_v38  ;;  %v7352_v18 = vld [vmem:[%s6287_s6 + $0x50] sm:$0x3]  ;;  %v7365_v49 = vsel %vm6319_vm2, %v9430_v31, %v9429_v15  ;;  %v9432_v35 = vld [vmem:[#allocation27_spill] sm:$0xff]  ;;  %v9434_v15 = vrot.slane %v9418_v58, 5 }
  0xbb   : > { %2255 = vst [vmem:[#allocation3 + $0x16c] sm:$0xf] %v7149_v14  ;;  %v3686_v14 = vsel %vm6608_vm5, %v5581_v12, %v3685_v42  ;;  %v9431_v42 = vld [vmem:[#allocation22_spill] sm:$0xff]  ;;  %v4681_v21 = vrot.slane %v9432_v35, 9  ;;  %v3689_v16 = vsel %vm6608_vm5, %v3687_v2, %v3688_v6  ;;  %v7388_v12 = vld [vmem:[%s6287_s6 + $0x88] sm:$0xf] }
  0xbc   : > { %2256 = vst [vmem:[#allocation3 + $0x190] sm:$0xf] %v2232_v61  ;;  %v7356_v41 = vld [vmem:[#allocation3 + $0x108] sm:$0xf0]  ;;  %v6091_v61 = vld [vmem:[%s9292_s1 + $0x1b8] sm:$0xff]  ;;  %3230 = vmatpush.bf16.msrb.mxu2 %v9431_v42  ;;  %1839 = vmatmul.bf16.gmra.mxu1 %v4906_v1  ;;  %v706_v31 = vrot.slane %v9434_v15, 4 }
  0xbd   : > { %9428 = vst [vmem:[#allocation17_spill] sm:$0xff] %v7352_v18  ;;  %3267 = vmatpush.bf16.msrb.mxu3 %v6091_v61  ;;  %v707_v61 = vrot.slane %v7352_v18, 5  ;;  %v9435_v42 = vrot.slane %v6724_v28, 6  ;;  %v5802_v6 = vld [vmem:[%s9292_s1 + $0x210] sm:$0xff]  ;;  %v6092_v2 = vld [vmem:[%s9292_s1 + $0x20] sm:$0xff]  ;;  %v2404_v1 = vrot.slane %v9329_v20, 4  ;;  %v7443_v20 = vpop.f32.mrf.mxu0 }
  0xbe   : > { %2432 = vst [vmem:[#allocation3 + $0xe8] sm:$0xf] %v2396_v51  ;;  %3036 = vmatpush.bf16.msrb.mxu1 %v6092_v2  ;;  %v5275_v2 = vrot.slane %v6967_v46, 9  ;;  %2084 = vmatpush.bf16.msra.mxu0 %v5802_v6  ;;  %v7424_v46 = vpop.f32.mrf.mxu1  ;;  %v9441_v6 = vrot.slane %v6574_v25, 6  ;;  %v6096_v35 = vld [vmem:[%s9292_s1 + $0x10] sm:$0xff] }
  0xbf   : > { %2433 = vst [vmem:[#allocation3 + $0x10c] sm:$0xf] %v2399_v57  ;;  %v7375_v51 = vld [vmem:[#allocation3 + $0x1c] sm:$0xf]  ;;  %v7385_v38 = vrot.slane %v9435_v42, 4  ;;  %v865_v57 = vsel %vm6608_vm5, %v4708_v54, %v864_v9  ;;  %v868_v9 = vsel %vm6608_vm5, %v866_v53, %v867_v56  ;;  %v6093_v54 = vld [vmem:[%s9292_s1 + $0x1b0] sm:$0xff] }
  0xc0   : > { %9433 = vst [vmem:[#allocation22_spill] sm:$0xff] %v7375_v51  ;;  %v9437_v42 = vld [vmem:[#allocation25_spill] sm:$0xff]  ;;  %v7413_v51 = vld [vmem:[%s6287_s6 + $0x8c] sm:$0x3] }
  0xc1   : > { %827 = vst [vmem:[#allocation3 + $0x60] sm:$0xf] %v7327_v4  ;;  %v7399_v15 = vld [vmem:[#allocation3 + $0x3c] sm:$0xf0]  ;;  %3268 = vmatpush.bf16.msrb.mxu3 %v6093_v54  ;;  %3231 = vmatpush.bf16.msrb.mxu2 %v9437_v42  ;;  %v9439_v56 = vld [vmem:[#allocation29_spill] sm:$0xff] }
  0xc2   : > { %3719 = vst [vmem:[#allocation3 + $0x1c] sm:$0xf] %v3686_v14  ;;  %v2562_v14 = vrot.slane %v7388_v12, 5  ;;  %v745_v18 = vrot.slane %v9439_v56, 6  ;;  %v7422_v42 = vld [vmem:[%s6287_s6 + $0x84] sm:$0xf] }
  0xc3   : > { %9436 = vst [vmem:[#allocation35_spill] sm:$0xff] %v7399_v15  ;;  %v9438_v15 = vrot.slane %v9418_v58, 5  ;;  %v2565_v56 = vrot.slane %v7413_v51, 5 }
  0xc4   : > { %828 = vst [vmem:[#allocation3 + $0x84] sm:$0xf] %v7312_v62  ;;  %v746_v54 = vsel %vm6319_vm2, %v7118_v29, %v745_v18 }
  0xc5   : > { %3720 = vst [vmem:[#allocation3 + $0x40] sm:$0xf] %v3689_v16  ;;  %v705_v53 = vsel %vm6608_vm5, %v4681_v21, %v9438_v15  ;;  %v708_v16 = vsel %vm6608_vm5, %v706_v31, %v707_v61  ;;  %v5302_v21 = vrot.slane %v7422_v42, 9  ;;  %v9442_v15 = vrot.slane %v6554_v5, 10  ;;  %v6094_v31 = vld [vmem:[%s9292_s1 + $0x18] sm:$0xff]  ;;  %v6095_v5 = vld [vmem:[%s9292_s1 + $0x1a8] sm:$0xff]  ;;  %3232 = vmatpush.bf16.msrb.mxu2 %v6995_v3 }
  0xc6   : > { %911 = vst [vmem:[#allocation3 + $0x64] sm:$0xf] %v865_v57  ;;  %3037 = vmatpush.bf16.msrb.mxu1 %v6094_v31  ;;  %v2564_v61 = vrot.slane %v2562_v14, 4  ;;  %3269 = vmatpush.bf16.msrb.mxu3 %v6095_v5  ;;  %v4846_v5 = vor.u32 %v7356_v41, %v7349_v13  ;;  %v7468_v31 = vld [vmem:[%s6287_s6 + $0x48] sm:$0xf] }
  0xc7   : > { %9440 = vst [vmem:[#allocation25_spill] sm:$0xff] %v7424_v46  ;;  %v7437_v57 = vsel %vm6319_vm2, %v9442_v15, %v9441_v6  ;;  %v7453_v15 = vld [vmem:[%s6287_s6 + $0x4c] sm:$0xf] }
  0xc8   : > { %912 = vst [vmem:[#allocation3 + $0x88] sm:$0xf] %v868_v9  ;;  %v7446_v9 = vld [vmem:[%s6287_s6 + $0x98] sm:$0x3]  ;;  %v4781_v6 = vld [vmem:[#allocation3 + $0x60] sm:$0xf]  ;;  %v2566_v13 = vsel %vm6608_vm5, %v2564_v61, %v2565_v56  ;;  %1946 = vmatmul.bf16.gmra.mxu0 %v4846_v5 }
  0xc9   : > { %736 = vst [vmem:[#allocation3 + $0x130] sm:$0xf] %v705_v53  ;;  %v2405_v53 = vrot.slane %v7446_v9, 5  ;;  %v871_v18 = vrot.slane %v7453_v15, 5  ;;  %3233 = vmatpush.bf16.msrb.mxu2 %v7097_v45  ;;  %v9445_v61 = vrot.slane %v7161_v8, 6  ;;  %v4709_v45 = vrot.slane %v7468_v31, 9 }
  0xca   : > { %737 = vst [vmem:[#allocation3 + $0x154] sm:$0xf] %v708_v16  ;;  %v2563_v16 = vsel %vm6608_vm5, %v5302_v21, %v2562_v14  ;;  %3038 = vmatpush.bf16.msrb.mxu1 %v6096_v35  ;;  %v9443_v35 = vrot.slane %v6974_v39, 5  ;;  %v7487_v21 = vld [vmem:[%s6287_s6 + $0x50] sm:$0x3] }
  0xcb   : > { %2525 = vst [vmem:[#allocation3 + $0x60] sm:$0xf] %v7422_v42  ;;  %v5824_v3 = vld [vmem:[#allocation3 + $0x80] sm:$0xf0]  ;;  %v925_v56 = vrot.slane %v9445_v61, 4  ;;  %v873_v5 = vrot.slane %v871_v18, 4 }
  0xcc   : > { %794 = vst [vmem:[#allocation3 + $0x14] sm:$0xf] %v7295_v52  ;;  %v4782_v29 = vor.u32 %v5824_v3, %v4781_v6  ;;  %v6097_v52 = vld [vmem:[%s9292_s1 + $0x1a0] sm:$0xff]  ;;  %v2403_v14 = vsel %vm6608_vm5, %v5275_v2, %v9443_v35  ;;  %v2406_v3 = vsel %vm6608_vm5, %v2404_v1, %v2405_v53  ;;  %v7497_v2 = vld [vmem:[%s6287_s6 + $0x5c] sm:$0x3]  ;;  %v9448_v35 = vrot.slane %v6586_v10, 10 }
  0xcd   : > { %2526 = vst [vmem:[#allocation3 + $0x84] sm:$0xf] %v7388_v12  ;;  %3270 = vmatpush.bf16.msrb.mxu3 %v6097_v52  ;;  %v5820_v41 = vld [vmem:[#allocation3 + $0x64] sm:$0xf]  ;;  %v6098_v1 = vld [vmem:[%s9292_s1 + $0x8] sm:$0xff]  ;;  %3234 = vmatpush.bf16.msrb.mxu2 %v7220_v60  ;;  %v926_v10 = vrot.slane %v7188_v33, 6  ;;  %v7530_v60 = vpop.f32.mrf.mxu0 }
  0xce   : > { %795 = vst [vmem:[#allocation3 + $0x38] sm:$0xf] %v746_v54  ;;  %2014 = vmatmul.bf16.gmra.mxu2 %v4782_v29  ;;  %v9447_v54 = vrot.slane %v6623_v37, 6  ;;  %3039 = vmatpush.bf16.msrb.mxu1 %v6098_v1  ;;  %v874_v29 = vrot.slane %v7487_v21, 5  ;;  %v9450_v37 = vld [vmem:[#allocation20_spill] sm:$0xff]  ;;  %v5801_v61 = vld [vmem:[%s9292_s1 + $0x208] sm:$0xff] }
  0xcf   : > { %9444 = vst [vmem:[#allocation29_spill] sm:$0xff] %v7487_v21  ;;  %v4783_v6 = vld [vmem:[#allocation3 + $0x84] sm:$0xf0]  ;;  %v9452_v33 = vrot.slane %v7055_v7, 5  ;;  %v9454_v1 = vrot.slane %v6671_v34, 10  ;;  %2085 = vmatpush.bf16.msra.mxu0 %v5801_v61  ;;  %v6099_v34 = vld [vmem:[%s9292_s1] sm:$0xff] }
  0xd0   : > { %2609 = vst [vmem:[#allocation3 + $0x64] sm:$0xf] %v2563_v16  ;;  %v4786_v52 = vor.u32 %v5820_v41, %v4783_v6  ;;  %v7494_v46 = vld [vmem:[#allocation3 + $0x130] sm:$0xf]  ;;  %v7505_v16 = vsel %vm6319_vm2, %v9448_v35, %v9447_v54  ;;  %v7519_v41 = vld [vmem:[%s6287_s6 + $0x94] sm:$0xf] }
  0xd1   : > { %2610 = vst [vmem:[#allocation3 + $0x88] sm:$0xf] %v2566_v13  ;;  %v7510_v53 = vld [vmem:[#allocation3 + $0x150] sm:$0xf0]  ;;  %v7513_v13 = vpop.f32.mrf.mxu1  ;;  %3271 = vmatpush.bf16.msrb.mxu3 %v9450_v37  ;;  %v9451_v6 = vrot.slane %v6977_v47, 6  ;;  %v9453_v35 = vrot.slane %v6679_v43, 6  ;;  %3235 = vmatpush.bf16.msrb.mxu2 %v7250_v0 }
  0xd2   : > { %9446 = vst [vmem:[#allocation36_spill] sm:$0xff] %v7497_v2  ;;  %2053 = vmatmul.bf16.gmra.mxu3 %v4786_v52  ;;  %v714_v52 = vrot.slane %v7497_v2, 5  ;;  %v9455_v37 = vrot.slane %v7109_v63, 5  ;;  %v7552_v2 = vpop.f32.mrf.mxu2  ;;  %3040 = vmatpush.bf16.msrb.mxu1 %v6099_v34  ;;  %v9457_v61 = vrot.slane %v7055_v7, 5  ;;  %v9458_v34 = vrot.slane %v7044_v50, 9  ;;  %v5800_v0 = vld [vmem:[%s9292_s1 + $0x200] sm:$0xff] }
  0xd3   : > { %2434 = vst [vmem:[#allocation3 + $0x130] sm:$0xf] %v2403_v14  ;;  %v5810_v14 = vld [vmem:[#allocation3 + $0x14] sm:$0xf]  ;;  %v2444_v54 = vsel %vm6319_vm2, %v7138_v27, %v9451_v6  ;;  %v7541_v47 = vsel %vm6319_vm2, %v9454_v1, %v9453_v35  ;;  %v7561_v1 = vld [vmem:[%s6287_s6 + $0x98] sm:$0x3]  ;;  %2086 = vmatpush.bf16.msra.mxu0 %v5800_v0 }
  0xd4   : > { %9449 = vst [vmem:[#allocation37_spill] sm:$0xff] %v7513_v13  ;;  %v7546_v6 = vrot.slane %v9455_v37, 4  ;;  %v872_v13 = vsel %vm6608_vm5, %v4709_v45, %v871_v18  ;;  %v9456_v37 = vld [vmem:[#allocation23_spill] sm:$0xff]  ;;  %v7565_v45 = vpop.f32.mrf.mxu3  ;;  %v712_v27 = vsel %vm6608_vm5, %v9458_v34, %v9457_v61  ;;  %v9459_v21 = vrot.slane %v6574_v25, 6 }
  0xd5   : > { %2435 = vst [vmem:[#allocation3 + $0x154] sm:$0xf] %v2406_v3  ;;  %v713_v3 = vrot.slane %v9452_v33, 4  ;;  %v2569_v33 = vrot.slane %v7519_v41, 5  ;;  %v4739_v35 = vld [vmem:[#allocation3 + $0x34] sm:$0xf0]  ;;  %3272 = vmatpush.bf16.msrb.mxu3 %v9456_v37 }
  0xd6   : > { %829 = vst [vmem:[#allocation3 + $0xa8] sm:$0xf] %v7468_v31  ;;  %v4742_v18 = vor.u32 %v5810_v14, %v4739_v35  ;;  %v7580_v14 = vld [vmem:[%s6287_s6 + $0x90] sm:$0xf]  ;;  %v9460_v35 = vrot.slane %v6679_v43, 6  ;;  %v9461_v61 = vrot.slane %v7161_v8, 6 }
  0xd7   : > { %2492 = vst [vmem:[#allocation3 + $0x14] sm:$0xf] %v7365_v49  ;;  %v875_v49 = vsel %vm6608_vm5, %v873_v5, %v874_v29  ;;  %v751_v5 = vrot.slane %v9459_v21, 4  ;;  %v752_v29 = vrot.slane %v7062_v36, 6  ;;  %v9462_v25 = vrot.slane %v7174_v40, 10 }
  0xd8   : > { %830 = vst [vmem:[#allocation3 + $0xcc] sm:$0xf] %v7453_v15  ;;  %v758_v37 = vrot.slane %v9460_v35, 4  ;;  %v7596_v21 = vsel %vm6319_vm2, %v925_v56, %v926_v10  ;;  %1970 = vmatmul.bf16.vlgmr.msra.gmra.mxu1 %v4742_v18  ;;  %v2571_v43 = vrot.slane %v2569_v33, 4  ;;  %v2572_v8 = vrot.slane %v7561_v1, 5 }
  0xd9   : > { %2493 = vst [vmem:[#allocation3 + $0x38] sm:$0xf] %v2444_v54  ;;  %v715_v54 = vsel %vm6608_vm5, %v713_v3, %v714_v52  ;;  %v7592_v36 = vsel %vm6319_vm2, %v9462_v25, %v9461_v61  ;;  %v5303_v3 = vrot.slane %v7580_v14, 9  ;;  %v7602_v40 = vld [vmem:[%s6287_s6 + $0x58] sm:$0xf]  ;;  %v759_v52 = vrot.slane %v7090_v11, 6  ;;  %v7625_v0 = vpop.f32.mrf.mxu1 }
  0xda   : > { %913 = vst [vmem:[#allocation3 + $0xac] sm:$0xf] %v872_v13  ;;  %v9332_v13 = vrot.slane %v7206_v23, 6  ;;  %v9463_v34 = vrot.slane %v6724_v28, 6  ;;  %v9464_v56 = vrot.slane %v6715_v24, 10  ;;  %v2457_v18 = vrot.slane %v7171_v44, 6 }
  0xdb   : > { %914 = vst [vmem:[#allocation3 + $0xd0] sm:$0xf] %v875_v49  ;;  %v6100_v49 = vld [vmem:[%s9292_s1 + $0xf8] sm:$0xff]  ;;  %v7621_v28 = vld [vmem:[%s6287_s6 + $0xa4] sm:$0x3]  ;;  %v753_v35 = vsel %vm6319_vm2, %v751_v5, %v752_v29  ;;  %v7632_v61 = vsel %vm6319_vm2, %v758_v37, %v759_v52  ;;  %v763_v25 = vrot.slane %v9407_v55, 6  ;;  %v2570_v5 = vsel %vm6608_vm5, %v5303_v3, %v2569_v33  ;;  %v7663_v3 = vpop.f32.mrf.mxu2 }
  0xdc   : > { %738 = vst [vmem:[#allocation3 + $0x178] sm:$0xf] %v712_v27  ;;  %v7611_v10 = vsel %vm6319_vm2, %v9464_v56, %v9463_v34  ;;  %3150 = vmatpush.bf16.msrb.mxu0 %v6100_v49  ;;  %v6101_v27 = vld [vmem:[%s9292_s1 + $0x138] sm:$0xff]  ;;  %v9466_v24 = vld [vmem:[#allocation26_spill] sm:$0xff]  ;;  %v2412_v44 = vrot.slane %v7621_v28, 5  ;;  %v5307_v34 = vrot.slane %v7203_v48, 10  ;;  %v4882_v56 = vor.u32 %v7510_v53, %v7494_v46  ;;  %v7651_v48 = vpop.f32.mrf.mxu0 }
  0xdd   : > { %3189 = vmatpush.bf16.msra.mxu1 %v6101_v27  ;;  %v4817_v11 = vld [vmem:[#allocation3 + $0xa8] sm:$0xf]  ;;  %739 = vst [vmem:[#allocation3 + $0x19c] sm:$0xf] %v715_v54  ;;  %3273 = vmatpush.bf16.msrb.mxu3 %v9466_v24  ;;  %v7637_v54 = vsel %vm6319_vm2, %v7385_v38, %v2457_v18  ;;  %v2623_v29 = vrot.slane %v9332_v13, 4  ;;  %v2573_v55 = vsel %vm6608_vm5, %v2571_v43, %v2572_v8  ;;  %v878_v46 = vrot.slane %v7602_v40, 5 }
  0xde   : > { %9465 = vst [vmem:[#allocation20_spill] sm:$0xff] %v7621_v28  ;;  %v7654_v38 = vld [vmem:[%s6287_s6 + $0x54] sm:$0xf]  ;;  %v9468_v43 = vrot.slane %v7109_v63, 5  ;;  %v9469_v8 = vrot.slane %v7082_v26, 9  ;;  %v9471_v27 = vld [vmem:[#allocation21_spill] sm:$0xff]  ;;  %1951 = vmatmul.bf16.gmra.mxu0 %v4882_v56 }
  0xdf   : > { %2527 = vst [vmem:[#allocation3 + $0xa8] sm:$0xf] %v7580_v14  ;;  %v5833_v49 = vld [vmem:[#allocation3 + $0xc8] sm:$0xf0]  ;;  %v6103_v53 = vld [vmem:[%s9292_s1 + $0x130] sm:$0xff]  ;;  %v2461_v13 = vrot.slane %v6892_v59, 6 }
  0xe0   : > { %9467 = vst [vmem:[#allocation23_spill] sm:$0xff] %v7625_v0  ;;  %v4818_v37 = vor.u32 %v5833_v49, %v4817_v11  ;;  %v2410_v52 = vsel %vm6608_vm5, %v9469_v8, %v9468_v43  ;;  %v7672_v18 = vld [vmem:[%s6287_s6 + $0x5c] sm:$0x3]  ;;  %v2624_v11 = vrot.slane %v9471_v27, 6  ;;  %v2413_v49 = vsel %vm6608_vm5, %v7546_v6, %v2412_v44  ;;  %v6104_v59 = vld [vmem:[%s9292_s1 + $0xe8] sm:$0xff]  ;;  %v9473_v56 = vld [vmem:[#allocation24_spill] sm:$0xff] }
  0xe1   : > { %796 = vst [vmem:[#allocation3 + $0x5c] sm:$0xf] %v7437_v57  ;;  %v6102_v57 = vld [vmem:[%s9292_s1 + $0xf0] sm:$0xff]  ;;  %3190 = vmatpush.bf16.msra.mxu1 %v6103_v53  ;;  %v5829_v33 = vld [vmem:[#allocation3 + $0xac] sm:$0xf]  ;;  %3274 = vmatpush.bf16.msrb.mxu3 %v7030_v22  ;;  %v4710_v22 = vrot.slane %v7654_v38, 9 }
  0xe2   : > { %2528 = vst [vmem:[#allocation3 + $0xcc] sm:$0xf] %v7519_v41  ;;  %3151 = vmatpush.bf16.msrb.mxu0 %v6102_v57  ;;  %2019 = vmatmul.bf16.gmra.mxu2 %v4818_v37  ;;  %v4819_v24 = vld [vmem:[#allocation3 + $0xcc] sm:$0xf0]  ;;  %v9472_v57 = vld [vmem:[#allocation33_spill] sm:$0xff]  ;;  %v881_v6 = vrot.slane %v7672_v18, 5 }
  0xe3   : > { %797 = vst [vmem:[#allocation3 + $0x80] sm:$0xf] %v753_v35  ;;  %v2450_v53 = vrot.slane %v9472_v57, 6  ;;  %v4822_v43 = vor.u32 %v5829_v33, %v4819_v24  ;;  %v7681_v35 = vpop.f32.mrf.mxu3  ;;  %v7683_v8 = vld [vmem:[#allocation3 + $0x178] sm:$0xf]  ;;  %v6105_v44 = vld [vmem:[%s9292_s1 + $0x128] sm:$0xff] }
  0xe4   : > { %9470 = vst [vmem:[#allocation26_spill] sm:$0xff] %v7672_v18  ;;  %v7686_v37 = vld [vmem:[#allocation3 + $0x198] sm:$0xf0]  ;;  %v4714_v33 = vrot.slane %v7327_v4, 10  ;;  %v930_v27 = vrot.slane %v7312_v62, 6  ;;  %v9474_v24 = vld [vmem:[#allocation11_spill] sm:$0xff]  ;;  %v7713_v62 = vsel %vm6319_vm2, %v2623_v29, %v2624_v11 }
  0xe5   : > { %2611 = vst [vmem:[#allocation3 + $0xac] sm:$0xf] %v2570_v5  ;;  %v880_v5 = vrot.slane %v878_v46, 4  ;;  %3191 = vmatpush.bf16.msra.mxu1 %v6105_v44  ;;  %2058 = vmatmul.bf16.gmra.mxu3 %v4822_v43  ;;  %v2451_v57 = vsel %vm6319_vm2, %v9474_v24, %v2450_v53  ;;  %v9475_v44 = vrot.slane %v7206_v23, 6  ;;  %v9476_v4 = vrot.slane %v6808_v32, 10  ;;  %v7725_v43 = vpop.f32.mrf.mxu1 }
  0xe6   : > { %2612 = vst [vmem:[#allocation3 + $0xd0] sm:$0xf] %v2573_v55  ;;  %3152 = vmatpush.bf16.msrb.mxu0 %v6104_v59  ;;  %v5280_v55 = vrot.slane %v9473_v56, 10  ;;  %v7703_v59 = vld [vmem:[%s6287_s6 + $0xa0] sm:$0xf]  ;;  %v2463_v53 = vrot.slane %v2461_v13, 4  ;;  %v7752_v0 = vsel %vm6319_vm2, %v4714_v33, %v930_v27 }
  0xe7   : > { %2436 = vst [vmem:[#allocation3 + $0x178] sm:$0xf] %v2410_v52  ;;  %v7709_v56 = vsel %vm6319_vm2, %v5307_v34, %v9475_v44  ;;  %v2576_v23 = vrot.slane %v7703_v59, 5  ;;  %v879_v34 = vsel %vm6608_vm5, %v4710_v22, %v878_v46  ;;  %v765_v24 = vrot.slane %v763_v25, 4  ;;  %v7729_v32 = vld [vmem:[%s6287_s6 + $0x9c] sm:$0xf] }
  0xe8   : > { %2437 = vst [vmem:[#allocation3 + $0x19c] sm:$0xf] %v2413_v49  ;;  %v5819_v52 = vld [vmem:[#allocation3 + $0x5c] sm:$0xf]  ;;  %v7719_v49 = vsel %vm6319_vm2, %v9476_v4, %v763_v25  ;;  %v882_v11 = vsel %vm6608_vm5, %v880_v5, %v881_v6  ;;  %v6107_v46 = vld [vmem:[%s9292_s1 + $0x120] sm:$0xff]  ;;  %v5304_v5 = vrot.slane %v7729_v32, 9  ;;  %v7745_v6 = vpop.f32.mrf.mxu0 }
  0xe9   : > { %831 = vst [vmem:[#allocation3 + $0xf0] sm:$0xf] %v7654_v38  ;;  %3192 = vmatpush.bf16.msra.mxu1 %v6107_v46  ;;  %v7741_v44 = vld [vmem:[%s6287_s6 + $0xa4] sm:$0x3]  ;;  %v9480_v4 = vld [vmem:[#allocation13_spill] sm:$0xff]  ;;  %v932_v46 = vrot.slane %v930_v27, 4 }
  0xea   : > { %2494 = vst [vmem:[#allocation3 + $0x5c] sm:$0xf] %v7505_v16  ;;  %v4775_v29 = vld [vmem:[#allocation3 + $0x7c] sm:$0xf0]  ;;  %v2579_v33 = vrot.slane %v7741_v44, 5 }
  0xeb   : > { %9477 = vst [vmem:[#allocation21_spill] sm:$0xff] %v7725_v43  ;;  %v6106_v16 = vld [vmem:[%s9292_s1 + $0xe0] sm:$0xff]  ;;  %v4778_v22 = vor.u32 %v5819_v52, %v4775_v29  ;;  %v766_v43 = vrot.slane %v9480_v4, 6  ;;  %v2578_v52 = vrot.slane %v2576_v23, 4  ;;  %v9482_v4 = vld [vmem:[#allocation28_spill] sm:$0xff] }
  0xec   : > { %832 = vst [vmem:[#allocation3 + $0x114] sm:$0xf] %v7602_v40  ;;  %3153 = vmatpush.bf16.msrb.mxu0 %v6106_v16  ;;  %v7748_v16 = vld [vmem:[%s6287_s6 + $0x64] sm:$0xf]  ;;  %v2464_v25 = vrot.slane %v9482_v4, 6 }
  0xed   : > { %9478 = vst [vmem:[#allocation33_spill] sm:$0xff] %v7729_v32  ;;  %1975 = vmatmul.bf16.gmra.mxu1 %v4778_v22  ;;  %v7758_v29 = vsel %vm6319_vm2, %v765_v24, %v766_v43  ;;  %v7768_v27 = vld [vmem:[%s6287_s6 + $0x60] sm:$0xf]  ;;  %v6108_v43 = vld [vmem:[%s9292_s1 + $0xd8] sm:$0xff]  ;;  %v7777_v24 = vpop.f32.mrf.mxu3  ;;  %v2628_v22 = vrot.slane %v7388_v12, 6  ;;  %v9485_v12 = vld [vmem:[#allocation27_spill] sm:$0xff] }
  0xee   : > { %2495 = vst [vmem:[#allocation3 + $0x80] sm:$0xf] %v2451_v57  ;;  %v7754_v57 = vpop.f32.mrf.mxu2  ;;  %v7788_v4 = vld [vmem:[%s6287_s6 + $0x68] sm:$0x3] }
  0xef   : > { %9479 = vst [vmem:[#allocation24_spill] sm:$0xff] %v7741_v44  ;;  %v2577_v44 = vsel %vm6608_vm5, %v5304_v5, %v2576_v23  ;;  %v6111_v23 = vld [vmem:[%s9292_s1 + $0x110] sm:$0xff] }
  0xf0   : > { %915 = vst [vmem:[#allocation3 + $0xf4] sm:$0xf] %v879_v34  ;;  %v7762_v34 = vsel %vm6319_vm2, %v5280_v55, %v2461_v13  ;;  %3154 = vmatpush.bf16.msrb.mxu0 %v6108_v43  ;;  %v6109_v13 = vld [vmem:[%s9292_s1 + $0x118] sm:$0xff]  ;;  %v4853_v55 = vld [vmem:[#allocation3 + $0xf0] sm:$0xf] }
  0xf1   : > { %9481 = vst [vmem:[#allocation11_spill] sm:$0xff] %v7748_v16  ;;  %3193 = vmatpush.bf16.msra.mxu1 %v6109_v13  ;;  %v4918_v13 = vor.u32 %v7686_v37, %v7683_v8  ;;  %v2580_v8 = vsel %vm6608_vm5, %v2578_v52, %v2579_v33  ;;  %v6110_v37 = vld [vmem:[%s9292_s1 + $0xd0] sm:$0xff]  ;;  %v5308_v52 = vrot.slane %v7422_v42, 10  ;;  %v2630_v33 = vrot.slane %v2628_v22, 4  ;;  %v7825_v42 = vpop.f32.mrf.mxu0 }
  0xf2   : > { %916 = vst [vmem:[#allocation3 + $0x118] sm:$0xf] %v882_v11  ;;  %v933_v11 = vrot.slane %v7340_v19, 6  ;;  %v7783_v19 = vsel %vm6319_vm2, %v2463_v53, %v2464_v25  ;;  %v4711_v53 = vrot.slane %v7768_v27, 9 }
  0xf3   : > { %798 = vst [vmem:[#allocation3 + $0xa4] sm:$0xf] %v7541_v47  ;;  %v885_v47 = vrot.slane %v7748_v16, 5  ;;  %1956 = vmatmul.bf16.gmra.mxu0 %v4918_v13  ;;  %v6113_v13 = vld [vmem:[%s9292_s1 + $0x108] sm:$0xff] }
  0xf4   : > { %9483 = vst [vmem:[#allocation13_spill] sm:$0xff] %v7768_v27  ;;  %v7792_v43 = vsel %vm6319_vm2, %v932_v46, %v933_v11  ;;  %3155 = vmatpush.bf16.msrb.mxu0 %v6110_v37  ;;  %v888_v11 = vrot.slane %v7788_v4, 5 }
  0xf5   : > { %799 = vst [vmem:[#allocation3 + $0xc8] sm:$0xf] %v7632_v61  ;;  %v5842_v61 = vld [vmem:[#allocation3 + $0x110] sm:$0xf0]  ;;  %3194 = vmatpush.bf16.msra.mxu1 %v6111_v23  ;;  %v887_v46 = vrot.slane %v885_v47, 4 }
  0xf6   : > { %2529 = vst [vmem:[#allocation3 + $0xf0] sm:$0xf] %v7729_v32  ;;  %v9486_v32 = vrot.slane %v9418_v58, 6  ;;  %v4854_v18 = vor.u32 %v5842_v61, %v4853_v55  ;;  %v7818_v23 = vpop.f32.mrf.mxu2 }
  0xf7   : > { %9484 = vst [vmem:[#allocation28_spill] sm:$0xff] %v7788_v4  ;;  %v5838_v5 = vld [vmem:[#allocation3 + $0xf4] sm:$0xf]  ;;  %v886_v4 = vsel %vm6608_vm5, %v4711_v53, %v885_v47  ;;  %v2468_v47 = vrot.slane %v6974_v39, 6  ;;  %v7839_v53 = vpop.f32.mrf.mxu3  ;;  %v2631_v39 = vrot.slane %v7413_v51, 6  ;;  %v6114_v51 = vld [vmem:[%s9292_s1 + $0xc0] sm:$0xff] }
  0xf8   : > { %833 = vst [vmem:[#allocation3 + $0x138] sm:$0xf] %v7768_v27  ;;  %v7803_v28 = vrot.slane %v9486_v32, 4  ;;  %v1815_v32 = vpop.f32.mrf.mxu1  ;;  %2024 = vmatmul.bf16.gmra.mxu2 %v4854_v18  ;;  %v7821_v27 = vld [vmem:[%s6287_s6 + $0xa8] sm:$0xf] }
  0xf9   : > { %2530 = vst [vmem:[#allocation3 + $0x114] sm:$0xf] %v7703_v59  ;;  %v4855_v55 = vld [vmem:[#allocation3 + $0x114] sm:$0xf0]  ;;  %v1816_v61 = vadd.f32 %v1815_v32, %v7443_v20  ;;  %v7830_v20 = vld [vmem:[%s6287_s6 + $0xac] sm:$0xf]  ;;  %3195 = vmatpush.bf16.msra.mxu1 %v6113_v13 }
  0xfa   : > { %834 = vst [vmem:[#allocation3 + $0x15c] sm:$0xf] %v7748_v16  ;;  %v4858_v37 = vor.u32 %v5838_v5, %v4855_v55  ;;  %v5828_v25 = vld [vmem:[#allocation3 + $0xa4] sm:$0xf]  ;;  %v9487_v5 = vld [vmem:[#allocation17_spill] sm:$0xff] }
  0xfb   : > { %2613 = vst [vmem:[#allocation3 + $0xf4] sm:$0xf] %v2577_v44  ;;  %v1855_v18 = vadd.f32 %v7552_v2, %v1816_v61  ;;  %v6112_v44 = vld [vmem:[%s9292_s1 + $0xc8] sm:$0xff]  ;;  %v2583_v2 = vrot.slane %v7830_v20, 5  ;;  %v773_v32 = vrot.slane %v9487_v5, 6  ;;  %v7851_v61 = vsel %vm6319_vm2, %v5308_v52, %v2628_v22 }
  0xfc   : > { %2614 = vst [vmem:[#allocation3 + $0x118] sm:$0xf] %v2580_v8  ;;  %v4811_v16 = vld [vmem:[#allocation3 + $0xc4] sm:$0xf0]  ;;  %3156 = vmatpush.bf16.msrb.mxu0 %v6112_v44  ;;  %2063 = vmatmul.bf16.gmra.mxu3 %v4858_v37  ;;  %v7846_v8 = vld [vmem:[%s6287_s6 + $0xb0] sm:$0x3] }
  0xfd   : > { %2496 = vst [vmem:[#allocation3 + $0xa4] sm:$0xf] %v7611_v10  ;;  %v889_v10 = vsel %vm6608_vm5, %v887_v46, %v888_v11  ;;  %v4814_v37 = vor.u32 %v5828_v25, %v4811_v16  ;;  %v7857_v44 = vadd.f32 %v7565_v45, %v1855_v18  ;;  %v9488_v46 = vld [vmem:[#allocation30_spill] sm:$0xff]  ;;  %v2470_v45 = vrot.slane %v2468_v47, 4 }
  0xfe   : > { %2497 = vst [vmem:[#allocation3 + $0xc8] sm:$0xf] %v7637_v54  ;;  %v5305_v54 = vrot.slane %v7821_v27, 9  ;;  %v5281_v11 = vrot.slane %v9488_v46, 10  ;;  %v6115_v16 = vld [vmem:[%s9292_s1 + $0x100] sm:$0xff]  ;;  %v2471_v22 = vrot.slane %v7446_v9, 6  ;;  %v7889_v46 = vsel %vm6319_vm2, %v7803_v28, %v773_v32 }
  0xff   : > { %v4889_v55 = vld [vmem:[#allocation3 + $0x138] sm:$0xf]  ;;  %917 = vst [vmem:[#allocation3 + $0x13c] sm:$0xf] %v886_v4  ;;  %v7862_v4 = vsel %vm6319_vm2, %v2630_v33, %v2631_v39  ;;  %3196 = vmatpush.bf16.msra.mxu1 %v6115_v16  ;;  %v2585_v25 = vrot.slane %v2583_v2, 4  ;;  %v2586_v52 = vrot.slane %v7846_v8, 5  ;;  %v7903_v32 = vpop.f32.mrf.mxu3 }
 0x100   : > { %2531 = vst [vmem:[#allocation3 + $0x138] sm:$0xf] %v7821_v27  ;;  %3157 = vmatpush.bf16.msrb.mxu0 %v6114_v51  ;;  %v1817_v33 = vpop.f32.mrf.mxu1  ;;  %v9489_v5 = vrot.slane %v9418_v58, 6  ;;  %v9490_v39 = vrot.slane %v9485_v12, 10  ;;  %1980 = vmatmul.bf16.gmra.mxu1 %v4814_v37  ;;  %v7899_v12 = vld [vmem:[%s6287_s6 + $0x6c] sm:$0xf]  ;;  %v7915_v37 = vpop.f32.mrf.mxu0 }
 0x101   : > { %v5851_v13 = vld [vmem:[#allocation3 + $0x158] sm:$0xf0]  ;;  %918 = vst [vmem:[#allocation3 + $0x160] sm:$0xf] %v889_v10  ;;  %v1818_v18 = vadd.f32 %v1817_v33, %v7530_v60  ;;  %v7876_v10 = vld [vmem:[%s6287_s6 + $0x70] sm:$0xf]  ;;  %v7894_v60 = vpop.f32.mrf.mxu2  ;;  %v2587_v28 = vsel %vm6608_vm5, %v2585_v25, %v2586_v52 }
 0x102   : > { %2532 = vst [vmem:[#allocation3 + $0x15c] sm:$0xf] %v7830_v20  ;;  %v7884_v9 = vsel %vm6319_vm2, %v9490_v39, %v9489_v5 }
 0x103   : > { %975 = vst [vmem:[#allocation3 + $0x20] sm:$0xf] %v7592_v36  ;;  %v2584_v36 = vsel %vm6608_vm5, %v5305_v54, %v2583_v2  ;;  %v1857_v58 = vadd.f32 %v7663_v3, %v1818_v18  ;;  %v892_v2 = vrot.slane %v7876_v10, 5  ;;  %v7913_v3 = vsel %vm6319_vm2, %v2470_v45, %v2471_v22  ;;  %v7918_v54 = vld [vmem:[%s6287_s6 + $0x74] sm:$0x3] }
 0x104   : > { %976 = vst [vmem:[#allocation3 + $0x44] sm:$0xf] %v7596_v21  ;;  %v7909_v21 = vsel %vm6319_vm2, %v5281_v11, %v2468_v47  ;;  %v4712_v47 = vrot.slane %v7899_v12, 9  ;;  %v7932_v18 = vld [vmem:[%s6287_s6 + $0xb4] sm:$0xf] }
 0x105   : > { %800 = vst [vmem:[#allocation3 + $0xec] sm:$0xf] %v7719_v49  ;;  %v4890_v49 = vor.u32 %v5851_v13, %v4889_v55  ;;  %v7921_v16 = vadd.f32 %v7681_v35, %v1857_v58  ;;  %v894_v55 = vrot.slane %v892_v2, 4  ;;  %v895_v13 = vrot.slane %v7918_v54, 5  ;;  %v7939_v58 = vld [vmem:[%s6287_s6 + $0xb8] sm:$0xf] }
 0x106   : > { %v5847_v51 = vld [vmem:[#allocation3 + $0x13c] sm:$0xf]  ;;  %801 = vst [vmem:[#allocation3 + $0x110] sm:$0xf] %v7758_v29  ;;  %v893_v5 = vsel %vm6608_vm5, %v4712_v47, %v892_v2  ;;  %v4715_v47 = vrot.slane %v7468_v31, 10 }
 0x107   : > { %2615 = vst [vmem:[#allocation3 + $0x13c] sm:$0xf] %v2584_v36 }
 0x108   : > { %v4891_v29 = vld [vmem:[#allocation3 + $0x15c] sm:$0xf0]  ;;  %835 = vst [vmem:[#allocation3 + $0x180] sm:$0xf] %v7899_v12  ;;  %2029 = vmatmul.bf16.gmra.mxu2 %v4890_v49  ;;  %v1820_v52 = vpop.f32.mrf.mxu1  ;;  %v7951_v49 = vld [vmem:[%s6287_s6 + $0xbc] sm:$0x3] }
 0x109   : > { %2616 = vst [vmem:[#allocation3 + $0x160] sm:$0xf] %v2587_v28  ;;  %v4894_v11 = vor.u32 %v5847_v51, %v4891_v29  ;;  %v7929_v22 = vpop.f32.mrf.mxu2  ;;  %v1821_v39 = vadd.f32 %v1820_v52, %v7651_v48  ;;  %v7943_v51 = vpop.f32.mrf.mxu3  ;;  %v2590_v28 = vrot.slane %v7939_v58, 5  ;;  %v896_v48 = vsel %vm6608_vm5, %v894_v55, %v895_v13 }
 0x10a   : > { %v4753_v25 = vld [vmem:[#allocation3 + $0x20] sm:$0xf]  ;;  %836 = vst [vmem:[#allocation3 + $0x1a4] sm:$0xf] %v7876_v10  ;;  %v777_v29 = vrot.slane %v7055_v7, 6  ;;  %v2593_v13 = vrot.slane %v7951_v49, 5 }
 0x10b   : > { %v5816_v45 = vld [vmem:[#allocation3 + $0x40] sm:$0xf0]  ;;  %2673 = vst [vmem:[#allocation3 + $0x20] sm:$0xf] %v7709_v56  ;;  %v4688_v56 = vrot.slane %v7044_v50, 10  ;;  %v1860_v2 = vadd.f32 %v7754_v57, %v1821_v39  ;;  %v6116_v50 = vld [vmem:[%s9292_s1 + $0x1f8] sm:$0xff] }
 0x10c   : > { %v4754_v35 = vor.u32 %v5816_v45, %v4753_v25  ;;  %2674 = vst [vmem:[#allocation3 + $0x44] sm:$0xf] %v7713_v62  ;;  %v5837_v33 = vld [vmem:[#allocation3 + $0xec] sm:$0xf]  ;;  %v937_v62 = vrot.slane %v7453_v15, 6  ;;  %2068 = vmatmul.bf16.gmra.mxu3 %v4894_v11  ;;  %v7960_v11 = vpop.f32.mrf.mxu0  ;;  %v2592_v55 = vrot.slane %v2590_v28, 4 }
 0x10d   : > { %v4847_v36 = vld [vmem:[#allocation3 + $0x10c] sm:$0xf0]  ;;  %2498 = vst [vmem:[#allocation3 + $0xec] sm:$0xf] %v7762_v34  ;;  %v7963_v25 = vadd.f32 %v7777_v24, %v1860_v2  ;;  %v7971_v7 = vsel %vm6319_vm2, %v4688_v56, %v777_v29  ;;  %v5282_v39 = vrot.slane %v7082_v26, 10  ;;  %v944_v26 = vrot.slane %v7602_v40, 6 }
 0x10e   : > { %2087 = vmatmul.bf16.vlgmr.msra.gmra.mxu0 %v4754_v35  ;;  %2499 = vst [vmem:[#allocation3 + $0x110] sm:$0xf] %v7783_v19  ;;  %v4850_v15 = vor.u32 %v5837_v33, %v4847_v36  ;;  %v5306_v19 = vrot.slane %v7932_v18, 9  ;;  %v939_v45 = vrot.slane %v937_v62, 4  ;;  %v9491_v35 = vld [vmem:[#allocation29_spill] sm:$0xff]  ;;  %v6117_v33 = vld [vmem:[%s9292_s1 + $0x1f0] sm:$0xff] }
 0x10f   : > { %v4925_v34 = vld [vmem:[#allocation3 + $0x180] sm:$0xf]  ;;  %919 = vst [vmem:[#allocation3 + $0x184] sm:$0xf] %v893_v5  ;;  %3306 = vmatpush.bf16.msra.mxu0 %v6116_v50  ;;  %v940_v52 = vrot.slane %v9491_v35, 6  ;;  %v2635_v36 = vrot.slane %v7519_v41, 6 }
 0x110   : > { %2533 = vst [vmem:[#allocation3 + $0x180] sm:$0xf] %v7932_v18  ;;  %1985 = vmatmul.bf16.gmra.mxu1 %v4850_v15  ;;  %v2591_v31 = vsel %vm6608_vm5, %v5306_v19, %v2590_v28  ;;  %v1822_v24 = vpop.f32.mrf.mxu1  ;;  %v6118_v50 = vld [vmem:[%s9292_s1 + $0x1e8] sm:$0xff] }
 0x111   : > { %v5860_v57 = vld [vmem:[#allocation3 + $0x1a0] sm:$0xf0]  ;;  %920 = vst [vmem:[#allocation3 + $0x1a8] sm:$0xf] %v896_v48  ;;  %v1823_v5 = vadd.f32 %v1822_v24, %v7745_v6  ;;  %v7987_v28 = vpop.f32.mrf.mxu2  ;;  %v7995_v2 = vpop.f32.mrf.mxu3  ;;  %v2637_v15 = vrot.slane %v2635_v36, 4 }
 0x112   : > { %2534 = vst [vmem:[#allocation3 + $0x1a4] sm:$0xf] %v7939_v58  ;;  %v4926_v48 = vor.u32 %v5860_v57, %v4925_v34  ;;  %v5309_v34 = vrot.slane %v7580_v14, 10 }
 0x113   : > { %977 = vst [vmem:[#allocation3 + $0x68] sm:$0xf] %v7752_v0  ;;  %3307 = vmatpush.bf16.msra.mxu0 %v6117_v33  ;;  %v938_v0 = vsel %vm6319_vm2, %v4715_v47, %v937_v62  ;;  %v1862_v6 = vadd.f32 %v7818_v23, %v1823_v5  ;;  %v2475_v62 = vrot.slane %v7109_v63, 6  ;;  %v9492_v63 = vld [vmem:[#allocation36_spill] sm:$0xff] }
 0x114   : > { %978 = vst [vmem:[#allocation3 + $0x8c] sm:$0xf] %v7792_v43  ;;  %v2594_v43 = vsel %vm6608_vm5, %v2592_v55, %v2593_v13  ;;  %v780_v19 = vrot.slane %v9492_v63, 6  ;;  %v2638_v55 = vrot.slane %v7561_v1, 6  ;;  %v946_v13 = vrot.slane %v944_v26, 4  ;;  %v6119_v1 = vld [vmem:[%s9292_s1 + $0x1e0] sm:$0xff] }
 0x115   : > { %802 = vst [vmem:[#allocation3 + $0x134] sm:$0xf] %v7884_v9  ;;  %v941_v9 = vsel %vm6319_vm2, %v939_v45, %v940_v52  ;;  %v8002_v23 = vadd.f32 %v7839_v53, %v1862_v6  ;;  %v8007_v57 = vsel %vm6319_vm2, %v5282_v39, %v2475_v62  ;;  %v8012_v53 = vpop.f32.mrf.mxu0  ;;  %v8030_v39 = vld [vmem:[%s6287_s6 + $0x9c] sm:$0xf]  ;;  %v9494_v63 = vld [vmem:[#allocation20_spill] sm:$0xff] }
 0x116   : > { %v5856_v56 = vld [vmem:[#allocation3 + $0x184] sm:$0xf]  ;;  %803 = vst [vmem:[#allocation3 + $0x158] sm:$0xf] %v7889_v46  ;;  %v779_v46 = vrot.slane %v777_v29, 4  ;;  %v4716_v29 = vrot.slane %v7654_v38, 10 }
 0x117   : > { %2617 = vst [vmem:[#allocation3 + $0x184] sm:$0xf] %v2591_v31  ;;  %3308 = vmatpush.bf16.msra.mxu0 %v6118_v50  ;;  %v2642_v38 = vrot.slane %v7703_v59, 6  ;;  %v9493_v31 = vld [vmem:[#allocation26_spill] sm:$0xff]  ;;  %v6120_v50 = vld [vmem:[%s9292_s1 + $0x1d8] sm:$0xff] }
 0x118   : > { %v4927_v41 = vld [vmem:[#allocation3 + $0x1a4] sm:$0xf0]  ;;  %979 = vst [vmem:[#allocation3 + $0xb0] sm:$0xf] %v938_v0  ;;  %2034 = vmatmul.bf16.gmra.mxu2 %v4926_v48  ;;  %v1825_v35 = vpop.f32.mrf.mxu1  ;;  %v947_v24 = vrot.slane %v9493_v31, 6  ;;  %v781_v0 = vsel %vm6319_vm2, %v779_v46, %v780_v19  ;;  %v2477_v46 = vrot.slane %v2475_v62, 4 }
 0x119   : > { %2618 = vst [vmem:[#allocation3 + $0x1a8] sm:$0xf] %v2594_v43  ;;  %v4930_v40 = vor.u32 %v5856_v56, %v4927_v41  ;;  %v8024_v5 = vpop.f32.mrf.mxu2  ;;  %v8033_v56 = vld [vmem:[%s6287_s6 + $0xa0] sm:$0xf]  ;;  %v8044_v48 = vpop.f32.mrf.mxu3  ;;  %v2478_v19 = vrot.slane %v9494_v63, 6  ;;  %v6121_v31 = vld [vmem:[%s9292_s1 + $0x1d0] sm:$0xff] }
 0x11a   : > { %v4789_v47 = vld [vmem:[#allocation3 + $0x68] sm:$0xf]  ;;  %980 = vst [vmem:[#allocation3 + $0xd4] sm:$0xf] %v941_v9  ;;  %v5542_v9 = vrot.slane %v8030_v39, 9  ;;  %v3450_v41 = vrot.slane %v8033_v56, 5 }
 0x11b   : > { %v5825_v14 = vld [vmem:[#allocation3 + $0x88] sm:$0xf0]  ;;  %2675 = vst [vmem:[#allocation3 + $0x68] sm:$0xf] %v7851_v61  ;;  %3309 = vmatpush.bf16.msra.mxu0 %v6119_v1  ;;  %v1826_v61 = vadd.f32 %v1825_v35, %v7825_v42  ;;  %v2644_v35 = vrot.slane %v2642_v38, 4 }
 0x11c   : > { %v4790_v45 = vor.u32 %v5825_v14, %v4789_v47  ;;  %2676 = vst [vmem:[#allocation3 + $0x8c] sm:$0xf] %v7862_v4  ;;  %v5846_v52 = vld [vmem:[#allocation3 + $0x134] sm:$0xf]  ;;  %v2636_v4 = vsel %vm6319_vm2, %v5309_v34, %v2635_v36  ;;  %2073 = vmatmul.bf16.gmra.mxu3 %v4930_v40  ;;  %v945_v36 = vsel %vm6319_vm2, %v4716_v29, %v944_v26  ;;  %v5546_v34 = vrot.slane %v8030_v39, 10  ;;  %v9495_v40 = vld [vmem:[#allocation11_spill] sm:$0xff] }
 0x11d   : > { %v4883_v33 = vld [vmem:[#allocation3 + $0x154] sm:$0xf0]  ;;  %2500 = vst [vmem:[#allocation3 + $0x134] sm:$0xf] %v7909_v21  ;;  %v1865_v42 = vadd.f32 %v7894_v60, %v1826_v61  ;;  %v2639_v21 = vsel %vm6319_vm2, %v2637_v15, %v2638_v55  ;;  %v948_v26 = vsel %vm6319_vm2, %v946_v13, %v947_v24  ;;  %v951_v47 = vrot.slane %v9495_v40, 6  ;;  %v9497_v24 = vld [vmem:[#allocation24_spill] sm:$0xff] }
 0x11e   : > { %2092 = vmatmul.bf16.gmra.mxu0 %v4790_v45  ;;  %2501 = vst [vmem:[#allocation3 + $0x158] sm:$0xf] %v7913_v3  ;;  %v5534_v3 = vld [vmem:[%s6287_s6 + $0xa4] sm:$0x3]  ;;  %v4886_v6 = vor.u32 %v5846_v52, %v4883_v33  ;;  %v3451_v55 = vsel %vm6608_vm5, %v5542_v9, %v3450_v41  ;;  %v3452_v62 = vrot.slane %v3450_v41, 4  ;;  %v3494_v29 = vrot.slane %v8033_v56, 6  ;;  %v1932_v33 = vpop.f32.mrf.mxu0 }
 0x11f   : > { %v8036_v43 = vld [vmem:[#allocation3 + $0xb0] sm:$0xf]  ;;  %804 = vst [vmem:[#allocation3 + $0x17c] sm:$0xf] %v7971_v7  ;;  %v3453_v60 = vrot.slane %v5534_v3, 5  ;;  %3310 = vmatpush.bf16.msra.mxu0 %v6120_v50  ;;  %v8057_v15 = vadd.f32 %v7903_v32, %v1865_v42  ;;  %v3497_v14 = vrot.slane %v5534_v3, 6  ;;  %v8082_v9 = vadd.f32 %v1932_v33, %v7857_v44 }
 0x120   : > { %2677 = vst [vmem:[#allocation3 + $0xb0] sm:$0xf] %v2636_v4  ;;  %v9496_v45 = vld [vmem:[#allocation33_spill] sm:$0xff]  ;;  %1990 = vmatmul.bf16.gmra.mxu1 %v4886_v6  ;;  %v1827_v32 = vpop.f32.mrf.mxu1  ;;  %v8067_v52 = vld [vmem:[#allocation3 + $0x4c] sm:$0xf]  ;;  %v2645_v61 = vrot.slane %v9497_v24, 6  ;;  %v3495_v42 = vsel %vm6319_vm2, %v5546_v34, %v3494_v29 }
 0x121   : > { %v8051_v7 = vld [vmem:[#allocation3 + $0xd0] sm:$0xf0]  ;;  %805 = vst [vmem:[#allocation3 + $0x1a0] sm:$0xf] %v781_v0  ;;  %v5310_v13 = vrot.slane %v9496_v45, 10  ;;  %v3454_v1 = vsel %vm6608_vm5, %v3452_v62, %v3453_v60  ;;  %v1828_v4 = vadd.f32 %v1827_v32, %v7915_v37  ;;  %v953_v6 = vrot.slane %v951_v47, 4  ;;  %v8084_v41 = vpop.f32.mrf.mxu2  ;;  %v8100_v45 = vpop.f32.mrf.mxu3 }
 0x122   : > { %2678 = vst [vmem:[#allocation3 + $0xd4] sm:$0xf] %v2639_v21  ;;  %v8076_v0 = vld [vmem:[#allocation3 + $0x6c] sm:$0xf0]  ;;  %v3496_v21 = vrot.slane %v3494_v29, 4  ;;  %v2479_v37 = vsel %vm6319_vm2, %v2477_v46, %v2478_v19  ;;  %v9500_v63 = vld [vmem:[#allocation19_spill] sm:$0xff]  ;;  %v4826_v59 = vor.u32 %v8051_v7, %v8036_v43 }
 0x123   : > { %981 = vst [vmem:[#allocation3 + $0xf8] sm:$0xf] %v945_v36  ;;  %3311 = vmatpush.bf16.msra.mxu0 %v6121_v31  ;;  %v9498_v36 = vld [vmem:[#allocation13_spill] sm:$0xff]  ;;  %v9499_v50 = vld [vmem:[#allocation28_spill] sm:$0xff]  ;;  %v9501_v40 = vld [vmem:[#allocation18_spill] sm:$0xff]  ;;  %v2649_v29 = vrot.slane %v7830_v20, 6  ;;  %v2643_v19 = vsel %vm6319_vm2, %v5310_v13, %v2642_v38 }
 0x124   : > { %982 = vst [vmem:[#allocation3 + $0x11c] sm:$0xf] %v948_v26  ;;  %v4717_v3 = vrot.slane %v9498_v36, 10  ;;  %v954_v26 = vrot.slane %v9499_v50, 6  ;;  %v5320_v34 = vor.u32 %v9501_v40, %v9500_v63  ;;  %v8095_v62 = vld [vmem:[#allocation3 + $0x50] sm:$0xf]  ;;  %v3498_v44 = vsel %vm6319_vm2, %v3496_v21, %v3497_v14 }
 0x125   : > { %3479 = vst [vmem:[#allocation3 + $0x4c] sm:$0xf] %v3451_v55  ;;  %v1867_v55 = vadd.f32 %v7929_v22, %v1828_v4  ;;  %v6122_v22 = vld [vmem:[%s9292_s1 + $0x1c8] sm:$0xff]  ;;  %v8113_v20 = vld [vmem:[#allocation3 + $0x70] sm:$0xf0]  ;;  %v9503_v38 = vld [vmem:[#allocation9_spill] sm:$0xff] }
 0x126   : > { %v8086_v60 = vld [vmem:[#allocation3 + $0x17c] sm:$0xf]  ;;  %3480 = vst [vmem:[#allocation3 + $0x70] sm:$0xf] %v3454_v1  ;;  %v9502_v32 = vld [vmem:[#allocation8_spill] sm:$0xff]  ;;  %v952_v31 = vsel %vm6319_vm2, %v4717_v3, %v951_v47  ;;  %v6124_v47 = vld [vmem:[%s9292_s1 + $0x1c0] sm:$0xff] }
 0x127   : > { %2502 = vst [vmem:[#allocation3 + $0x17c] sm:$0xf] %v8007_v57  ;;  %3312 = vmatpush.bf16.msra.mxu0 %v6122_v22  ;;  %v2646_v57 = vsel %vm6319_vm2, %v2644_v35, %v2645_v61  ;;  %v8116_v14 = vadd.f32 %v7943_v51, %v1867_v55  ;;  %v5324_v13 = vor.u32 %v9503_v38, %v9502_v32  ;;  %v5311_v35 = vrot.slane %v7821_v27, 10  ;;  %v6123_v7 = vld [vmem:[%s9292_s1 + $0x38] sm:$0xff] }
 0x128   : > { %v8102_v46 = vld [vmem:[#allocation3 + $0x19c] sm:$0xf0]  ;;  %3523 = vst [vmem:[#allocation3 + $0x50] sm:$0xf] %v3495_v42  ;;  %3080 = vmatmul.bf16.vlgmr.msra.gmra.mxu2 %v5320_v34  ;;  %v955_v51 = vsel %vm6319_vm2, %v953_v6, %v954_v26  ;;  %v2651_v61 = vrot.slane %v2649_v29, 4  ;;  %v1830_v43 = vpop.f32.mrf.mxu1  ;;  %v2652_v33 = vrot.slane %v7846_v8, 6  ;;  %v1934_v42 = vpop.f32.mrf.mxu0 }
 0x129   : > { %2503 = vst [vmem:[#allocation3 + $0x1a0] sm:$0xf] %v2479_v37  ;;  %4003 = vmatpush.bf16.msra.mxu2 %v6123_v7  ;;  %v4718_v27 = vrot.slane %v7899_v12, 10  ;;  %v958_v4 = vrot.slane %v7876_v10, 6  ;;  %v1831_v21 = vadd.f32 %v1830_v43, %v7960_v11  ;;  %v8142_v36 = vadd.f32 %v1934_v42, %v7921_v16  ;;  %v8144_v3 = vpop.f32.mrf.mxu2  ;;  %v8147_v6 = vld [vmem:[%s6287_s6 + $0xa8] sm:$0xf]  ;;  %v8166_v55 = vpop.f32.mrf.mxu3 }
 0x12a   : > { %v8122_v1 = vld [vmem:[#allocation3 + $0xf8] sm:$0xf]  ;;  %3524 = vst [vmem:[#allocation3 + $0x74] sm:$0xf] %v3498_v44  ;;  %v8150_v37 = vld [vmem:[%s6287_s6 + $0xac] sm:$0xf]  ;;  %v4922_v10 = vor.u32 %v8086_v60, %v8102_v46 }
 0x12b   : > { %v8126_v24 = vld [vmem:[#allocation3 + $0x118] sm:$0xf0]  ;;  %2679 = vst [vmem:[#allocation3 + $0xf8] sm:$0xf] %v2643_v19  ;;  %3313 = vmatpush.bf16.msra.mxu0 %v6124_v47  ;;  %v1870_v8 = vadd.f32 %v7987_v28, %v1831_v21  ;;  %v5537_v12 = vld [vmem:[%s6287_s6 + $0xb0] sm:$0x3]  ;;  %v959_v42 = vsel %vm6319_vm2, %v4718_v27, %v958_v4 }
 0x12c   : > { %2680 = vst [vmem:[#allocation3 + $0x11c] sm:$0xf] %v2646_v57  ;;  %3119 = vmatmul.bf16.vlgmr.msra.gmra.mxu3 %v5324_v13  ;;  %v5543_v11 = vrot.slane %v8147_v6, 9  ;;  %v3457_v50 = vrot.slane %v8150_v37, 5  ;;  %v6125_v16 = vld [vmem:[%s9292_s1 + $0x78] sm:$0xff]  ;;  %v3460_v26 = vrot.slane %v5537_v12, 5 }
 0x12d   : > { %983 = vst [vmem:[#allocation3 + $0x140] sm:$0xf] %v952_v31  ;;  %4032 = vmatpush.bf16.msra.mxu3 %v6125_v16  ;;  %v5547_v63 = vrot.slane %v8147_v6, 10  ;;  %v3501_v40 = vrot.slane %v8150_v37, 6  ;;  %v3504_v34 = vrot.slane %v5537_v12, 6  ;;  %v6126_v28 = vld [vmem:[%s9292_s1 + $0x30] sm:$0xff]  ;;  %v8173_v22 = vadd.f32 %v7995_v2, %v1870_v8 }
 0x12e   : > { %2097 = vmatmul.bf16.gmra.mxu0 %v4826_v59  ;;  %984 = vst [vmem:[#allocation3 + $0x164] sm:$0xf] %v955_v51  ;;  %4004 = vmatpush.bf16.msra.mxu2 %v6126_v28  ;;  %v960_v60 = vrot.slane %v958_v4, 4  ;;  %v8168_v44 = vld [vmem:[#allocation3 + $0x94] sm:$0xf]  ;;  %v3458_v46 = vsel %vm6608_vm5, %v5543_v11, %v3457_v50  ;;  %v3459_v19 = vrot.slane %v3457_v50, 4  ;;  %v2650_v59 = vsel %vm6319_vm2, %v5311_v35, %v2649_v29 }
 0x12f   : > { %v961_v57 = vrot.slane %v7918_v54, 6  ;;  %3481 = vst [vmem:[#allocation3 + $0x94] sm:$0xf] %v3458_v46  ;;  %v8178_v32 = vld [vmem:[#allocation3 + $0x98] sm:$0xf]  ;;  %v3502_v38 = vsel %vm6319_vm2, %v5547_v63, %v3501_v40  ;;  %v3503_v13 = vrot.slane %v3501_v40, 4  ;;  %v2653_v31 = vsel %vm6319_vm2, %v2651_v61, %v2652_v33 }
 0x130   : > { %v8184_v51 = vld [vmem:[#allocation3 + $0xb4] sm:$0xf0]  ;;  %v3461_v2 = vsel %vm6608_vm5, %v3459_v19, %v3460_v26  ;;  %3525 = vst [vmem:[#allocation3 + $0x98] sm:$0xf] %v3502_v38  ;;  %v6127_v54 = vld [vmem:[%s9292_s1 + $0x70] sm:$0xff]  ;;  %1995 = vmatmul.bf16.gmra.mxu1 %v4922_v10  ;;  %v1832_v29 = vpop.f32.mrf.mxu1  ;;  %v6128_v61 = vld [vmem:[%s9292_s1 + $0x28] sm:$0xff]  ;;  %v5356_v12 = vor.u32 %v8067_v52, %v8076_v0  ;;  %v1937_v50 = vpop.f32.mrf.mxu0  ;;  %v4862_v16 = vor.u32 %v8126_v24, %v8122_v1 }
 0x131   : > { %4033 = vmatpush.bf16.msra.mxu3 %v6127_v54  ;;  %3482 = vst [vmem:[#allocation3 + $0xb8] sm:$0xf] %v3461_v2  ;;  %v3505_v43 = vsel %vm6319_vm2, %v3503_v13, %v3504_v34  ;;  %v2656_v7 = vrot.slane %v7939_v58, 6  ;;  %v1833_v47 = vadd.f32 %v1832_v29, %v8012_v53  ;;  %v8204_v21 = vpop.f32.mrf.mxu2  ;;  %v8206_v8 = vld [vmem:[#allocation3 + $0xb8] sm:$0xf0]  ;;  %v962_v10 = vsel %vm6319_vm2, %v960_v60, %v961_v57  ;;  %v6129_v53 = vld [vmem:[%s9292_s1 + $0x68] sm:$0xff] }
 0x132   : > { %4005 = vmatpush.bf16.msra.mxu2 %v6128_v61  ;;  %3526 = vst [vmem:[#allocation3 + $0xbc] sm:$0xf] %v3505_v43  ;;  %v6130_v27 = vld [vmem:[%s9292_s1 + $0x20] sm:$0xff]  ;;  %v5312_v4 = vrot.slane %v7932_v18, 10  ;;  %v8225_v0 = vadd.f32 %v1937_v50, %v7963_v25  ;;  %v5360_v26 = vor.u32 %v8113_v20, %v8095_v62  ;;  %v8231_v18 = vpop.f32.mrf.mxu3  ;;  %v8233_v63 = vld [vmem:[#allocation3 + $0x48] sm:$0xf] }
 0x133   : > { %v1872_v58 = vadd.f32 %v8024_v5, %v1833_v47  ;;  %985 = vst [vmem:[#allocation3 + $0x188] sm:$0xf] %v959_v42  ;;  %v2658_v11 = vrot.slane %v2656_v7, 4  ;;  %v2659_v5 = vrot.slane %v7951_v49, 6  ;;  %v6131_v49 = vld [vmem:[%s9292_s1 + $0x60] sm:$0xff]  ;;  %v6132_v62 = vld [vmem:[%s9292_s1 + $0x18] sm:$0xff] }
 0x134   : > { %v8191_v35 = vld [vmem:[#allocation3 + $0x140] sm:$0xf]  ;;  %986 = vst [vmem:[#allocation3 + $0x1ac] sm:$0xf] %v962_v10  ;;  %v9504_v20 = vld [vmem:[#allocation25_spill] sm:$0xff]  ;;  %v2657_v24 = vsel %vm6319_vm2, %v5312_v4, %v2656_v7  ;;  %v9505_v13 = vld [vmem:[#allocation4_spill] sm:$0xff] }
 0x135   : > { %v8200_v33 = vld [vmem:[#allocation3 + $0x160] sm:$0xf0]  ;;  %2681 = vst [vmem:[#allocation3 + $0x140] sm:$0xf] %v2650_v59  ;;  %4034 = vmatpush.bf16.msra.mxu3 %v6129_v53  ;;  %v8221_v52 = vadd.f32 %v8044_v48, %v1872_v58  ;;  %v8238_v48 = vld [vmem:[#allocation3 + $0x68] sm:$0xf0]  ;;  %v2660_v40 = vsel %vm6319_vm2, %v2658_v11, %v2659_v5 }
 0x136   : > { %2682 = vst [vmem:[#allocation3 + $0x164] sm:$0xf] %v2653_v31  ;;  %4006 = vmatpush.bf16.msra.mxu2 %v6130_v27  ;;  %v8251_v34 = vld [vmem:[%s6287_s6 + $0xb4] sm:$0xf]  ;;  %v5540_v28 = vld [vmem:[%s6287_s6 + $0xbc] sm:$0x3] }
 0x137   : > { %3423 = vst [vmem:[#allocation3 + $0x48] sm:$0xf] %v8030_v39  ;;  %v8254_v39 = vld [vmem:[%s6287_s6 + $0xb8] sm:$0xf]  ;;  %v5544_v19 = vrot.slane %v8251_v34, 9  ;;  %v3467_v57 = vrot.slane %v5540_v28, 5 }
 0x138   : > { %3085 = vmatmul.bf16.gmra.mxu2 %v5356_v12  ;;  %v1835_v25 = vpop.f32.mrf.mxu1  ;;  %3424 = vst [vmem:[#allocation3 + $0x6c] sm:$0xf] %v8033_v56  ;;  %v3464_v56 = vrot.slane %v8254_v39, 5  ;;  %v6133_v59 = vld [vmem:[%s9292_s1 + $0x58] sm:$0xff]  ;;  %v3508_v29 = vrot.slane %v8254_v39, 6  ;;  %v6134_v43 = vld [vmem:[%s9292_s1 + $0x10] sm:$0xff]  ;;  %v1939_v61 = vpop.f32.mrf.mxu0 }
 0x139   : > { %4035 = vmatpush.bf16.msra.mxu3 %v6131_v49  ;;  %v1836_v1 = vadd.f32 %v1835_v25, %v9504_v20  ;;  %v8265_v38 = vpop.f32.mrf.mxu2  ;;  %v9506_v31 = vld [vmem:[#allocation5_spill] sm:$0xff]  ;;  %v3511_v10 = vrot.slane %v5540_v28, 6  ;;  %v8281_v12 = vadd.f32 %v1939_v61, %v8002_v23  ;;  %v8283_v58 = vld [vmem:[#allocation3 + $0xe0] sm:$0xf]  ;;  %v6135_v23 = vld [vmem:[%s9292_s1 + $0x50] sm:$0xff] }
 0x13a   : > { %4007 = vmatpush.bf16.msra.mxu2 %v6132_v62  ;;  %v8258_v46 = vld [vmem:[#allocation3 + $0x188] sm:$0xf]  ;;  %v5316_v2 = vor.u32 %v9506_v31, %v9505_v13  ;;  %v8276_v7 = vld [vmem:[#allocation3 + $0xdc] sm:$0xf]  ;;  %v3465_v47 = vsel %vm6608_vm5, %v5544_v19, %v3464_v56  ;;  %v3466_v42 = vrot.slane %v3464_v56, 4  ;;  %v3510_v27 = vrot.slane %v3508_v29, 4  ;;  %v1920_v49 = vpop.f32.mrf.mxu3 }
 0x13b   : > { %v1875_v60 = vadd.f32 %v8084_v41, %v1836_v1  ;;  %v8269_v54 = vld [vmem:[#allocation3 + $0x1a8] sm:$0xf0]  ;;  %2683 = vst [vmem:[#allocation3 + $0x188] sm:$0xf] %v2657_v24  ;;  %v5548_v41 = vrot.slane %v8251_v34, 10  ;;  %v9507_v25 = vld [vmem:[#allocation37_spill] sm:$0xff]  ;;  %v5392_v1 = vor.u32 %v8168_v44, %v8184_v51  ;;  %v4898_v51 = vor.u32 %v8200_v33, %v8191_v35 }
 0x13c   : > { %3124 = vmatmul.bf16.gmra.mxu3 %v5360_v26  ;;  %2684 = vst [vmem:[#allocation3 + $0x1ac] sm:$0xf] %v2660_v40  ;;  %v8290_v11 = vld [vmem:[#allocation3 + $0xfc] sm:$0xf0]  ;;  %v3468_v50 = vsel %vm6608_vm5, %v3466_v42, %v3467_v57  ;;  %v6136_v26 = vld [vmem:[%s9292_s1 + $0x8] sm:$0xff]  ;;  %v8308_v20 = vld [vmem:[%s9292_s1 + $0x238] sm:$0xff]  ;;  %v5396_v56 = vor.u32 %v8206_v8, %v8178_v32  ;;  %v5352_v8 = vor.u32 %v8238_v48, %v8233_v63 }
 0x13d   : > { %4036 = vmatpush.bf16.msra.mxu3 %v6133_v59  ;;  %3483 = vst [vmem:[#allocation3 + $0xdc] sm:$0xf] %v3465_v47  ;;  %v3509_v53 = vsel %vm6319_vm2, %v5548_v41, %v3508_v29  ;;  %v8288_v4 = vadd.f32 %v8100_v45, %v1875_v60  ;;  %v3512_v45 = vsel %vm6319_vm2, %v3510_v27, %v3511_v10  ;;  %v6138_v40 = vld [vmem:[%s9292_s1 + $0x48] sm:$0xff]  ;;  %v6139_v28 = vld [vmem:[%s9292_s1] sm:$0xff]  ;;  %v8326_v44 = vld [vmem:[%s9292_s1 + $0x230] sm:$0xff] }
 0x13e   : > { %2102 = vmatmul.bf16.gmra.mxu0 %v4862_v16  ;;  %4008 = vmatpush.bf16.msra.mxu2 %v6134_v43  ;;  %3527 = vst [vmem:[#allocation3 + $0xe0] sm:$0xf] %v3509_v53  ;;  %v8297_v16 = vld [vmem:[#allocation3 + $0x100] sm:$0xf0]  ;;  %v5884_v59 = vld [vmem:[#allocation3 + $0xb0] sm:$0xf0]  ;;  %v5428_v47 = vor.u32 %v8276_v7, %v8290_v11  ;;  %v4934_v7 = vor.u32 %v8269_v54, %v8258_v46 }
 0x13f   : > { %3484 = vst [vmem:[#allocation3 + $0x100] sm:$0xf] %v3468_v50  ;;  %v6141_v13 = vld [vmem:[%s9292_s1 + $0x40] sm:$0xff]  ;;  %v9508_v31 = vld [vmem:[#allocation23_spill] sm:$0xff]  ;;  %v9509_v61 = vld [vmem:[#allocation21_spill] sm:$0xff] }
 0x140   : > { %3041 = vmatmul.bf16.vlgmr.msrb.gmra.mxu1 %v5316_v2  ;;  %v1837_v5 = vpop.f32.mrf.mxu1  ;;  %3528 = vst [vmem:[#allocation3 + $0x104] sm:$0xf] %v3512_v45  ;;  %v1942_v60 = vpop.f32.mrf.mxu0  ;;  %v8347_v32 = vld [vmem:[%s9292_s1 + $0x228] sm:$0xff]  ;;  %v8359_v41 = vld [vmem:[%s9292_s1 + $0x220] sm:$0xff]  ;;  %v8384_v53 = vld [vmem:[%s9292_s1 + $0x210] sm:$0xff] }
 0x141   : > { %4037 = vmatpush.bf16.msra.mxu3 %v6135_v23  ;;  %v1838_v62 = vadd.f32 %v1837_v5, %v9507_v25  ;;  %3345 = vmatpush.bf16.msrb.mxu1 %v8308_v20  ;;  %v8336_v57 = vpop.f32.mrf.mxu2  ;;  %3426 = vst [vmem:[#allocation3 + $0xb4] sm:$0xf] %v8150_v37  ;;  %v8394_v11 = vld [vmem:[#allocation3 + $0xd8] sm:$0xf]  ;;  %v8396_v50 = vld [vmem:[#allocation3 + $0xf8] sm:$0xf0] }
 0x142   : > { %4009 = vmatpush.bf16.msra.mxu2 %v6136_v26  ;;  %9510 = vst [vmem:[#allocation27_spill] sm:$0xff] %v8384_v53  ;;  %v8406_v54 = vld [vmem:[#allocation3 + $0x54] sm:$0xf]  ;;  %v8411_v23 = vld [vmem:[#allocation3 + $0x74] sm:$0xf0]  ;;  %v8421_v45 = vld [vmem:[%s9292_s1 + $0x200] sm:$0xff] }
 0x143   : > { %v1877_v24 = vadd.f32 %v8144_v3, %v1838_v62  ;;  %v8330_v3 = vadd.f32 %v1942_v60, %v8057_v15  ;;  %3427 = vst [vmem:[#allocation3 + $0xd8] sm:$0xf] %v8251_v34  ;;  %v8414_v5 = vld [vmem:[%s6287_s6 + $0xb8] sm:$0xf]  ;;  %v5898_v62 = vld [vmem:[#allocation3 + $0x124] sm:$0xf] }
 0x144   : > { %3428 = vst [vmem:[#allocation3 + $0xfc] sm:$0xf] %v8254_v39  ;;  %v5467_v60 = vld [vmem:[#allocation3 + $0x128] sm:$0xf] }
 0x145   : > { %4038 = vmatpush.bf16.msra.mxu3 %v6138_v40  ;;  %v8321_v19 = vadd.f32 %v8166_v55, %v1877_v24  ;;  %3346 = vmatpush.bf16.msrb.mxu1 %v8326_v44  ;;  %v5387_v55 = vld [vmem:[#allocation3 + $0x90] sm:$0xf]  ;;  %3545 = vst [vmem:[#allocation3 + $0x78] sm:$0xf] %v8414_v5 }
 0x146   : > { %4010 = vmatpush.bf16.msra.mxu2 %v6139_v28  ;;  %3425 = vst [vmem:[#allocation3 + $0x90] sm:$0xf] %v8147_v6  ;;  %v2049_v6 = vpop.f32.mrf.mxu3  ;;  %v5388_v34 = vor.u32 %v5884_v59, %v5387_v55  ;;  %v9513_v55 = vld [vmem:[#allocation6_spill] sm:$0xff] }
 0x147   : > { %9512 = vst [vmem:[#allocation30_spill] sm:$0xff] %v8421_v45  ;;  %v9514_v59 = vrot.slane %v9513_v55, 6 }
 0x148   : > { %3090 = vmatmul.bf16.gmra.mxu2 %v5392_v1  ;;  %v1840_v15 = vpop.f32.mrf.mxu1  ;;  %v1944_v2 = vpop.f32.mrf.mxu0  ;;  %v5461_v1 = vld [vmem:[#allocation3 + $0x144] sm:$0xf0] }
 0x149   : > { %4039 = vmatpush.bf16.msra.mxu3 %v6141_v13  ;;  %v1841_v35 = vadd.f32 %v1840_v15, %v9508_v31  ;;  %3347 = vmatpush.bf16.msrb.mxu1 %v8347_v32  ;;  %v8363_v29 = vadd.f32 %v1944_v2, %v8116_v14  ;;  %v8365_v43 = vpop.f32.mrf.mxu2  ;;  %v5464_v28 = vor.u32 %v5898_v62, %v5461_v1  ;;  %v3610_v13 = vrot.slane %v9514_v59, 4  ;;  %v5503_v59 = vld [vmem:[#allocation3 + $0x170] sm:$0xf] }
 0x14b   : > { %v1880_v33 = vadd.f32 %v8204_v21, %v1841_v35 }
 0x14c   : > { %3129 = vmatmul.bf16.gmra.mxu3 %v5396_v56 }
 0x14d   : > { %v8354_v37 = vadd.f32 %v8231_v18, %v1880_v33  ;;  %3348 = vmatpush.bf16.msrb.mxu1 %v8359_v41  ;;  %v8371_v18 = vld [vmem:[%s9292_s1 + $0x218] sm:$0xff]  ;;  %v9515_v33 = vld [vmem:[#allocation12_spill] sm:$0xff] }
 0x14e   : > { %2107 = vmatmul.bf16.gmra.mxu0 %v4898_v51  ;;  %v8374_v48 = vpop.f32.mrf.mxu3  ;;  %v5903_v51 = vld [vmem:[#allocation3 + $0x148] sm:$0xf0] }
 0x150   : > { %3046 = vmatmul.bf16.gmra.mxu1 %v5352_v8  ;;  %v1842_v21 = vpop.f32.mrf.mxu1  ;;  %v1947_v42 = vpop.f32.mrf.mxu0  ;;  %v9516_v8 = vld [vmem:[#allocation10_spill] sm:$0xff] }
 0x151   : > { %v1843_v63 = vadd.f32 %v1842_v21, %v9509_v61  ;;  %3349 = vmatpush.bf16.msrb.mxu1 %v8371_v18  ;;  %v8388_v27 = vadd.f32 %v1947_v42, %v8173_v22  ;;  %v8403_v22 = vld [vmem:[%s9292_s1 + $0x208] sm:$0xff]  ;;  %v2015_v46 = vpop.f32.mrf.mxu2  ;;  %v5328_v2 = vor.u32 %v9516_v8, %v9515_v33  ;;  %v8457_v42 = vld [vmem:[#allocation3 + $0xbc] sm:$0xf0] }
 0x152   : > { %9511 = vst [vmem:[#allocation17_spill] sm:$0xff] %v8403_v22  ;;  %v9517_v61 = vld [vmem:[#allocation7_spill] sm:$0xff]  ;;  %v6152_v8 = vld [vmem:[%s9292_s1 + $0x120] sm:$0xff] }
 0x153   : > { %v1882_v14 = vadd.f32 %v8265_v38, %v1843_v63  ;;  %v5432_v38 = vor.u32 %v8297_v16, %v8283_v58  ;;  %v8409_v58 = vld [vmem:[%s6287_s6 + $0xb4] sm:$0xf] }
 0x154   : > { %3544 = vst [vmem:[#allocation3 + $0x54] sm:$0xf] %v8409_v58 }
 0x155   : > { %v8379_v10 = vadd.f32 %v1920_v49, %v1882_v14  ;;  %3350 = vmatpush.bf16.msrb.mxu1 %v8384_v53  ;;  %v8453_v14 = vld [vmem:[%s6287_s6 + $0xc0] sm:$0xf]  ;;  %v8614_v53 = vld [vmem:[#allocation3 + $0xc4] sm:$0xf0] }
 0x156   : > { %v2054_v39 = vpop.f32.mrf.mxu3 }
 0x158   : > { %3095 = vmatmul.bf16.gmra.mxu2 %v5428_v47  ;;  %v1949_v16 = vpop.f32.mrf.mxu0  ;;  %v1971_v49 = vpop.f32.mrf.mxu1  ;;  %v8450_v47 = vld [vmem:[#allocation3 + $0x9c] sm:$0xf] }
 0x159   : > { %3351 = vmatpush.bf16.msrb.mxu1 %v8403_v22  ;;  %v8425_v26 = vadd.f32 %v1949_v16, %v8221_v52  ;;  %v1972_v25 = vadd.f32 %v1971_v49, %v8082_v9  ;;  %v8429_v40 = vpop.f32.mrf.mxu2  ;;  %v6148_v9 = vld [vmem:[%s6287_s6 + $0xb0] sm:$0x3]  ;;  %3546 = vst [vmem:[#allocation3 + $0x9c] sm:$0xf] %v8453_v14  ;;  %v8469_v16 = vld [vmem:[#allocation3 + $0x34] sm:$0xf0] }
 0x15a   : > { %v3611_v31 = vrot.slane %v6148_v9, 6 }
 0x15b   : > { %v2011_v24 = vadd.f32 %v8336_v57, %v1972_v25  ;;  %v5468_v57 = vor.u32 %v5903_v51, %v5467_v60 }
 0x15c   : > { %3134 = vmatmul.bf16.gmra.mxu3 %v5432_v38  ;;  %v6149_v38 = vld [vmem:[%s9292_s1 + $0x138] sm:$0xff] }
 0x15d   : > { %3352 = vmatpush.bf16.msrb.mxu1 %v8421_v45  ;;  %v8431_v56 = vadd.f32 %v2049_v6, %v2011_v24  ;;  %v8445_v6 = vld [vmem:[#allocation3 + $0x14] sm:$0xf]  ;;  %v8610_v45 = vld [vmem:[%s6287_s6 + $0xdc] sm:$0xf] }
 0x15e   : > { %2112 = vmatmul.bf16.gmra.mxu0 %v4934_v7  ;;  %v8435_v52 = vpop.f32.mrf.mxu3  ;;  %3642 = vst [vmem:[#allocation3 + $0x14] sm:$0xf] %v9517_v61  ;;  %v8460_v7 = vld [vmem:[%s6287_s6 + $0xc4] sm:$0xf] }
 0x15f   : > { %3547 = vst [vmem:[#allocation3 + $0xc0] sm:$0xf] %v8460_v7  ;;  %v5902_v61 = vld [vmem:[#allocation3 + $0x140] sm:$0xf0] }
 0x160   : > { %3051 = vmatmul.bf16.gmra.mxu1 %v5388_v34  ;;  %v1952_v15 = vpop.f32.mrf.mxu0  ;;  %v8443_v21 = vpop.f32.mrf.mxu1  ;;  %v5424_v34 = vor.u32 %v8396_v50, %v8394_v11  ;;  %v5907_v11 = vld [vmem:[#allocation3 + $0x16c] sm:$0xf]  ;;  %v5497_v50 = vld [vmem:[#allocation3 + $0x18c] sm:$0xf0] }
 0x161   : > { %v8439_v35 = vadd.f32 %v1952_v15, %v8288_v4  ;;  %v3612_v4 = vsel %vm6319_vm2, %v3610_v13, %v3611_v31  ;;  %v5500_v55 = vor.u32 %v5907_v11, %v5497_v50  ;;  %v5912_v13 = vld [vmem:[#allocation3 + $0x190] sm:$0xf0]  ;;  %v8518_v50 = vld [vmem:[%s6287_s6 + $0xd0] sm:$0xf] }
 0x162   : > { %3643 = vst [vmem:[#allocation3 + $0x38] sm:$0xf] %v3612_v4  ;;  %v6153_v4 = vld [vmem:[%s9292_s1 + $0x118] sm:$0xff] }
 0x165   : > { %v8448_v63 = vpop.f32.mrf.mxu2 }
 0x168   : > { %3100 = vmatmul.bf16.gmra.mxu2 %v5464_v28  ;;  %v8471_v49 = vpop.f32.mrf.mxu3  ;;  %v1954_v25 = vpop.f32.mrf.mxu0  ;;  %v6150_v28 = vld [vmem:[%s9292_s1 + $0x130] sm:$0xff] }
 0x169   : > { %v8474_v62 = vadd.f32 %v1954_v25, %v8321_v19  ;;  %v8508_v25 = vld [vmem:[#allocation3 + $0x104] sm:$0xf0] }
 0x16a   : > { %v1976_v1 = vpop.f32.mrf.mxu1  ;;  %3549 = vst [vmem:[#allocation3 + $0x108] sm:$0xf] %v8518_v50 }
 0x16b   : > { %v1977_v24 = vadd.f32 %v1976_v1, %v8225_v0  ;;  %v6151_v0 = vld [vmem:[%s9292_s1 + $0x128] sm:$0xff] }
 0x16c   : > { %3139 = vmatmul.bf16.gmra.mxu3 %v5468_v57  ;;  %v5504_v57 = vor.u32 %v5912_v13, %v5503_v59  ;;  %v8511_v1 = vld [vmem:[%s6287_s6 + $0xcc] sm:$0xf]  ;;  %v8528_v13 = vld [vmem:[#allocation3 + $0x5c] sm:$0xf] }
 0x16d   : > { %v2016_v60 = vadd.f32 %v2015_v46, %v1977_v24  ;;  %v8480_v51 = vpop.f32.mrf.mxu2  ;;  %v5364_v46 = vor.u32 %v8406_v54, %v8411_v23 }
 0x16e   : > { %3158 = vmatmul.bf16.vlgmr.msrb.gmra.mxu0 %v5328_v2  ;;  %v5566_v2 = vrot.slane %v8409_v58, 10 }
 0x16f   : > { %4119 = vmatpush.bf16.msrb.mxu0 %v6149_v38  ;;  %v8482_v15 = vadd.f32 %v2054_v39, %v2016_v60  ;;  %v3615_v39 = vrot.slane %v8414_v5, 6  ;;  %v8522_v60 = vld [vmem:[%s6287_s6 + $0xbc] sm:$0x3] }
 0x170   : > { %3056 = vmatmul.bf16.gmra.mxu1 %v5424_v34  ;;  %v8487_v19 = vpop.f32.mrf.mxu3  ;;  %v1957_v9 = vpop.f32.mrf.mxu0  ;;  %v8506_v34 = vld [vmem:[#allocation3 + $0xe4] sm:$0xf] }
 0x171   : > { %v8490_v31 = vadd.f32 %v1957_v9, %v8354_v37  ;;  %v5459_v37 = vld [vmem:[#allocation3 + $0x120] sm:$0xf]  ;;  %v3617_v23 = vrot.slane %v3615_v39, 4  ;;  %v3616_v24 = vsel %vm6319_vm2, %v5566_v2, %v3615_v39  ;;  %3548 = vst [vmem:[#allocation3 + $0xe4] sm:$0xf] %v8511_v1 }
 0x172   : > { %v8494_v33 = vpop.f32.mrf.mxu1  ;;  %v5460_v38 = vor.u32 %v5902_v61, %v5459_v37  ;;  %3644 = vst [vmem:[#allocation3 + $0x5c] sm:$0xf] %v3616_v24  ;;  %v8540_v39 = vld [vmem:[#allocation3 + $0x7c] sm:$0xf0]  ;;  %v8546_v2 = vld [vmem:[#allocation3 + $0x80] sm:$0xf0]  ;;  %v1974_v24 = vadd.f32 %v8443_v21, %v8142_v36 }
 0x173   : > { %4120 = vmatpush.bf16.msrb.mxu0 %v6150_v28  ;;  %v8549_v37 = vld [vmem:[%s6287_s6 + $0xd0] sm:$0xf]  ;;  %v5567_v36 = vrot.slane %v8453_v14, 10  ;;  %v6157_v21 = vld [vmem:[%s9292_s1 + $0xb8] sm:$0xff] }
 0x174   : > { %3666 = vst [vmem:[#allocation3 + $0x84] sm:$0xf] %v8549_v37 }
 0x177   : > { %4121 = vmatpush.bf16.msrb.mxu0 %v6151_v0  ;;  %v3618_v0 = vrot.slane %v8522_v60, 6 }
 0x178   : > { %3105 = vmatmul.bf16.gmra.mxu2 %v5500_v55  ;;  %v1959_v11 = vpop.f32.mrf.mxu0 }
 0x179   : > { %v8525_v55 = vadd.f32 %v1959_v11, %v8379_v10  ;;  %v6154_v10 = vld [vmem:[%s9292_s1 + $0x110] sm:$0xff]  ;;  %v5400_v11 = vor.u32 %v8450_v47, %v8457_v42  ;;  %v5495_v47 = vld [vmem:[#allocation3 + $0x168] sm:$0xf]  ;;  %v5911_v42 = vld [vmem:[#allocation3 + $0x188] sm:$0xf0] }
 0x17b   : > { %4122 = vmatpush.bf16.msrb.mxu0 %v6152_v8  ;;  %v8501_v54 = vpop.f32.mrf.mxu2  ;;  %v3619_v8 = vsel %vm6319_vm2, %v3617_v23, %v3618_v0  ;;  %v6155_v23 = vld [vmem:[%s9292_s1 + $0x108] sm:$0xff]  ;;  %v9519_v0 = vld [vmem:[#allocation34_spill] sm:$0xff] }
 0x17c   : > { %3144 = vmatmul.bf16.gmra.mxu3 %v5504_v57  ;;  %v8532_v57 = vld [vmem:[#allocation3 + $0x60] sm:$0xf]  ;;  %3645 = vst [vmem:[#allocation3 + $0x80] sm:$0xf] %v3619_v8  ;;  %v2013_v8 = vadd.f32 %v8365_v43, %v1974_v24  ;;  %v8593_v24 = vld [vmem:[#allocation3 + $0xa8] sm:$0xf] }
 0x17d   : > { %v1981_v59 = vpop.f32.mrf.mxu1 }
 0x17e   : > { %3163 = vmatmul.bf16.gmra.mxu0 %v5364_v46  ;;  %v1982_v9 = vadd.f32 %v1981_v59, %v8330_v3  ;;  %v8535_v46 = vld [vmem:[%s6287_s6 + $0xcc] sm:$0xf]  ;;  %v9518_v59 = vld [vmem:[#allocation16_spill] sm:$0xff] }
 0x17f   : > { %4123 = vmatpush.bf16.msrb.mxu0 %v6153_v4  ;;  %v8515_v28 = vpop.f32.mrf.mxu3  ;;  %3665 = vst [vmem:[#allocation3 + $0x60] sm:$0xf] %v8535_v46  ;;  %v5336_v4 = vor.u32 %v8445_v6, %v8469_v16 }
 0x180   : > { %3061 = vmatmul.bf16.gmra.mxu1 %v5460_v38  ;;  %v2021_v3 = vadd.f32 %v8448_v63, %v1982_v9  ;;  %v5340_v9 = vor.u32 %v9519_v0, %v9518_v59  ;;  %v5496_v59 = vor.u32 %v5911_v42, %v5495_v47  ;;  %v8586_v0 = vld [vmem:[#allocation3 + $0xa4] sm:$0xf]  ;;  %v8603_v47 = vld [vmem:[%s6287_s6 + $0xd8] sm:$0xf] }
 0x181   : > { %3667 = vst [vmem:[#allocation3 + $0xa8] sm:$0xf] %v8603_v47 }
 0x182   : > { %v8557_v38 = vadd.f32 %v8471_v49, %v2021_v3  ;;  %v3622_v49 = vrot.slane %v8460_v7, 6 }
 0x183   : > { %4124 = vmatpush.bf16.msrb.mxu0 %v6154_v10  ;;  %v8551_v61 = vpop.f32.mrf.mxu2  ;;  %v6156_v10 = vld [vmem:[%s9292_s1 + $0x100] sm:$0xff] }
 0x184   : > { %v3623_v43 = vsel %vm6319_vm2, %v5567_v36, %v3622_v49  ;;  %v8607_v36 = vld [vmem:[#allocation3 + $0xc8] sm:$0xf0] }
 0x185   : > { %v8570_v6 = vpop.f32.mrf.mxu1  ;;  %3646 = vst [vmem:[#allocation3 + $0xa4] sm:$0xf] %v3623_v43 }
 0x186   : > { %3668 = vst [vmem:[#allocation3 + $0xcc] sm:$0xf] %v8610_v45 }
 0x187   : > { %4125 = vmatpush.bf16.msrb.mxu0 %v6155_v23  ;;  %v8562_v63 = vpop.f32.mrf.mxu3  ;;  %v6158_v23 = vld [vmem:[%s9292_s1 + $0xf8] sm:$0xff] }
 0x188   : > { %3236 = vmatmul.bf16.vlgmr.msrb.gmra.mxu2 %v5336_v4  ;;  %v3624_v4 = vrot.slane %v3622_v49, 4 }
 0x189   : > { %4061 = vmatpush.bf16.msrb.mxu2 %v6157_v21 }
 0x18b   : > { %v2088_v16 = vpop.f32.mrf.mxu0  ;;  %4126 = vmatpush.bf16.msrb.mxu0 %v6156_v10  ;;  %v8581_v3 = vpop.f32.mrf.mxu2  ;;  %v8589_v10 = vld [vmem:[%s6287_s6 + $0xc8] sm:$0x3] }
 0x18c   : > { %3275 = vmatmul.bf16.vlgmr.msrb.gmra.mxu3 %v5340_v9  ;;  %v3625_v21 = vrot.slane %v8589_v10, 6  ;;  %v2089_v42 = vadd.f32 %v2088_v16, %v8431_v56  ;;  %v6161_v16 = vld [vmem:[%s9292_s1 + $0xa8] sm:$0xff] }
 0x18d   : > { %4090 = vmatpush.bf16.msrb.mxu3 %v6158_v23  ;;  %v2052_v23 = vadd.f32 %v8374_v48, %v2013_v8  ;;  %v1986_v49 = vpop.f32.mrf.mxu1  ;;  %v6160_v48 = vld [vmem:[%s9292_s1 + $0xf0] sm:$0xff] }
 0x18e   : > { %3168 = vmatmul.bf16.gmra.mxu0 %v5400_v11  ;;  %v6159_v11 = vld [vmem:[%s9292_s1 + $0xb0] sm:$0xff]  ;;  %v1987_v22 = vadd.f32 %v1986_v49, %v8388_v27  ;;  %v3626_v43 = vsel %vm6319_vm2, %v3624_v4, %v3625_v21  ;;  %v4416_v8 = vmul.f32 %v2089_v42, %v2089_v42 }
 0x18f   : > { %4062 = vmatpush.bf16.msrb.mxu2 %v6159_v11  ;;  %v8598_v9 = vpop.f32.mrf.mxu3  ;;  %3647 = vst [vmem:[#allocation3 + $0xc8] sm:$0xf] %v3626_v43  ;;  %v6162_v43 = vld [vmem:[%s9292_s1 + $0xe8] sm:$0xff] }
 0x190   : > { %3066 = vmatmul.bf16.gmra.mxu1 %v5496_v59  ;;  %v2026_v27 = vadd.f32 %v8501_v54, %v1987_v22  ;;  %v5372_v59 = vor.u32 %v8528_v13, %v8540_v39  ;;  %v6163_v22 = vld [vmem:[%s9292_s1 + $0xa0] sm:$0xff]  ;;  %v5436_v13 = vor.u32 %v8506_v34, %v8508_v25  ;;  %v5376_v39 = vor.u32 %v8546_v2, %v8532_v57  ;;  %v6165_v34 = vld [vmem:[%s9292_s1 + $0x98] sm:$0xff] }
 0x191   : > { %4091 = vmatpush.bf16.msrb.mxu3 %v6160_v48 }
 0x193   : > { %v2090_v11 = vpop.f32.mrf.mxu0  ;;  %4063 = vmatpush.bf16.msrb.mxu2 %v6161_v16 }
 0x194   : > { %v2091_v56 = vadd.f32 %v2090_v11, %v2052_v23  ;;  %v8631_v23 = vpop.f32.mrf.mxu2  ;;  %v8636_v11 = vadd.f32 %v8515_v28, %v2026_v27  ;;  %v1979_v28 = vadd.f32 %v8494_v33, %v8281_v12  ;;  %v3629_v27 = vrot.slane %v8518_v50, 6 }
 0x195   : > { %4092 = vmatpush.bf16.msrb.mxu3 %v6162_v43  ;;  %v5568_v33 = vrot.slane %v8511_v1, 10 }
 0x196   : > { %v5955_v4 = vpack.c.bf16 %v2091_v56, %v2089_v42  ;;  %v4379_v21 = vadd.f32 %v2091_v56, %v2089_v42  ;;  %v4417_v49 = vmul.f32 %v2091_v56, %v2091_v56  ;;  %v3571_v42 = vrot.slane %v8414_v5, 5  ;;  %v8654_v56 = vpop.f32.mrf.mxu1 }
 0x197   : > { %4064 = vmatpush.bf16.msrb.mxu2 %v6163_v22  ;;  %v8645_v54 = vpop.f32.mrf.mxu3  ;;  %v5562_v5 = vrot.slane %v8409_v58, 9  ;;  %v2018_v57 = vadd.f32 %v8429_v40, %v1979_v28  ;;  %v6166_v22 = vld [vmem:[%s9292_s1 + $0xd8] sm:$0xff]  ;;  %v3574_v28 = vrot.slane %v8522_v60, 5 }
 0x198   : > { %5956 = vst [vmem:[%s8628_s20] sm:$0xff] %v5955_v4   ;;  %v4448_v48 = vadd.f32 %v4417_v49, %v4416_v8  ;;  %3241 = vmatmul.bf16.gmra.mxu2 %v5372_v59  ;;  %v6164_v8 = vld [vmem:[%s9292_s1 + $0xe0] sm:$0xff]  ;;  %v3573_v25 = vrot.slane %v3571_v42, 4  ;;  %v9520_v49 = vld [vmem:[#allocation31_spill] sm:$0xff]  ;;  %v9521_v59 = vld [vmem:[#allocation32_spill] sm:$0xff] }
 0x199   : > { %4093 = vmatpush.bf16.msrb.mxu3 %v6164_v8  ;;  %v5332_v43 = vor.u32 %v9521_v59, %v9520_v49  ;;  %v8679_v40 = vld [vmem:[#allocation3 + $0x58] sm:$0xf]  ;;  %v6167_v8 = vld [vmem:[%s9292_s1 + $0x90] sm:$0xff] }
 0x19a   : > { %v8703_v59 = vld [vmem:[#allocation3 + $0x10c] sm:$0xf0] }
 0x19b   : > { %v2093_v16 = vpop.f32.mrf.mxu0  ;;  %4065 = vmatpush.bf16.msrb.mxu2 %v6165_v34 }
 0x19c   : > { %v8662_v12 = vadd.f32 %v2093_v16, %v8482_v15  ;;  %3280 = vmatmul.bf16.gmra.mxu3 %v5376_v39  ;;  %v8672_v58 = vpop.f32.mrf.mxu2  ;;  %v3631_v15 = vrot.slane %v3629_v27, 4  ;;  %v3630_v39 = vsel %vm6319_vm2, %v5568_v33, %v3629_v27  ;;  %v3575_v27 = vsel %vm6608_vm5, %v3573_v25, %v3574_v28  ;;  %v8710_v25 = vld [vmem:[#allocation3 + $0xf0] sm:$0xf] }
 0x19d   : > { %4094 = vmatpush.bf16.msrb.mxu3 %v6166_v22 }
 0x19e   : > { %v4380_v2 = vadd.f32 %v4379_v21, %v8662_v12  ;;  %v4418_v4 = vmul.f32 %v8662_v12, %v8662_v12  ;;  %3173 = vmatmul.bf16.gmra.mxu0 %v5436_v13  ;;  %v3572_v21 = vsel %vm6608_vm5, %v5562_v5, %v3571_v42  ;;  %v8685_v13 = vld [vmem:[%s6287_s6 + $0xd4] sm:$0x3]  ;;  %v2057_v42 = vadd.f32 %v8435_v52, %v2018_v57  ;;  %v1991_v60 = vpop.f32.mrf.mxu1  ;;  %v8698_v5 = vld [vmem:[#allocation3 + $0x78] sm:$0xf0] }
 0x19f   : > { %4066 = vmatpush.bf16.msrb.mxu2 %v6167_v8  ;;  %v8692_v34 = vpop.f32.mrf.mxu3  ;;  %3600 = vst [vmem:[#allocation3 + $0x58] sm:$0xf] %v3572_v21  ;;  %v1992_v49 = vadd.f32 %v1991_v60, %v8439_v35  ;;  %v6168_v52 = vld [vmem:[%s9292_s1 + $0xd0] sm:$0xff]  ;;  %v8713_v21 = vld [vmem:[%s6287_s6 + $0xe4] sm:$0xf]  ;;  %v6169_v35 = vld [vmem:[%s9292_s1 + $0x88] sm:$0xff] }
 0x1a0   : > { %v4449_v16 = vadd.f32 %v4448_v48, %v4418_v4  ;;  %v8694_v48 = vld [vmem:[#allocation3 + $0xec] sm:$0xf]  ;;  %v3632_v4 = vrot.slane %v8685_v13, 6  ;;  %3601 = vst [vmem:[#allocation3 + $0x7c] sm:$0xf] %v3575_v27  ;;  %3197 = vmatmul.bf16.vlgmr.msra.gmra.mxu1 %v5332_v43  ;;  %v6170_v43 = vld [vmem:[%s9292_s1 + $0x178] sm:$0xff] }
 0x1a1   : > { %3648 = vst [vmem:[#allocation3 + $0xec] sm:$0xf] %v3630_v39  ;;  %4095 = vmatpush.bf16.msrb.mxu3 %v6168_v52  ;;  %v2031_v28 = vadd.f32 %v8581_v3, %v1992_v49  ;;  %v8722_v39 = vld [vmem:[%s6287_s6 + $0xe8] sm:$0xf]  ;;  %4148 = vmatpush.bf16.msra.mxu1 %v6170_v43  ;;  %v5899_v3 = vld [vmem:[#allocation3 + $0x12c] sm:$0xf] }
 0x1a2   : > { %v3633_v22 = vsel %vm6319_vm2, %v3631_v15, %v3632_v4  ;;  %v8719_v15 = vld [vmem:[#allocation3 + $0x110] sm:$0xf0]  ;;  %3669 = vst [vmem:[#allocation3 + $0xf0] sm:$0xf] %v8713_v21  ;;  %v5469_v27 = vld [vmem:[#allocation3 + $0x14c] sm:$0xf0] }
 0x1a3   : > { %v2095_v33 = vpop.f32.mrf.mxu0  ;;  %3649 = vst [vmem:[#allocation3 + $0x110] sm:$0xf] %v3633_v22  ;;  %4067 = vmatpush.bf16.msrb.mxu2 %v6169_v35  ;;  %v8735_v49 = vadd.f32 %v8598_v9, %v2031_v28  ;;  %v6171_v22 = vld [vmem:[%s9292_s1 + $0xc8] sm:$0xff]  ;;  %v1984_v9 = vadd.f32 %v8570_v6, %v8363_v29  ;;  %v6174_v43 = vld [vmem:[%s9292_s1 + $0xc0] sm:$0xff] }
 0x1a4   : > { %v2096_v57 = vadd.f32 %v2095_v33, %v2057_v42  ;;  %v8729_v60 = vpop.f32.mrf.mxu2  ;;  %3670 = vst [vmem:[#allocation3 + $0x114] sm:$0xf] %v8722_v39  ;;  %v5408_v33 = vor.u32 %v8586_v0, %v8614_v53  ;;  %v6173_v53 = vld [vmem:[%s9292_s1 + $0x170] sm:$0xff]  ;;  %v3578_v0 = vrot.slane %v8460_v7, 5  ;;  %v6175_v29 = vld [vmem:[%s9292_s1 + $0x168] sm:$0xff] }
 0x1a5   : > { %4096 = vmatpush.bf16.msrb.mxu3 %v6171_v22  ;;  %4149 = vmatpush.bf16.msra.mxu1 %v6173_v53  ;;  %v3581_v22 = vrot.slane %v8589_v10, 5  ;;  %v8780_v53 = vld [vmem:[#allocation3 + $0xc0] sm:$0xf0] }
 0x1a6   : > { %v5960_v8 = vpack.c.bf16 %v2096_v57, %v8662_v12  ;;  %v4381_v4 = vadd.f32 %v4380_v2, %v2096_v57  ;;  %v4419_v42 = vmul.f32 %v2096_v57, %v2096_v57  ;;  %v6172_v2 = vld [vmem:[%s9292_s1 + $0x80] sm:$0xff]  ;;  %v5472_v57 = vor.u32 %v5899_v3, %v5469_v27  ;;  %v8754_v35 = vpop.f32.mrf.mxu1 }
 0x1a7   : > { %4068 = vmatpush.bf16.msrb.mxu2 %v6172_v2  ;;  %v8744_v52 = vpop.f32.mrf.mxu3  ;;  %v3580_v6 = vrot.slane %v3578_v0, 4 }
 0x1a8   : > { %6032 = vst [vmem:[%s8628_s20 + $0x8] sm:$0xff] %v5960_v8   ;;  %v4450_v12 = vadd.f32 %v4449_v16, %v4419_v42  ;;  %v5412_v16 = vor.u32 %v8607_v36, %v8593_v24  ;;  %3246 = vmatmul.bf16.gmra.mxu2 %v5408_v33  ;;  %v5563_v8 = vrot.slane %v8453_v14, 9  ;;  %v2023_v24 = vadd.f32 %v8480_v51, %v1984_v9  ;;  %v8769_v33 = vld [vmem:[#allocation3 + $0xa0] sm:$0xf] }
 0x1a9   : > { %4097 = vmatpush.bf16.msrb.mxu3 %v6174_v43  ;;  %4150 = vmatpush.bf16.msra.mxu1 %v6175_v29  ;;  %v5368_v14 = vor.u32 %v8698_v5, %v8679_v40  ;;  %v6176_v51 = vld [vmem:[%s9292_s1 + $0x160] sm:$0xff]  ;;  %v3582_v40 = vsel %vm6608_vm5, %v3580_v6, %v3581_v22  ;;  %v5505_v29 = vld [vmem:[#allocation3 + $0x194] sm:$0xf0]  ;;  %v5582_v22 = vrot.slane %v8535_v46, 9 }
 0x1aa   : > { %3603 = vst [vmem:[#allocation3 + $0xc4] sm:$0xf] %v3582_v40  ;;  %v8821_v40 = vld [vmem:[#allocation3 + $0xe8] sm:$0xf] }
 0x1ab   : > { %v2098_v28 = vpop.f32.mrf.mxu0 }
 0x1ac   : > { %v2099_v7 = vadd.f32 %v2098_v28, %v8557_v38  ;;  %3285 = vmatmul.bf16.gmra.mxu3 %v5412_v16  ;;  %v8765_v3 = vpop.f32.mrf.mxu2  ;;  %v3579_v38 = vsel %vm6608_vm5, %v5563_v8, %v3578_v0  ;;  %v5908_v8 = vld [vmem:[#allocation3 + $0x174] sm:$0xf] }
 0x1ad   : > { %3602 = vst [vmem:[#allocation3 + $0xa0] sm:$0xf] %v3579_v38  ;;  %4151 = vmatpush.bf16.msra.mxu1 %v6176_v51  ;;  %v5564_v38 = vrot.slane %v8511_v1, 9 }
 0x1ae   : > { %v4382_v36 = vadd.f32 %v4381_v4, %v2099_v7  ;;  %v4420_v42 = vmul.f32 %v2099_v7, %v2099_v7  ;;  %3178 = vmatmul.bf16.gmra.mxu0 %v5472_v57  ;;  %v2062_v4 = vadd.f32 %v8487_v19, %v2023_v24  ;;  %v6177_v57 = vld [vmem:[%s9292_s1 + $0x158] sm:$0xff] }
 0x1af   : > { %v8774_v2 = vpop.f32.mrf.mxu3 }
 0x1b0   : > { %v4451_v27 = vadd.f32 %v4450_v12, %v4420_v42  ;;  %v1996_v12 = vpop.f32.mrf.mxu1  ;;  %3202 = vmatmul.bf16.gmra.mxu1 %v5368_v14  ;;  %v1989_v42 = vadd.f32 %v8654_v56, %v8425_v26  ;;  %v5508_v14 = vor.u32 %v5908_v8, %v5505_v29  ;;  %v6179_v26 = vld [vmem:[%s9292_s1 + $0x148] sm:$0xff] }
 0x1b1   : > { %v1997_v10 = vadd.f32 %v1996_v12, %v8490_v31  ;;  %4152 = vmatpush.bf16.msra.mxu1 %v6177_v57  ;;  %v5444_v31 = vor.u32 %v8694_v48, %v8703_v59  ;;  %v5448_v48 = vor.u32 %v8719_v15, %v8710_v25  ;;  %v3692_v59 = vrot.slane %v8549_v37, 5  ;;  %v8833_v57 = vld [vmem:[#allocation3 + $0x64] sm:$0xf] }
 0x1b2   : > { %v2028_v56 = vadd.f32 %v8551_v61, %v1989_v42  ;;  %v5404_v12 = vor.u32 %v8780_v53, %v8769_v33  ;;  %v6180_v53 = vld [vmem:[%s9292_s1 + $0x140] sm:$0xff] }
 0x1b3   : > { %v2100_v5 = vpop.f32.mrf.mxu0  ;;  %v2036_v9 = vadd.f32 %v8672_v58, %v1997_v10  ;;  %v3694_v1 = vrot.slane %v3692_v59, 4  ;;  %v3588_v10 = vrot.slane %v8685_v13, 5  ;;  %v3693_v61 = vsel %vm6608_vm5, %v5582_v22, %v3692_v59  ;;  %v5905_v22 = vld [vmem:[#allocation3 + $0x158] sm:$0xf0] }
 0x1b4   : > { %v2101_v0 = vadd.f32 %v2100_v5, %v2062_v4  ;;  %v8789_v43 = vpop.f32.mrf.mxu2  ;;  %3721 = vst [vmem:[#allocation3 + $0x64] sm:$0xf] %v3693_v61 }
 0x1b5   : > { %v8794_v6 = vadd.f32 %v8692_v34, %v2036_v9 }
 0x1b6   : > { %v5965_v19 = vpack.c.bf16 %v2101_v0, %v2099_v7  ;;  %v4383_v16 = vadd.f32 %v4382_v36, %v2101_v0  ;;  %v4421_v28 = vmul.f32 %v2101_v0, %v2101_v0  ;;  %v6178_v7 = vld [vmem:[%s9292_s1 + $0x150] sm:$0xff]  ;;  %v3585_v36 = vrot.slane %v8518_v50, 5 }
 0x1b7   : > { %v8797_v24 = vpop.f32.mrf.mxu3  ;;  %4153 = vmatpush.bf16.msra.mxu1 %v6178_v7  ;;  %v8827_v0 = vld [vmem:[%s6287_s6 + $0xd4] sm:$0x3] }
 0x1b8   : > { %6033 = vst [vmem:[%s8628_s20 + $0x10] sm:$0xff] %v5965_v19   ;;  %v4452_v58 = vadd.f32 %v4451_v27, %v4421_v28  ;;  %v8807_v34 = vpop.f32.mrf.mxu1  ;;  %3251 = vmatmul.bf16.gmra.mxu2 %v5444_v31  ;;  %v3587_v50 = vrot.slane %v3585_v36, 4  ;;  %v3586_v5 = vsel %vm6608_vm5, %v5564_v38, %v3585_v36  ;;  %v3695_v33 = vrot.slane %v8827_v0, 5  ;;  %v8843_v31 = vld [vmem:[#allocation3 + $0x84] sm:$0xf0] }
 0x1b9   : > { %3604 = vst [vmem:[#allocation3 + $0xe8] sm:$0xf] %v3586_v5  ;;  %v2067_v19 = vadd.f32 %v8562_v63, %v2028_v56  ;;  %v5900_v36 = vld [vmem:[#allocation3 + $0x134] sm:$0xf]  ;;  %v5477_v63 = vld [vmem:[#allocation3 + $0x154] sm:$0xf0]  ;;  %v1994_v56 = vadd.f32 %v8754_v35, %v8474_v62 }
 0x1ba   : > { %v3589_v28 = vsel %vm6608_vm5, %v3587_v50, %v3588_v10  ;;  %v5483_v38 = vld [vmem:[#allocation3 + $0x138] sm:$0xf]  ;;  %v3699_v50 = vrot.slane %v8610_v45, 5 }
 0x1bb   : > { %v2103_v27 = vpop.f32.mrf.mxu0  ;;  %4154 = vmatpush.bf16.msra.mxu1 %v6179_v26 }
 0x1bc   : > { %v2104_v51 = vadd.f32 %v2103_v27, %v8636_v11  ;;  %3290 = vmatmul.bf16.gmra.mxu3 %v5448_v48  ;;  %v8817_v4 = vpop.f32.mrf.mxu2 }
 0x1be   : > { %v4384_v25 = vadd.f32 %v4383_v16, %v2104_v51  ;;  %v4422_v15 = vmul.f32 %v2104_v51, %v2104_v51  ;;  %3183 = vmatmul.bf16.gmra.mxu0 %v5508_v14  ;;  %v5895_v16 = vld [vmem:[#allocation3 + $0x108] sm:$0xf0] }
 0x1bf   : > { %v8831_v9 = vpop.f32.mrf.mxu3  ;;  %4155 = vmatpush.bf16.msra.mxu1 %v6180_v53  ;;  %3605 = vst [vmem:[#allocation3 + $0x10c] sm:$0xf] %v3589_v28  ;;  %v2033_v53 = vadd.f32 %v8631_v23, %v1994_v56  ;;  %v8869_v28 = vld [vmem:[#allocation3 + $0xac] sm:$0xf]  ;;  %v5914_v56 = vld [vmem:[#allocation3 + $0x1a0] sm:$0xf0] }
 0x1c0   : > { %v4453_v11 = vadd.f32 %v4452_v58, %v4422_v15  ;;  %v3042_v13 = vpop.f32.mrf.mxu1  ;;  %v3696_v58 = vsel %vm6608_vm5, %v3694_v1, %v3695_v33  ;;  %3207 = vmatmul.bf16.gmra.mxu1 %v5404_v12  ;;  %v5484_v1 = vor.u32 %v5905_v22, %v5483_v38  ;;  %v3701_v33 = vrot.slane %v3699_v50, 4 }
 0x1c1   : > { %v3082_v29 = vadd.f32 %v8765_v3, %v3042_v13  ;;  %3722 = vst [vmem:[#allocation3 + $0x88] sm:$0xf] %v3696_v58  ;;  %v5480_v3 = vor.u32 %v5900_v36, %v5477_v63  ;;  %v8881_v58 = vld [vmem:[#allocation3 + $0xcc] sm:$0xf0]  ;;  %v2072_v36 = vadd.f32 %v8645_v54, %v2033_v53 }
 0x1c3   : > { %v2105_v8 = vpop.f32.mrf.mxu0  ;;  %v8848_v42 = vadd.f32 %v8774_v2, %v3082_v29  ;;  %v5583_v2 = vrot.slane %v8603_v47, 9 }
 0x1c4   : > { %v2106_v7 = vadd.f32 %v2105_v8, %v2067_v19  ;;  %v8850_v27 = vpop.f32.mrf.mxu2  ;;  %v8872_v8 = vld [vmem:[%s6287_s6 + $0xe0] sm:$0x3] }
 0x1c6   : > { %v5970_v14 = vpack.c.bf16 %v2106_v7, %v2104_v51  ;;  %v4385_v48 = vadd.f32 %v4384_v25, %v2106_v7  ;;  %v4423_v59 = vmul.f32 %v2106_v7, %v2106_v7  ;;  %v9522_v51 = vld [vmem:[#allocation35_spill] sm:$0xff]  ;;  %v9523_v25 = vld [vmem:[#allocation22_spill] sm:$0xff] }
 0x1c7   : > { %v8856_v15 = vpop.f32.mrf.mxu3  ;;  %v5344_v12 = vor.u32 %v9523_v25, %v9522_v51  ;;  %v5380_v25 = vor.u32 %v8833_v57, %v8843_v31 }
 0x1c8   : > { %6034 = vst [vmem:[%s8628_s20 + $0x18] sm:$0xff] %v5970_v14   ;;  %v4454_v26 = vadd.f32 %v4453_v11, %v4423_v59  ;;  %v3044_v5 = vpop.f32.mrf.mxu1  ;;  %3256 = vmatmul.bf16.gmra.mxu2 %v5480_v3 }
 0x1c9   : > { %v3084_v61 = vadd.f32 %v8789_v43, %v3044_v5  ;;  %v3700_v43 = vsel %vm6608_vm5, %v5583_v2, %v3699_v50  ;;  %v5519_v50 = vld [vmem:[#allocation3 + $0x180] sm:$0xf]  ;;  %v1999_v2 = vadd.f32 %v8807_v34, %v8525_v55  ;;  %v5475_v34 = vld [vmem:[#allocation3 + $0x130] sm:$0xf] }
 0x1ca   : > { %3723 = vst [vmem:[#allocation3 + $0xac] sm:$0xf] %v3700_v43  ;;  %v5520_v51 = vor.u32 %v5914_v56, %v5519_v50  ;;  %v8923_v43 = vld [vmem:[#allocation3 + $0x114] sm:$0xf0] }
 0x1cb   : > { %v2108_v10 = vpop.f32.mrf.mxu0  ;;  %v8865_v62 = vadd.f32 %v8797_v24, %v3084_v61  ;;  %v5440_v24 = vor.u32 %v5895_v16, %v8821_v40  ;;  %v5909_v40 = vld [vmem:[#allocation3 + $0x17c] sm:$0xf]  ;;  %v5513_v16 = vld [vmem:[#allocation3 + $0x19c] sm:$0xf0]  ;;  %v2038_v55 = vadd.f32 %v8729_v60, %v1999_v2 }
 0x1cc   : > { %v2109_v11 = vadd.f32 %v2108_v10, %v8735_v49  ;;  %3295 = vmatmul.bf16.gmra.mxu3 %v5484_v1  ;;  %v8867_v13 = vpop.f32.mrf.mxu2  ;;  %v3702_v49 = vrot.slane %v8872_v8, 5  ;;  %v5516_v54 = vor.u32 %v5909_v40, %v5513_v16  ;;  %v3729_v40 = vrot.slane %v9525_v30, 6  ;;  %v9526_v50 = vld [vmem:[#allocation17_spill] sm:$0xff] }
 0x1ce   : > { %v4386_v35 = vadd.f32 %v4385_v48, %v2109_v11  ;;  %v4424_v19 = vmul.f32 %v2109_v11, %v2109_v11  ;;  %3314 = vmatmul.bf16.vlgmr.msra.gmra.mxu0 %v5344_v12  ;;  %v3703_v7 = vsel %vm6608_vm5, %v3701_v33, %v3702_v49  ;;  %v3731_v2 = vrot.slane %v3729_v40, 4 }
 0x1cf   : > { %4235 = vmatpush.bf16.msra.mxu0 %v8308_v20  ;;  %v8879_v29 = vpop.f32.mrf.mxu3  ;;  %3724 = vst [vmem:[#allocation3 + $0xd0] sm:$0xf] %v3703_v7 }
 0x1d0   : > { %v4455_v23 = vadd.f32 %v4454_v26, %v4424_v19  ;;  %v3047_v63 = vpop.f32.mrf.mxu1  ;;  %3212 = vmatmul.bf16.gmra.mxu1 %v5440_v24 }
 0x1d1   : > { %v3087_v48 = vadd.f32 %v8817_v4, %v3047_v63  ;;  %v9524_v63 = vld [vmem:[#allocation27_spill] sm:$0xff] }
 0x1d3   : > { %v2110_v14 = vpop.f32.mrf.mxu0  ;;  %4236 = vmatpush.bf16.msra.mxu0 %v8326_v44  ;;  %v8889_v59 = vadd.f32 %v8831_v9, %v3087_v48  ;;  %v3706_v44 = vrot.slane %v8722_v39, 5  ;;  %v5584_v9 = vrot.slane %v8713_v21, 9  ;;  %v5920_v48 = vld [vmem:[#allocation3 + $0x20] sm:$0xf0] }
 0x1d4   : > { %v2111_v20 = vadd.f32 %v2110_v14, %v2072_v36  ;;  %v8891_v26 = vpop.f32.mrf.mxu2  ;;  %v5591_v14 = vld [vmem:[#allocation3] sm:$0xf] }
 0x1d5   : > { %v3708_v61 = vrot.slane %v3706_v44, 4 }
 0x1d6   : > { %v5975_v3 = vpack.c.bf16 %v2111_v20, %v2109_v11  ;;  %v4387_v38 = vadd.f32 %v4386_v35, %v2111_v20  ;;  %v4425_v22 = vmul.f32 %v2111_v20, %v2111_v20  ;;  %v5904_v11 = vld [vmem:[#allocation3 + $0x150] sm:$0xf0] }
 0x1d7   : > { %4237 = vmatpush.bf16.msra.mxu0 %v8347_v32  ;;  %v8898_v1 = vpop.f32.mrf.mxu3  ;;  %v8912_v35 = vld [vmem:[#allocation3 + $0xf4] sm:$0xf] }
 0x1d8   : > { %6035 = vst [vmem:[%s8628_s20 + $0x20] sm:$0xff] %v5975_v3   ;;  %v4456_v4 = vadd.f32 %v4455_v23, %v4425_v22  ;;  %v3049_v12 = vpop.f32.mrf.mxu1  ;;  %3261 = vmatmul.bf16.gmra.mxu2 %v5516_v54  ;;  %v2077_v23 = vadd.f32 %v8744_v52, %v2038_v55  ;;  %v5916_v22 = vld [vmem:[#allocation3 + $0x4] sm:$0xf]  ;;  %v5593_v54 = vld [vmem:[#allocation3 + $0x24] sm:$0xf0] }
 0x1d9   : > { %v3089_v32 = vadd.f32 %v8850_v27, %v3049_v12  ;;  %v8915_v27 = vld [vmem:[%s6287_s6 + $0xec] sm:$0x3]  ;;  %v5596_v12 = vor.u32 %v5916_v22, %v5593_v54  ;;  %v5452_v54 = vor.u32 %v8912_v35, %v8923_v43 }
 0x1da   : > { %v3709_v60 = vrot.slane %v8915_v27, 5 }
 0x1db   : > { %v2113_v5 = vpop.f32.mrf.mxu0  ;;  %4238 = vmatpush.bf16.msra.mxu0 %v8359_v41  ;;  %v8908_v33 = vadd.f32 %v8856_v15, %v3089_v32  ;;  %v3707_v41 = vsel %vm6608_vm5, %v5584_v9, %v3706_v44  ;;  %v5476_v15 = vor.u32 %v5904_v11, %v5475_v34  ;;  %v6181_v9 = vld [vmem:[%s6287_s6 + $0xc8] sm:$0x3]  ;;  %v6182_v34 = vld [vmem:[%s9292_s1 + $0x1b8] sm:$0xff] }
 0x1dc   : > { %v2114_v10 = vadd.f32 %v2113_v5, %v8794_v6  ;;  %3300 = vmatmul.bf16.gmra.mxu3 %v5520_v51  ;;  %v8910_v31 = vpop.f32.mrf.mxu2  ;;  %3725 = vst [vmem:[#allocation3 + $0xf4] sm:$0xf] %v3707_v41  ;;  %v3710_v49 = vsel %vm6608_vm5, %v3708_v61, %v3709_v60  ;;  %v3732_v51 = vrot.slane %v6181_v9, 6  ;;  %v9528_v61 = vld [vmem:[#allocation30_spill] sm:$0xff]  ;;  %v5511_v11 = vld [vmem:[#allocation3 + $0x178] sm:$0xf] }
 0x1dd   : > { %3726 = vst [vmem:[#allocation3 + $0x118] sm:$0xf] %v3710_v49  ;;  %v8967_v41 = vld [vmem:[#allocation3 + $0x40] sm:$0xf0] }
 0x1de   : > { %v4388_v53 = vadd.f32 %v4387_v38, %v2114_v10  ;;  %v4426_v57 = vmul.f32 %v2114_v10, %v2114_v10  ;;  %3319 = vmatmul.bf16.gmra.mxu0 %v5380_v25  ;;  %v5416_v25 = vor.u32 %v8869_v28, %v8881_v58 }
 0x1df   : > { %4239 = vmatpush.bf16.msra.mxu0 %v8371_v18  ;;  %v8921_v19 = vpop.f32.mrf.mxu3 }
 0x1e0   : > { %v4457_v6 = vadd.f32 %v4456_v4, %v4426_v57  ;;  %v3052_v24 = vpop.f32.mrf.mxu1  ;;  %3217 = vmatmul.bf16.gmra.mxu1 %v5476_v15  ;;  %v9527_v4 = vld [vmem:[#allocation15_spill] sm:$0xff]  ;;  %v3733_v57 = vsel %vm6319_vm2, %v3731_v2, %v3732_v51 }
 0x1e1   : > { %v3092_v36 = vadd.f32 %v8867_v13, %v3052_v24  ;;  %v5592_v13 = vor.u32 %v5920_v48, %v5591_v14  ;;  %v5585_v44 = vrot.slane %v9527_v4, 10  ;;  %3764 = vst [vmem:[#allocation3 + $0x44] sm:$0xf] %v3733_v57  ;;  %v6186_v14 = vld [vmem:[%s9292_s1 + $0x1a8] sm:$0xff]  ;;  %v5938_v57 = vld [vmem:[#allocation3 + $0xb0] sm:$0xf0] }
 0x1e3   : > { %v2115_v7 = vpop.f32.mrf.mxu0  ;;  %4240 = vmatpush.bf16.msra.mxu0 %v9524_v63  ;;  %v8931_v20 = vadd.f32 %v8879_v29, %v3092_v36  ;;  %v5627_v63 = vld [vmem:[#allocation3 + $0x48] sm:$0xf] }
 0x1e4   : > { %v2116_v18 = vadd.f32 %v2115_v7, %v2077_v23  ;;  %v8936_v38 = vpop.f32.mrf.mxu2  ;;  %v6185_v7 = vld [vmem:[%s9292_s1 + $0x1f0] sm:$0xff] }
 0x1e6   : > { %v5980_v16 = vpack.c.bf16 %v2116_v18, %v2114_v10  ;;  %v8934_v52 = vadd.f32 %v4388_v53, %v2116_v18  ;;  %v4427_v3 = vmul.f32 %v2116_v18, %v2116_v18  ;;  %v5913_v53 = vld [vmem:[#allocation3 + $0x198] sm:$0xf0]  ;;  %v5929_v18 = vld [vmem:[#allocation3 + $0x68] sm:$0xf0] }
 0x1e7   : > { %4241 = vmatpush.bf16.msra.mxu0 %v9526_v50  ;;  %v8943_v29 = vpop.f32.mrf.mxu3  ;;  %v5512_v60 = vor.u32 %v5913_v53, %v5511_v11  ;;  %v5628_v30 = vor.u32 %v5929_v18, %v5627_v63  ;;  %v6193_v53 = vld [vmem:[%s9292_s1 + $0x1d0] sm:$0xff]  ;;  %v5587_v63 = vrot.slane %v8603_v47, 10 }
 0x1e8   : > { %6036 = vst [vmem:[%s8628_s20 + $0x28] sm:$0xff] %v5980_v16   ;;  %v8940_v56 = vadd.f32 %v4457_v6, %v4427_v3  ;;  %v3054_v5 = vpop.f32.mrf.mxu1  ;;  %4011 = vmatmul.bf16.vlgmr.msra.gmra.mxu2 %v5592_v13  ;;  %v6184_v6 = vld [vmem:[%s9292_s1 + $0x1b0] sm:$0xff]  ;;  %v3736_v3 = vrot.slane %v8549_v37, 6  ;;  %v6188_v13 = vld [vmem:[%s9292_s1 + $0x1a0] sm:$0xff] }
 0x1e9   : > { %v3094_v10 = vadd.f32 %v8891_v26, %v3054_v5  ;;  %4177 = vmatpush.bf16.msra.mxu2 %v6182_v34  ;;  %v8961_v26 = vld [vmem:[#allocation3 + $0x20] sm:$0xf]  ;;  %v5629_v16 = vld [vmem:[#allocation3 + $0x6c] sm:$0xf0]  ;;  %v5879_v5 = vld [vmem:[#allocation3 + $0x88] sm:$0xf0] }
 0x1ea   : > { %v6189_v37 = vld [vmem:[%s9292_s1 + $0x1e0] sm:$0xff]  ;;  %v3738_v9 = vrot.slane %v3736_v3, 4 }
 0x1eb   : > { %v3159_v32 = vpop.f32.mrf.mxu0  ;;  %4242 = vmatpush.bf16.msra.mxu0 %v9528_v61  ;;  %v8957_v28 = vadd.f32 %v8898_v1, %v3094_v10  ;;  %v6183_v1 = vld [vmem:[%s9292_s1 + $0x1f8] sm:$0xff]  ;;  %v6192_v10 = vld [vmem:[%s9292_s1 + $0x190] sm:$0xff] }
 0x1ec   : > { %v8951_v55 = vadd.f32 %v3159_v32, %v8848_v42  ;;  %4040 = vmatmul.bf16.vlgmr.msra.gmra.mxu3 %v5596_v12  ;;  %v8959_v58 = vpop.f32.mrf.mxu2  ;;  %v3730_v42 = vsel %vm6319_vm2, %v5585_v44, %v3729_v40  ;;  %v5925_v40 = vld [vmem:[#allocation3 + $0x4c] sm:$0xf]  ;;  %v6191_v12 = vld [vmem:[%s9292_s1 + $0x1d8] sm:$0xff] }
 0x1ed   : > { %3763 = vst [vmem:[#allocation3 + $0x20] sm:$0xf] %v3730_v42  ;;  %4206 = vmatpush.bf16.msra.mxu3 %v6183_v1  ;;  %4178 = vmatpush.bf16.msra.mxu2 %v6184_v6  ;;  %v5632_v50 = vor.u32 %v5925_v40, %v5629_v16  ;;  %v5663_v42 = vld [vmem:[#allocation3 + $0x90] sm:$0xf]  ;;  %v5901_v6 = vld [vmem:[#allocation3 + $0x13c] sm:$0xf] }
 0x1ee   : > { %3324 = vmatmul.bf16.gmra.mxu0 %v5416_v25 }
 0x1ef   : > { %v8975_v15 = vpop.f32.mrf.mxu3 }
 0x1f0   : > { %v3057_v49 = vpop.f32.mrf.mxu1  ;;  %3222 = vmatmul.bf16.gmra.mxu1 %v5512_v60 }
 0x1f1   : > { %v3097_v24 = vadd.f32 %v8910_v31, %v3057_v49  ;;  %4207 = vmatpush.bf16.msra.mxu3 %v6185_v7  ;;  %4179 = vmatpush.bf16.msra.mxu2 %v6186_v14  ;;  %v5485_v49 = vld [vmem:[#allocation3 + $0x15c] sm:$0xf0]  ;;  %v6195_v7 = vld [vmem:[%s9292_s1 + $0x1c8] sm:$0xff] }
 0x1f2   : > { %v5488_v14 = vor.u32 %v5901_v6, %v5485_v49  ;;  %v3753_v6 = vrot.slane %v8915_v27, 6  ;;  %v5599_v27 = vld [vmem:[#allocation3 + $0x8] sm:$0xf] }
 0x1f3   : > { %v3161_v23 = vpop.f32.mrf.mxu0  ;;  %v8988_v48 = vadd.f32 %v8921_v19, %v3097_v24  ;;  %v5586_v19 = vrot.slane %v8535_v46, 10  ;;  %v6190_v46 = vld [vmem:[%s9292_s1 + $0x198] sm:$0xff]  ;;  %v5934_v24 = vld [vmem:[#allocation3 + $0x94] sm:$0xf] }
 0x1f4   : > { %v8982_v36 = vadd.f32 %v3161_v23, %v8865_v62  ;;  %v8990_v31 = vpop.f32.mrf.mxu2  ;;  %v6187_v62 = vld [vmem:[%s9292_s1 + $0x1e8] sm:$0xff]  ;;  %v5664_v23 = vor.u32 %v5938_v57, %v5663_v42 }
 0x1f5   : > { %4208 = vmatpush.bf16.msra.mxu3 %v6187_v62  ;;  %4180 = vmatpush.bf16.msra.mxu2 %v6188_v13  ;;  %v3737_v25 = vsel %vm6319_vm2, %v5586_v19, %v3736_v3  ;;  %v6197_v3 = vld [vmem:[%s9292_s1 + $0x1c0] sm:$0xff]  ;;  %v5419_v13 = vld [vmem:[#allocation3 + $0xb0] sm:$0xf] }
 0x1f7   : > { %v8999_v22 = vpop.f32.mrf.mxu3 }
 0x1f8   : > { %v3059_v4 = vpop.f32.mrf.mxu1  ;;  %4016 = vmatmul.bf16.gmra.mxu2 %v5628_v30 }
 0x1f9   : > { %v3099_v2 = vadd.f32 %v8936_v38, %v3059_v4  ;;  %4209 = vmatpush.bf16.msra.mxu3 %v6189_v37  ;;  %4181 = vmatpush.bf16.msra.mxu2 %v6190_v46  ;;  %v9019_v38 = vld [vmem:[#allocation3 + $0x68] sm:$0xf]  ;;  %v5888_v4 = vld [vmem:[#allocation3 + $0xd0] sm:$0xf0] }
 0x1fa   : > { %3765 = vst [vmem:[#allocation3 + $0x68] sm:$0xf] %v3737_v25  ;;  %v5947_v25 = vld [vmem:[#allocation3 + $0xf8] sm:$0xf0] }
 0x1fb   : > { %v3164_v44 = vpop.f32.mrf.mxu0  ;;  %v9015_v35 = vadd.f32 %v8943_v29, %v3099_v2  ;;  %v5348_v29 = vor.u32 %v8967_v41, %v8961_v26  ;;  %v6194_v41 = vld [vmem:[%s9292_s1 + $0x188] sm:$0xff] }
 0x1fc   : > { %v9009_v51 = vadd.f32 %v3164_v44, %v8889_v59  ;;  %4045 = vmatmul.bf16.gmra.mxu3 %v5632_v50  ;;  %v9017_v43 = vpop.f32.mrf.mxu2  ;;  %v3739_v59 = vrot.slane %v8827_v0, 6 }
 0x1fd   : > { %4210 = vmatpush.bf16.msra.mxu3 %v6191_v12  ;;  %4182 = vmatpush.bf16.msra.mxu2 %v6192_v10  ;;  %v3750_v12 = vrot.slane %v8722_v39, 6  ;;  %v5521_v10 = vld [vmem:[#allocation3 + $0x1a4] sm:$0xf0]  ;;  %v5455_v39 = vld [vmem:[#allocation3 + $0xf8] sm:$0xf] }
 0x1fe   : > { %3329 = vmatmul.bf16.gmra.mxu0 %v5452_v54  ;;  %v3740_v32 = vsel %vm6319_vm2, %v3738_v9, %v3739_v59  ;;  %v3746_v54 = vrot.slane %v8872_v8, 6 }
 0x1ff   : > { %v3145_v61 = vpop.f32.mrf.mxu3  ;;  %3766 = vst [vmem:[#allocation3 + $0x8c] sm:$0xf] %v3740_v32  ;;  %v5910_v32 = vld [vmem:[#allocation3 + $0x184] sm:$0xf] }
 0x200   : > { %v3062_v0 = vpop.f32.mrf.mxu1  ;;  %3353 = vmatmul.bf16.vlgmr.msrb.gmra.mxu1 %v5348_v29 }
 0x201   : > { %v3102_v11 = vadd.f32 %v8959_v58, %v3062_v0  ;;  %4211 = vmatpush.bf16.msra.mxu3 %v6193_v53  ;;  %4183 = vmatpush.bf16.msra.mxu2 %v6194_v41  ;;  %v3743_v58 = vrot.slane %v8610_v45, 6  ;;  %v5524_v53 = vor.u32 %v5910_v32, %v5521_v10  ;;  %v5930_v32 = vld [vmem:[#allocation3 + $0x70] sm:$0xf0] }
 0x203   : > { %v3166_v34 = vpop.f32.mrf.mxu0  ;;  %v9045_v1 = vadd.f32 %v8975_v15, %v3102_v11  ;;  %v6196_v15 = vld [vmem:[%s9292_s1 + $0x180] sm:$0xff]  ;;  %v3745_v45 = vrot.slane %v3743_v58, 4  ;;  %v3744_v19 = vsel %vm6319_vm2, %v5587_v63, %v3743_v58 }
 0x204   : > { %v9039_v26 = vadd.f32 %v3166_v34, %v8908_v33  ;;  %v3108_v60 = vpop.f32.mrf.mxu2  ;;  %v5665_v33 = vld [vmem:[#allocation3 + $0xb4] sm:$0xf0]  ;;  %3767 = vst [vmem:[#allocation3 + $0xb0] sm:$0xf] %v3744_v19  ;;  %v5588_v34 = vrot.slane %v8713_v21, 10 }
 0x205   : > { %4212 = vmatpush.bf16.msra.mxu3 %v6195_v7  ;;  %4184 = vmatpush.bf16.msra.mxu2 %v6196_v15  ;;  %v5668_v30 = vor.u32 %v5934_v24, %v5665_v33  ;;  %v3747_v44 = vsel %vm6319_vm2, %v3745_v45, %v3746_v54 }
 0x206   : > { %3768 = vst [vmem:[#allocation3 + $0xd4] sm:$0xf] %v3747_v44  ;;  %v3751_v58 = vsel %vm6319_vm2, %v5588_v34, %v3750_v12  ;;  %v5931_v34 = vld [vmem:[#allocation3 + $0x78] sm:$0xf0] }
 0x207   : > { %v3147_v18 = vpop.f32.mrf.mxu3  ;;  %3769 = vst [vmem:[#allocation3 + $0xf8] sm:$0xf] %v3751_v58  ;;  %v5906_v58 = vld [vmem:[#allocation3 + $0x160] sm:$0xf0] }
 0x208   : > { %v3064_v40 = vpop.f32.mrf.mxu1  ;;  %4021 = vmatmul.bf16.gmra.mxu2 %v5664_v23  ;;  %v5897_v23 = vld [vmem:[#allocation3 + $0x118] sm:$0xf0] }
 0x209   : > { %v3104_v62 = vadd.f32 %v8990_v31, %v3064_v40  ;;  %4213 = vmatpush.bf16.msra.mxu3 %v6197_v3 }
 0x20b   : > { %v3169_v16 = vpop.f32.mrf.mxu0  ;;  %v9066_v50 = vadd.f32 %v8999_v22, %v3104_v62  ;;  %v5699_v22 = vld [vmem:[#allocation3 + $0xd8] sm:$0xf]  ;;  %v5922_v62 = vld [vmem:[#allocation3 + $0x30] sm:$0xf0] }
 0x20c   : > { %v9060_v47 = vadd.f32 %v3169_v16, %v8931_v20  ;;  %4050 = vmatmul.bf16.gmra.mxu3 %v5668_v30  ;;  %v3237_v31 = vpop.f32.mrf.mxu2  ;;  %v5384_v20 = vor.u32 %v5879_v5, %v9019_v38  ;;  %v5700_v0 = vor.u32 %v5947_v25, %v5699_v22  ;;  %v5943_v38 = vld [vmem:[#allocation3 + $0xdc] sm:$0xf]  ;;  %v5701_v5 = vld [vmem:[#allocation3 + $0xfc] sm:$0xf0]  ;;  %v5917_v30 = vld [vmem:[#allocation3 + $0xc] sm:$0xf]  ;;  %v5608_v54 = vor.u32 %v5922_v62, %v5607_v17 }
 0x20d   : > { %v5601_v16 = vld [vmem:[#allocation3 + $0x2c] sm:$0xf0] }
 0x20e   : > { %3334 = vmatmul.bf16.gmra.mxu0 %v5488_v14  ;;  %v5604_v19 = vor.u32 %v5917_v30, %v5601_v16  ;;  %v5679_v30 = vld [vmem:[#allocation3 + $0xa0] sm:$0xf] }
 0x20f   : > { %v3276_v2 = vpop.f32.mrf.mxu3 }
 0x210   : > { %v3067_v37 = vpop.f32.mrf.mxu1  ;;  %3358 = vmatmul.bf16.gmra.mxu1 %v5384_v20 }
 0x211   : > { %v3107_v46 = vadd.f32 %v9017_v43, %v3067_v37  ;;  %v3752_v43 = vrot.slane %v3750_v12, 4 }
 0x213   : > { %v3171_v9 = vpop.f32.mrf.mxu0  ;;  %v9075_v59 = vadd.f32 %v3145_v61, %v3107_v46  ;;  %v3754_v24 = vsel %vm6319_vm2, %v3752_v43, %v3753_v6 }
 0x214   : > { %v9073_v8 = vadd.f32 %v3171_v9, %v8957_v28  ;;  %v3239_v29 = vpop.f32.mrf.mxu2  ;;  %v5704_v28 = vor.u32 %v5943_v38, %v5701_v5  ;;  %3770 = vst [vmem:[#allocation3 + $0x11c] sm:$0xf] %v3754_v24  ;;  %v5456_v9 = vor.u32 %v5897_v23, %v5455_v39  ;;  %v5637_v38 = vld [vmem:[#allocation3 + $0x74] sm:$0xf0]  ;;  %v5491_v39 = vld [vmem:[#allocation3 + $0x140] sm:$0xf] }
 0x215   : > { %v5643_v5 = vld [vmem:[#allocation3 + $0x58] sm:$0xf]  ;;  %v5492_v23 = vor.u32 %v5906_v58, %v5491_v39 }
 0x217   : > { %v3278_v11 = vpop.f32.mrf.mxu3 }
 0x218   : > { %v3069_v42 = vpop.f32.mrf.mxu1  ;;  %4026 = vmatmul.bf16.gmra.mxu2 %v5700_v0 }
 0x219   : > { %v3109_v41 = vadd.f32 %v3108_v60, %v3069_v42  ;;  %v5420_v60 = vor.u32 %v5888_v4, %v5419_v13 }
 0x21b   : > { %v3174_v57 = vpop.f32.mrf.mxu0  ;;  %v9085_v49 = vadd.f32 %v3147_v18, %v3109_v41  ;;  %v5921_v18 = vld [vmem:[#allocation3 + $0x28] sm:$0xf0] }
 0x21c   : > { %v9080_v61 = vadd.f32 %v3174_v57, %v8988_v48  ;;  %4055 = vmatmul.bf16.gmra.mxu3 %v5704_v28  ;;  %v3242_v21 = vpop.f32.mrf.mxu2  ;;  %v5600_v40 = vor.u32 %v5921_v18, %v5599_v27  ;;  %v5644_v28 = vor.u32 %v5931_v34, %v5643_v5  ;;  %v5935_v18 = vld [vmem:[#allocation3 + $0x9c] sm:$0xf] }
 0x21e   : > { %3339 = vmatmul.bf16.gmra.mxu0 %v5524_v53 }
 0x21f   : > { %v3281_v48 = vpop.f32.mrf.mxu3 }
 0x220   : > { %v3198_v33 = vpop.f32.mrf.mxu1  ;;  %3363 = vmatmul.bf16.gmra.mxu1 %v5420_v60 }
 0x221   : > { %v3199_v63 = vadd.f32 %v3198_v33, %v8951_v55 }
 0x223   : > { %v3176_v7 = vpop.f32.mrf.mxu0  ;;  %v3238_v45 = vadd.f32 %v3237_v31, %v3199_v63 }
 0x224   : > { %v9091_v15 = vadd.f32 %v3176_v7, %v9015_v35  ;;  %v3244_v14 = vpop.f32.mrf.mxu2 }
 0x225   : > { %v9093_v3 = vadd.f32 %v3276_v2, %v3238_v45 }
 0x227   : > { %v3283_v13 = vpop.f32.mrf.mxu3 }
 0x228   : > { %v3200_v4 = vpop.f32.mrf.mxu1  ;;  %4069 = vmatmul.bf16.vlgmr.msrb.gmra.mxu2 %v5600_v40  ;;  %v5940_v40 = vld [vmem:[#allocation3 + $0xc0] sm:$0xf0] }
 0x229   : > { %v3201_v35 = vadd.f32 %v3200_v4, %v8982_v36  ;;  %v5635_v36 = vld [vmem:[#allocation3 + $0x50] sm:$0xf]  ;;  %v5527_v4 = vld [vmem:[#allocation3 + $0x188] sm:$0xf] }
 0x22a   : > { %v5636_v0 = vor.u32 %v5930_v32, %v5635_v36  ;;  %v5948_v36 = vld [vmem:[#allocation3 + $0x100] sm:$0xf0] }
 0x22b   : > { %v3179_v55 = vpop.f32.mrf.mxu0  ;;  %v3240_v31 = vadd.f32 %v3239_v29, %v3201_v35  ;;  %v5926_v29 = vld [vmem:[#allocation3 + $0x54] sm:$0xf] }
 0x22c   : > { %v9097_v44 = vadd.f32 %v3179_v55, %v9045_v1  ;;  %4098 = vmatmul.bf16.vlgmr.msrb.gmra.mxu3 %v5604_v19  ;;  %v3247_v20 = vpop.f32.mrf.mxu2  ;;  %v5640_v53 = vor.u32 %v5926_v29, %v5637_v38  ;;  %v5915_v55 = vld [vmem:[#allocation3 + $0x1a8] sm:$0xf0]  ;;  %v5709_v29 = vld [vmem:[#allocation3 + $0x104] sm:$0xf0] }
 0x22d   : > { %v9099_v37 = vadd.f32 %v3278_v11, %v3240_v31  ;;  %v5949_v38 = vld [vmem:[#allocation3 + $0x108] sm:$0xf0] }
 0x22e   : > { %4127 = vmatmul.bf16.vlgmr.msrb.gmra.mxu0 %v5608_v54 }
 0x22f   : > { %v3286_v2 = vpop.f32.mrf.mxu3 }
 0x230   : > { %v3203_v46 = vpop.f32.mrf.mxu1  ;;  %3368 = vmatmul.bf16.gmra.mxu1 %v5456_v9 }
 0x231   : > { %v3204_v25 = vadd.f32 %v3203_v46, %v9009_v51 }
 0x233   : > { %v3181_v22 = vpop.f32.mrf.mxu0  ;;  %v3243_v1 = vadd.f32 %v3242_v21, %v3204_v25  ;;  %v5707_v25 = vld [vmem:[#allocation3 + $0xe0] sm:$0xf] }
 0x234   : > { %v9103_v12 = vadd.f32 %v3181_v22, %v9066_v50  ;;  %v3249_v10 = vpop.f32.mrf.mxu2 }
 0x235   : > { %v9105_v11 = vadd.f32 %v3281_v48, %v3243_v1  ;;  %v5944_v1 = vld [vmem:[#allocation3 + $0xe4] sm:$0xf] }
 0x237   : > { %v3288_v43 = vpop.f32.mrf.mxu3 }
 0x238   : > { %v3205_v42 = vpop.f32.mrf.mxu1  ;;  %4074 = vmatmul.bf16.gmra.mxu2 %v5636_v0  ;;  %v5715_v0 = vld [vmem:[#allocation3 + $0xe8] sm:$0xf] }
 0x239   : > { %v3206_v50 = vadd.f32 %v3205_v42, %v9039_v26  ;;  %v5671_v26 = vld [vmem:[#allocation3 + $0x98] sm:$0xf] }
 0x23b   : > { %v3184_v51 = vpop.f32.mrf.mxu0  ;;  %v3245_v41 = vadd.f32 %v3244_v14, %v3206_v50  ;;  %v5673_v14 = vld [vmem:[#allocation3 + $0xbc] sm:$0xf0]  ;;  %v5918_v50 = vld [vmem:[#allocation3 + $0x14] sm:$0xf] }
 0x23c   : > { %v9109_v57 = vadd.f32 %v3184_v51, %v9075_v59  ;;  %4103 = vmatmul.bf16.gmra.mxu3 %v5640_v53  ;;  %v3252_v6 = vpop.f32.mrf.mxu2  ;;  %v5939_v59 = vld [vmem:[#allocation3 + $0xb8] sm:$0xf0]  ;;  %v5676_v62 = vor.u32 %v5935_v18, %v5673_v14  ;;  %v5716_v53 = vor.u32 %v5949_v38, %v5715_v0  ;;  %v5617_v18 = vld [vmem:[#allocation3 + $0x3c] sm:$0xf0]  ;;  %v5924_v14 = vld [vmem:[#allocation3 + $0x40] sm:$0xf0] }
 0x23d   : > { %v9111_v21 = vadd.f32 %v3283_v13, %v3245_v41  ;;  %v5672_v45 = vor.u32 %v5939_v59, %v5671_v26  ;;  %v5680_v13 = vor.u32 %v5940_v40, %v5679_v30  ;;  %v5609_v41 = vld [vmem:[#allocation3 + $0x34] sm:$0xf0]  ;;  %v5923_v26 = vld [vmem:[#allocation3 + $0x38] sm:$0xf0]  ;;  %v5653_v0 = vld [vmem:[#allocation3 + $0x84] sm:$0xf0] }
 0x23e   : > { %4132 = vmatmul.bf16.gmra.mxu0 %v5644_v28  ;;  %v5659_v38 = vld [vmem:[#allocation3 + $0x68] sm:$0xf] }
 0x23f   : > { %v3291_v24 = vpop.f32.mrf.mxu3 }
 0x240   : > { %v3208_v60 = vpop.f32.mrf.mxu1  ;;  %3373 = vmatmul.bf16.gmra.mxu1 %v5492_v23 }
 0x241   : > { %v3209_v33 = vadd.f32 %v3208_v60, %v9060_v47 }
 0x243   : > { %v3186_v48 = vpop.f32.mrf.mxu0  ;;  %v3248_v63 = vadd.f32 %v3247_v20, %v3209_v33  ;;  %v5528_v20 = vor.u32 %v5915_v55, %v5527_v4  ;;  %v5615_v33 = vld [vmem:[#allocation3 + $0x18] sm:$0xf]  ;;  %v5645_v4 = vld [vmem:[#allocation3 + $0x7c] sm:$0xf0] }
 0x244   : > { %v9115_v7 = vadd.f32 %v3186_v48, %v9085_v49  ;;  %v3254_v27 = vpop.f32.mrf.mxu2 }
 0x245   : > { %v9117_v16 = vadd.f32 %v3286_v2, %v3248_v63  ;;  %v5919_v63 = vld [vmem:[#allocation3 + $0x1c] sm:$0xf] }
 0x247   : > { %v3293_v17 = vpop.f32.mrf.mxu3 }
 0x248   : > { %v3210_v19 = vpop.f32.mrf.mxu1  ;;  %4079 = vmatmul.bf16.gmra.mxu2 %v5672_v45  ;;  %v5623_v45 = vld [vmem:[#allocation3 + $0x20] sm:$0xf] }
 0x249   : > { %v3211_v49 = vadd.f32 %v3210_v19, %v9073_v8 }
 0x24b   : > { %v9119_v47 = vpop.f32.mrf.mxu0  ;;  %v3250_v54 = vadd.f32 %v3249_v10, %v3211_v49  ;;  %v5708_v10 = vor.u32 %v5948_v36, %v5707_v25 }
 0x24c   : > { %4108 = vmatmul.bf16.gmra.mxu3 %v5676_v62  ;;  %v3257_v35 = vpop.f32.mrf.mxu2  ;;  %v5624_v62 = vor.u32 %v5924_v14, %v5623_v45 }
 0x24d   : > { %v9122_v31 = vadd.f32 %v3288_v43, %v3250_v54  ;;  %v5712_v43 = vor.u32 %v5944_v1, %v5709_v29  ;;  %v5927_v54 = vld [vmem:[#allocation3 + $0x5c] sm:$0xf] }
 0x24e   : > { %4137 = vmatmul.bf16.gmra.mxu0 %v5680_v13 }
 0x24f   : > { %v3296_v9 = vpop.f32.mrf.mxu3 }
 0x250   : > { %v3213_v2 = vpop.f32.mrf.mxu1  ;;  %3378 = vmatmul.bf16.gmra.mxu1 %v5528_v20  ;;  %v5648_v20 = vor.u32 %v5927_v54, %v5645_v4 }
 0x251   : > { %v3214_v22 = vadd.f32 %v3213_v2, %v9080_v61 }
 0x253   : > { %v9124_v46 = vpop.f32.mrf.mxu0  ;;  %v3253_v32 = vadd.f32 %v3252_v6, %v3214_v22  ;;  %v5612_v6 = vor.u32 %v5918_v50, %v5609_v41 }
 0x254   : > { %v3259_v8 = vpop.f32.mrf.mxu2  ;;  %v3318_v54 = vadd.f32 %v9124_v46, %v9099_v37 }
 0x255   : > { %v9127_v5 = vadd.f32 %v3291_v24, %v3253_v32  ;;  %v5651_v32 = vld [vmem:[#allocation3 + $0x60] sm:$0xf] }
 0x257   : > { %v3298_v34 = vpop.f32.mrf.mxu3 }
 0x258   : > { %v3215_v28 = vpop.f32.mrf.mxu1  ;;  %4084 = vmatmul.bf16.gmra.mxu2 %v5708_v10  ;;  %v5928_v10 = vld [vmem:[#allocation3 + $0x64] sm:$0xf] }
 0x259   : > { %v3216_v61 = vadd.f32 %v3215_v28, %v9091_v15 }
 0x25b   : > { %v9129_v42 = vpop.f32.mrf.mxu0  ;;  %v3255_v51 = vadd.f32 %v3254_v27, %v3216_v61  ;;  %v5616_v27 = vor.u32 %v5923_v26, %v5615_v33  ;;  %v5656_v61 = vor.u32 %v5928_v10, %v5653_v0  ;;  %v3316_v26 = vadd.f32 %v9119_v47, %v9093_v3  ;;  %v5695_v3 = vld [vmem:[#allocation3 + $0xb0] sm:$0xf]  ;;  %v5942_v47 = vld [vmem:[#allocation3 + $0xd0] sm:$0xf0] }
 0x25c   : > { %4113 = vmatmul.bf16.gmra.mxu3 %v5712_v43  ;;  %v3262_v39 = vpop.f32.mrf.mxu2 }
 0x25d   : > { %v9132_v58 = vadd.f32 %v3293_v17, %v3255_v51  ;;  %v5620_v17 = vor.u32 %v5919_v63, %v5617_v18 }
 0x25e   : > { %4142 = vmatmul.bf16.gmra.mxu0 %v5716_v53 }
 0x25f   : > { %v3301_v23 = vpop.f32.mrf.mxu3 }
 0x260   : > { %v3218_v24 = vpop.f32.mrf.mxu1  ;;  %4156 = vmatmul.bf16.vlgmr.msra.gmra.mxu1 %v5612_v6  ;;  %v5936_v6 = vld [vmem:[#allocation3 + $0xa4] sm:$0xf] }
 0x261   : > { %v3219_v48 = vadd.f32 %v3218_v24, %v9097_v44  ;;  %v5681_v24 = vld [vmem:[#allocation3 + $0xc4] sm:$0xf0] }
 0x263   : > { %v9134_v60 = vpop.f32.mrf.mxu0  ;;  %v3258_v59 = vadd.f32 %v3257_v35, %v3219_v48 }
 0x264   : > { %v3264_v15 = vpop.f32.mrf.mxu2 }
 0x265   : > { %v9137_v30 = vadd.f32 %v3296_v9, %v3258_v59 }
 0x267   : > { %v3303_v40 = vpop.f32.mrf.mxu3 }
 0x268   : > { %v3220_v13 = vpop.f32.mrf.mxu1  ;;  %4185 = vmatmul.bf16.vlgmr.msra.gmra.mxu2 %v5616_v27 }
 0x269   : > { %v3221_v44 = vadd.f32 %v3220_v13, %v9103_v12  ;;  %v5932_v12 = vld [vmem:[#allocation3 + $0x80] sm:$0xf0] }
 0x26a   : > { %v5652_v29 = vor.u32 %v5932_v12, %v5651_v32 }
 0x26b   : > { %v9139_v19 = vpop.f32.mrf.mxu0  ;;  %v3260_v49 = vadd.f32 %v3259_v8, %v3221_v44 }
 0x26c   : > { %4214 = vmatmul.bf16.vlgmr.msra.gmra.mxu3 %v5620_v17  ;;  %v4012_v55 = vpop.f32.mrf.mxu2 }
 0x26d   : > { %v9142_v35 = vadd.f32 %v3298_v34, %v3260_v49  ;;  %v5933_v34 = vld [vmem:[#allocation3 + $0x88] sm:$0xf0]  ;;  %v5689_v49 = vld [vmem:[#allocation3 + $0xcc] sm:$0xf0] }
 0x26e   : > { %4243 = vmatmul.bf16.vlgmr.msra.gmra.mxu0 %v5624_v62  ;;  %v5660_v51 = vor.u32 %v5933_v34, %v5659_v38 }
 0x26f   : > { %v4041_v9 = vpop.f32.mrf.mxu3 }
 0x270   : > { %v9144_v2 = vadd.f32 %v4041_v9, %v4012_v55  ;;  %v3223_v22 = vpop.f32.mrf.mxu1  ;;  %4161 = vmatmul.bf16.gmra.mxu1 %v5648_v20  ;;  %v5696_v9 = vor.u32 %v5942_v47, %v5695_v3 }
 0x271   : > { %v3224_v36 = vadd.f32 %v3223_v22, %v9109_v57 }
 0x273   : > { %v9146_v25 = vpop.f32.mrf.mxu0  ;;  %v3263_v8 = vadd.f32 %v3262_v39, %v3224_v36 }
 0x274   : > { %v4014_v1 = vpop.f32.mrf.mxu2 }
 0x275   : > { %v9149_v43 = vadd.f32 %v3301_v23, %v3263_v8  ;;  %v5684_v23 = vor.u32 %v5936_v6, %v5681_v24  ;;  %v5945_v8 = vld [vmem:[#allocation3 + $0xec] sm:$0xf]  ;;  %v5946_v24 = vld [vmem:[#allocation3 + $0xf4] sm:$0xf] }
 0x277   : > { %v4043_v53 = vpop.f32.mrf.mxu3 }
 0x278   : > { %v9151_v28 = vadd.f32 %v4043_v53, %v4014_v1  ;;  %v3225_v50 = vpop.f32.mrf.mxu1  ;;  %4190 = vmatmul.bf16.gmra.mxu2 %v5652_v29  ;;  %v5717_v1 = vld [vmem:[#allocation3 + $0x10c] sm:$0xf0]  ;;  %v3321_v29 = vadd.f32 %v9129_v42, %v9105_v11  ;;  %v3323_v11 = vadd.f32 %v9134_v60, %v9111_v21  ;;  %v3326_v21 = vadd.f32 %v9139_v19, %v9117_v16 }
 0x279   : > { %v3226_v57 = vadd.f32 %v3225_v50, %v9115_v7  ;;  %v5687_v7 = vld [vmem:[#allocation3 + $0xa8] sm:$0xf]  ;;  %v5720_v46 = vor.u32 %v5945_v8, %v5717_v1  ;;  %v5950_v50 = vld [vmem:[#allocation3 + $0x110] sm:$0xf0] }
 0x27b   : > { %v9153_v41 = vpop.f32.mrf.mxu0  ;;  %v3265_v39 = vadd.f32 %v3264_v15, %v3226_v57  ;;  %v5941_v15 = vld [vmem:[#allocation3 + $0xc8] sm:$0xf0] }
 0x27c   : > { %4219 = vmatmul.bf16.gmra.mxu3 %v5656_v61  ;;  %v4017_v48 = vpop.f32.mrf.mxu2  ;;  %v5688_v44 = vor.u32 %v5941_v15, %v5687_v7 }
 0x27d   : > { %v9156_v33 = vadd.f32 %v3303_v40, %v3265_v39  ;;  %v5937_v40 = vld [vmem:[#allocation3 + $0xac] sm:$0xf] }
 0x27e   : > { %4248 = vmatmul.bf16.gmra.mxu0 %v5660_v51  ;;  %v5692_v20 = vor.u32 %v5937_v40, %v5689_v49  ;;  %v5723_v51 = vld [vmem:[#allocation3 + $0xf0] sm:$0xf] }
 0x27f   : > { %v4046_v59 = vpop.f32.mrf.mxu3 }
 0x280   : > { %v9160_v63 = vadd.f32 %v4046_v59, %v4017_v48  ;;  %v3354_v27 = vpop.f32.mrf.mxu1  ;;  %4166 = vmatmul.bf16.gmra.mxu1 %v5684_v23  ;;  %v5724_v23 = vor.u32 %v5950_v50, %v5723_v51  ;;  %v5731_v59 = vld [vmem:[#allocation3 + $0xf8] sm:$0xf] }
 0x281   : > { %v3355_v45 = vadd.f32 %v3354_v27, %v3316_v26  ;;  %v5725_v26 = vld [vmem:[#allocation3 + $0x114] sm:$0xf0]  ;;  %v5951_v27 = vld [vmem:[#allocation3 + $0x118] sm:$0xf0] }
 0x282   : > { %v5728_v7 = vor.u32 %v5946_v24, %v5725_v26  ;;  %v5732_v15 = vor.u32 %v5951_v27, %v5731_v59 }
 0x283   : > { %v9162_v18 = vpop.f32.mrf.mxu0  ;;  %v4390_v14 = vadd.f32 %v8934_v52, %v3355_v45  ;;  %v4428_v17 = vmul.f32 %v3355_v45, %v3355_v45 }
 0x284   : > { %v4019_v62 = vpop.f32.mrf.mxu2 }
 0x285   : > { %v4459_v13 = vadd.f32 %v8940_v56, %v4428_v17 }
 0x287   : > { %v4048_v4 = vpop.f32.mrf.mxu3 }
 0x288   : > { %v9168_v55 = vadd.f32 %v4048_v4, %v4019_v62  ;;  %v3356_v22 = vpop.f32.mrf.mxu1  ;;  %4195 = vmatmul.bf16.gmra.mxu2 %v5688_v44 }
 0x289   : > { %v3357_v36 = vadd.f32 %v3356_v22, %v3318_v54 }
 0x28b   : > { %v9170_v52 = vpop.f32.mrf.mxu0  ;;  %v5985_v32 = vpack.c.bf16 %v3357_v36, %v3355_v45  ;;  %v4391_v56 = vadd.f32 %v4390_v14, %v3357_v36  ;;  %v4429_v12 = vmul.f32 %v3357_v36, %v3357_v36 }
 0x28c   : > { %4224 = vmatmul.bf16.gmra.mxu3 %v5692_v20  ;;  %v4022_v10 = vpop.f32.mrf.mxu2 }
 0x28d   : > { %6037 = vst [vmem:[%s8628_s20 + $0x30] sm:$0xff] %v5985_v32   ;;  %v4460_v37 = vadd.f32 %v4459_v13, %v4429_v12 }
 0x28e   : > { %4253 = vmatmul.bf16.gmra.mxu0 %v5696_v9 }
 0x28f   : > { %v4051_v0 = vpop.f32.mrf.mxu3 }
 0x290   : > { %v9175_v38 = vadd.f32 %v4051_v0, %v4022_v10  ;;  %v3359_v34 = vpop.f32.mrf.mxu1  ;;  %4171 = vmatmul.bf16.gmra.mxu1 %v5720_v46 }
 0x291   : > { %v3360_v61 = vadd.f32 %v3359_v34, %v3321_v29 }
 0x293   : > { %v9177_v53 = vpop.f32.mrf.mxu0  ;;  %v4392_v57 = vadd.f32 %v4391_v56, %v3360_v61  ;;  %v4430_v39 = vmul.f32 %v3360_v61, %v3360_v61  ;;  %v3328_v56 = vadd.f32 %v9146_v25, %v9122_v31 }
 0x294   : > { %v4024_v6 = vpop.f32.mrf.mxu2 }
 0x295   : > { %v4461_v48 = vadd.f32 %v4460_v37, %v4430_v39 }
 0x297   : > { %v4053_v42 = vpop.f32.mrf.mxu3 }
 0x298   : > { %v9181_v45 = vadd.f32 %v4053_v42, %v4024_v6  ;;  %v3361_v14 = vpop.f32.mrf.mxu1  ;;  %4200 = vmatmul.bf16.gmra.mxu2 %v5724_v23 }
 0x299   : > { %v3362_v62 = vadd.f32 %v3361_v14, %v3323_v11 }
 0x29b   : > { %v9183_v17 = vpop.f32.mrf.mxu0  ;;  %v5990_v40 = vpack.c.bf16 %v3362_v62, %v3360_v61  ;;  %v4393_v13 = vadd.f32 %v4392_v57, %v3362_v62  ;;  %v4431_v44 = vmul.f32 %v3362_v62, %v3362_v62  ;;  %v3331_v61 = vadd.f32 %v9153_v41, %v9127_v5 }
 0x29c   : > { %4229 = vmatmul.bf16.gmra.mxu3 %v5728_v7  ;;  %v4027_v49 = vpop.f32.mrf.mxu2  ;;  %v3336_v62 = vadd.f32 %v9170_v52, %v9137_v30 }
 0x29d   : > { %6038 = vst [vmem:[%s8628_s20 + $0x38] sm:$0xff] %v5990_v40   ;;  %v4462_v3 = vadd.f32 %v4461_v48, %v4431_v44 }
 0x29e   : > { %4258 = vmatmul.bf16.gmra.mxu0 %v5732_v15 }
 0x29f   : > { %v4056_v60 = vpop.f32.mrf.mxu3 }
 0x2a0   : > { %v9188_v47 = vadd.f32 %v4056_v60, %v4027_v49  ;;  %v3364_v54 = vpop.f32.mrf.mxu1 }
 0x2a1   : > { %v3365_v20 = vadd.f32 %v3364_v54, %v3326_v21 }
 0x2a3   : > { %v9190_v4 = vpop.f32.mrf.mxu0  ;;  %v4394_v9 = vadd.f32 %v4393_v13, %v3365_v20  ;;  %v4432_v22 = vmul.f32 %v3365_v20, %v3365_v20 }
 0x2a4   : > { %v4029_v36 = vpop.f32.mrf.mxu2 }
 0x2a5   : > { %v4463_v32 = vadd.f32 %v4462_v3, %v4432_v22 }
 0x2a7   : > { %v4058_v12 = vpop.f32.mrf.mxu3 }
 0x2a8   : > { %v9194_v8 = vadd.f32 %v4058_v12, %v4029_v36  ;;  %v3366_v1 = vpop.f32.mrf.mxu1 }
 0x2a9   : > { %v3367_v19 = vadd.f32 %v3366_v1, %v3328_v56 }
 0x2ab   : > { %v4128_v16 = vpop.f32.mrf.mxu0  ;;  %v5995_v10 = vpack.c.bf16 %v3367_v19, %v3365_v20  ;;  %v4395_v37 = vadd.f32 %v4394_v9, %v3367_v19  ;;  %v4433_v46 = vmul.f32 %v3367_v19, %v3367_v19 }
 0x2ac   : > { %v4070_v29 = vpop.f32.mrf.mxu2 }
 0x2ad   : > { %v4071_v0 = vadd.f32 %v4070_v29, %v9144_v2  ;;  %6039 = vst [vmem:[%s8628_s20 + $0x40] sm:$0xff] %v5995_v10   ;;  %v4464_v34 = vadd.f32 %v4463_v32, %v4433_v46  ;;  %v3333_v2 = vadd.f32 %v9162_v18, %v9132_v58 }
 0x2af   : > { %v4099_v51 = vpop.f32.mrf.mxu3 }
 0x2b0   : > { %v4100_v50 = vadd.f32 %v4099_v51, %v4071_v0  ;;  %v3369_v31 = vpop.f32.mrf.mxu1 }
 0x2b1   : > { %v3370_v57 = vadd.f32 %v3369_v31, %v3331_v61 }
 0x2b2   : > { %v9202_v39 = vadd.f32 %v4128_v16, %v4100_v50  ;;  %v3341_v16 = vadd.f32 %v9183_v17, %v9149_v43 }
 0x2b3   : > { %v9200_v25 = vpop.f32.mrf.mxu0  ;;  %v4396_v6 = vadd.f32 %v4395_v37, %v3370_v57  ;;  %v4434_v24 = vmul.f32 %v3370_v57, %v3370_v57 }
 0x2b4   : > { %v9204_v48 = vpop.f32.mrf.mxu2 }
 0x2b5   : > { %v4465_v23 = vadd.f32 %v4464_v34, %v4434_v24 }
 0x2b7   : > { %v9208_v26 = vpop.f32.mrf.mxu3 }
 0x2b8   : > { %v3371_v5 = vpop.f32.mrf.mxu1 }
 0x2b9   : > { %v3372_v59 = vadd.f32 %v3371_v5, %v3333_v2 }
 0x2bb   : > { %v4133_v41 = vpop.f32.mrf.mxu0  ;;  %v6000_v27 = vpack.c.bf16 %v3372_v59, %v3370_v57  ;;  %v4397_v11 = vadd.f32 %v4396_v6, %v3372_v59  ;;  %v4435_v42 = vmul.f32 %v3372_v59, %v3372_v59 }
 0x2bc   : > { %v4075_v7 = vpop.f32.mrf.mxu2 }
 0x2bd   : > { %v4076_v15 = vadd.f32 %v4075_v7, %v9160_v63  ;;  %6040 = vst [vmem:[%s8628_s20 + $0x48] sm:$0xff] %v6000_v27   ;;  %v4466_v14 = vadd.f32 %v4465_v23, %v4435_v42  ;;  %v3338_v63 = vadd.f32 %v9177_v53, %v9142_v35  ;;  %v4073_v27 = vadd.f32 %v9204_v48, %v9151_v28 }
 0x2bf   : > { %v4104_v40 = vpop.f32.mrf.mxu3 }
 0x2c0   : > { %v4105_v13 = vadd.f32 %v4104_v40, %v4076_v15  ;;  %v3374_v44 = vpop.f32.mrf.mxu1  ;;  %v4102_v15 = vadd.f32 %v9208_v26, %v4073_v27 }
 0x2c1   : > { %v3375_v18 = vadd.f32 %v3374_v44, %v3336_v62 }
 0x2c2   : > { %v9216_v49 = vadd.f32 %v4133_v41, %v4105_v13  ;;  %v4131_v44 = vadd.f32 %v9200_v25, %v4102_v15 }
 0x2c3   : > { %v9214_v58 = vpop.f32.mrf.mxu0  ;;  %v4398_v3 = vadd.f32 %v4397_v11, %v3375_v18  ;;  %v4436_v21 = vmul.f32 %v3375_v18, %v3375_v18 }
 0x2c4   : > { %v9218_v60 = vpop.f32.mrf.mxu2 }
 0x2c5   : > { %v4467_v54 = vadd.f32 %v4466_v14, %v4436_v21  ;;  %v4078_v26 = vadd.f32 %v9218_v60, %v9168_v55 }
 0x2c7   : > { %v9222_v20 = vpop.f32.mrf.mxu3 }
 0x2c8   : > { %v3376_v30 = vpop.f32.mrf.mxu1 }
 0x2c9   : > { %v3377_v9 = vadd.f32 %v3376_v30, %v3338_v63 }
 0x2cb   : > { %v4138_v52 = vpop.f32.mrf.mxu0  ;;  %v6005_v22 = vpack.c.bf16 %v3377_v9, %v3375_v18  ;;  %v4399_v36 = vadd.f32 %v4398_v3, %v3377_v9  ;;  %v4437_v32 = vmul.f32 %v3377_v9, %v3377_v9 }
 0x2cc   : > { %v4080_v56 = vpop.f32.mrf.mxu2 }
 0x2cd   : > { %v4081_v12 = vadd.f32 %v4080_v56, %v9175_v38  ;;  %6041 = vst [vmem:[%s8628_s20 + $0x50] sm:$0xff] %v6005_v22   ;;  %v4468_v1 = vadd.f32 %v4467_v54, %v4437_v32  ;;  %v3343_v38 = vadd.f32 %v9190_v4, %v9156_v33 }
 0x2cf   : > { %v4109_v19 = vpop.f32.mrf.mxu3 }
 0x2d0   : > { %v4110_v10 = vadd.f32 %v4109_v19, %v4081_v12  ;;  %v3379_v37 = vpop.f32.mrf.mxu1 }
 0x2d1   : > { %v3380_v53 = vadd.f32 %v3379_v37, %v3341_v16  ;;  %v4107_v16 = vadd.f32 %v9222_v20, %v4078_v26 }
 0x2d2   : > { %v9230_v46 = vadd.f32 %v4138_v52, %v4110_v10 }
 0x2d3   : > { %v9228_v35 = vpop.f32.mrf.mxu0  ;;  %v4400_v29 = vadd.f32 %v4399_v36, %v3380_v53  ;;  %v4438_v0 = vmul.f32 %v3380_v53, %v3380_v53 }
 0x2d4   : > { %v9232_v34 = vpop.f32.mrf.mxu2 }
 0x2d5   : > { %v4469_v61 = vadd.f32 %v4468_v1, %v4438_v0  ;;  %v4083_v20 = vadd.f32 %v9232_v34, %v9181_v45 }
 0x2d7   : > { %v9236_v51 = vpop.f32.mrf.mxu3 }
 0x2d8   : > { %v3381_v43 = vpop.f32.mrf.mxu1  ;;  %v4112_v15 = vadd.f32 %v9236_v51, %v4083_v20 }
 0x2d9   : > { %v3382_v50 = vadd.f32 %v3381_v43, %v3343_v38 }
 0x2da   : > { %v4141_v45 = vadd.f32 %v9228_v35, %v4112_v15 }
 0x2db   : > { %v9238_v17 = vpop.f32.mrf.mxu0  ;;  %v6010_v31 = vpack.c.bf16 %v3382_v50, %v3380_v53  ;;  %v4401_v57 = vadd.f32 %v4400_v29, %v3382_v50  ;;  %v4439_v6 = vmul.f32 %v3382_v50, %v3382_v50  ;;  %v4136_v29 = vadd.f32 %v9214_v58, %v4107_v16 }
 0x2dc   : > { %v9240_v24 = vpop.f32.mrf.mxu2 }
 0x2dd   : > { %6042 = vst [vmem:[%s8628_s20 + $0x58] sm:$0xff] %v6010_v31   ;;  %v4470_v23 = vadd.f32 %v4469_v61, %v4439_v6 }
 0x2df   : > { %v9243_v2 = vpop.f32.mrf.mxu3 }
 0x2e0   : > { %v4157_v5 = vpop.f32.mrf.mxu1 }
 0x2e1   : > { %v4158_v42 = vadd.f32 %v4157_v5, %v9202_v39 }
 0x2e3   : > { %v9245_v41 = vpop.f32.mrf.mxu0 }
 0x2e4   : > { %v9247_v59 = vpop.f32.mrf.mxu2 }
 0x2e7   : > { %v9249_v33 = vpop.f32.mrf.mxu3 }
 0x2e8   : > { %v4159_v4 = vpop.f32.mrf.mxu1 }
 0x2e9   : > { %v4160_v21 = vadd.f32 %v4159_v4, %v4131_v44  ;;  %v4086_v44 = vadd.f32 %v9240_v24, %v9188_v47 }
 0x2eb   : > { %v4244_v11 = vpop.f32.mrf.mxu0 }
 0x2ec   : > { %v4186_v7 = vpop.f32.mrf.mxu2 }
 0x2ed   : > { %v4187_v14 = vadd.f32 %v4186_v7, %v4158_v42 }
 0x2ef   : > { %v4215_v62 = vpop.f32.mrf.mxu3 }
 0x2f0   : > { %v4216_v40 = vadd.f32 %v4215_v62, %v4187_v14  ;;  %v4162_v13 = vpop.f32.mrf.mxu1 }
 0x2f1   : > { %v4163_v32 = vadd.f32 %v4162_v13, %v9216_v49 }
 0x2f2   : > { %v4245_v3 = vadd.f32 %v4244_v11, %v4216_v40 }
 0x2f3   : > { %v4246_v18 = vpop.f32.mrf.mxu0 }
 0x2f4   : > { %v4402_v54 = vadd.f32 %v4401_v57, %v4245_v3  ;;  %v4440_v63 = vmul.f32 %v4245_v3, %v4245_v3  ;;  %v4188_v30 = vpop.f32.mrf.mxu2 }
 0x2f5   : > { %v4189_v28 = vadd.f32 %v4188_v30, %v4160_v21 }
 0x2f6   : > { %v4471_v48 = vadd.f32 %v4470_v23, %v4440_v63 }
 0x2f7   : > { %v4217_v52 = vpop.f32.mrf.mxu3 }
 0x2f8   : > { %v4218_v39 = vadd.f32 %v4217_v52, %v4189_v28  ;;  %v4164_v9 = vpop.f32.mrf.mxu1 }
 0x2f9   : > { %v4165_v60 = vadd.f32 %v4164_v9, %v4136_v29 }
 0x2fa   : > { %v4247_v36 = vadd.f32 %v4246_v18, %v4218_v39  ;;  %v4088_v39 = vadd.f32 %v9247_v59, %v9194_v8 }
 0x2fb   : > { %v4249_v22 = vpop.f32.mrf.mxu0 }
 0x2fc   : > { %v6015_v25 = vpack.c.bf16 %v4247_v36, %v4245_v3  ;;  %v4403_v56 = vadd.f32 %v4402_v54, %v4247_v36  ;;  %v4441_v12 = vmul.f32 %v4247_v36, %v4247_v36  ;;  %v4191_v1 = vpop.f32.mrf.mxu2  ;;  %v4115_v54 = vadd.f32 %v9243_v2, %v4086_v44 }
 0x2fd   : > { %v4192_v19 = vadd.f32 %v4191_v1, %v4163_v32  ;;  %v4117_v2 = vadd.f32 %v9249_v33, %v4088_v39 }
 0x2fe   : > { %6043 = vst [vmem:[%s8628_s20 + $0x60] sm:$0xff] %v6015_v25   ;;  %v4472_v10 = vadd.f32 %v4471_v48, %v4441_v12  ;;  %v4144_v47 = vadd.f32 %v9238_v17, %v4115_v54 }
 0x2ff   : > { %v4220_v37 = vpop.f32.mrf.mxu3  ;;  %v4146_v8 = vadd.f32 %v9245_v41, %v4117_v2 }
 0x300   : > { %v4221_v53 = vadd.f32 %v4220_v37, %v4192_v19  ;;  %v4167_v55 = vpop.f32.mrf.mxu1 }
 0x301   : > { %v4168_v5 = vadd.f32 %v4167_v55, %v9230_v46 }
 0x302   : > { %v4250_v61 = vadd.f32 %v4249_v22, %v4221_v53 }
 0x303   : > { %v4251_v0 = vpop.f32.mrf.mxu0 }
 0x304   : > { %v4404_v38 = vadd.f32 %v4403_v56, %v4250_v61  ;;  %v4442_v43 = vmul.f32 %v4250_v61, %v4250_v61  ;;  %v4193_v49 = vpop.f32.mrf.mxu2 }
 0x305   : > { %v4194_v50 = vadd.f32 %v4193_v49, %v4165_v60 }
 0x306   : > { %v4473_v31 = vadd.f32 %v4472_v10, %v4442_v43 }
 0x307   : > { %v4222_v57 = vpop.f32.mrf.mxu3 }
 0x308   : > { %v4223_v6 = vadd.f32 %v4222_v57, %v4194_v50  ;;  %v4169_v7 = vpop.f32.mrf.mxu1 }
 0x309   : > { %v4170_v46 = vadd.f32 %v4169_v7, %v4141_v45 }
 0x30a   : > { %v4252_v23 = vadd.f32 %v4251_v0, %v4223_v6 }
 0x30b   : > { %v4254_v4 = vpop.f32.mrf.mxu0 }
 0x30c   : > { %v6020_v58 = vpack.c.bf16 %v4252_v23, %v4250_v61  ;;  %v4405_v27 = vadd.f32 %v4404_v38, %v4252_v23  ;;  %v4443_v11 = vmul.f32 %v4252_v23, %v4252_v23  ;;  %v4196_v42 = vpop.f32.mrf.mxu2 }
 0x30d   : > { %v4197_v14 = vadd.f32 %v4196_v42, %v4168_v5 }
 0x30e   : > { %6044 = vst [vmem:[%s8628_s20 + $0x68] sm:$0xff] %v6020_v58   ;;  %v4474_v62 = vadd.f32 %v4473_v31, %v4443_v11 }
 0x30f   : > { %v4225_v40 = vpop.f32.mrf.mxu3 }
 0x310   : > { %v4226_v13 = vadd.f32 %v4225_v40, %v4197_v14  ;;  %v4172_v28 = vpop.f32.mrf.mxu1 }
 0x311   : > { %v4173_v24 = vadd.f32 %v4172_v28, %v4144_v47 }
 0x312   : > { %v4255_v34 = vadd.f32 %v4254_v4, %v4226_v13 }
 0x313   : > { %v4256_v63 = vpop.f32.mrf.mxu0 }
 0x314   : > { %v4406_v18 = vadd.f32 %v4405_v27, %v4255_v34  ;;  %v4444_v3 = vmul.f32 %v4255_v34, %v4255_v34  ;;  %v4198_v21 = vpop.f32.mrf.mxu2 }
 0x315   : > { %v4199_v51 = vadd.f32 %v4198_v21, %v4170_v46 }
 0x316   : > { %v4475_v30 = vadd.f32 %v4474_v62, %v4444_v3 }
 0x317   : > { %v4227_v48 = vpop.f32.mrf.mxu3 }
 0x318   : > { %v4228_v52 = vadd.f32 %v4227_v48, %v4199_v51  ;;  %v4174_v16 = vpop.f32.mrf.mxu1 }
 0x319   : > { %v4175_v17 = vadd.f32 %v4174_v16, %v4146_v8 }
 0x31a   : > { %v4257_v35 = vadd.f32 %v4256_v63, %v4228_v52 }
 0x31b   : > { %v4259_v56 = vpop.f32.mrf.mxu0 }
 0x31c   : > { %v6025_v9 = vpack.c.bf16 %v4257_v35, %v4255_v34  ;;  %v4407_v26 = vadd.f32 %v4406_v18, %v4257_v35  ;;  %v4445_v22 = vmul.f32 %v4257_v35, %v4257_v35  ;;  %v4201_v36 = vpop.f32.mrf.mxu2 }
 0x31d   : > { %v4202_v32 = vadd.f32 %v4201_v36, %v4173_v24 }
 0x31e   : > { %6045 = vst [vmem:[%s8628_s20 + $0x70] sm:$0xff] %v6025_v9   ;;  %v4476_v25 = vadd.f32 %v4475_v30, %v4445_v22 }
 0x31f   : > { %v4230_v12 = vpop.f32.mrf.mxu3 }
 0x320   : > { %v4231_v1 = vadd.f32 %v4230_v12, %v4202_v32 }
 0x322   : > { %v4260_v59 = vadd.f32 %v4259_v56, %v4231_v1 }
 0x323   : > { %v4261_v33 = vpop.f32.mrf.mxu0 }
 0x324   : > { %v4408_v19 = vadd.f32 %v4407_v26, %v4260_v59  ;;  %v4446_v10 = vmul.f32 %v4260_v59, %v4260_v59  ;;  %v4203_v37 = vpop.f32.mrf.mxu2 }
 0x325   : > { %v4204_v53 = vadd.f32 %v4203_v37, %v4175_v17 }
 0x326   : > { %v4477_v29 = vadd.f32 %v4476_v25, %v4446_v10 }
 0x327   : > { %v4232_v0 = vpop.f32.mrf.mxu3 }
 0x328   : > { %v4233_v61 = vadd.f32 %v4232_v0, %v4204_v53 }
 0x32a   : > { %v4262_v55 = vadd.f32 %v4261_v33, %v4233_v61 }
 0x32c   : > { %v6030_v60 = vpack.c.bf16 %v4262_v55, %v4260_v59  ;;  %v4409_v38 = vadd.f32 %v4408_v19, %v4262_v55  ;;  %v4447_v43 = vmul.f32 %v4262_v55, %v4262_v55 }
 0x32e   : > { %6046 = vst [vmem:[%s8628_s20 + $0x78] sm:$0xff] %v6030_v60   ;;  %v4410_v49 = vrot.slane %v4409_v38, 4  ;;  %v4478_v50 = vadd.f32 %v4477_v29, %v4447_v43 }
 0x330   : > { %v4411_v31 = vadd.f32 %v4410_v49, %v4409_v38  ;;  %v4479_v41 = vrot.slane %v4478_v50, 4 }
 0x332   : > { %v4412_v57 = vrot.slane %v4411_v31, 2  ;;  %v4480_v6 = vadd.f32 %v4479_v41, %v4478_v50 }
 0x334   : > { %v4413_v20 = vadd.f32 %v4412_v57, %v4411_v31  ;;  %v4481_v23 = vrot.slane %v4480_v6, 2 }
 0x336   : > { %v4414_v5 = vrot.slane %v4413_v20, 1  ;;  %v4482_v4 = vadd.f32 %v4481_v23, %v4480_v6 }
 0x338   : > { %v4483_v58 = vrot.slane %v4482_v4, 1  ;;  %v4415_v27 = vadd.f32 %v4414_v5, %v4413_v20 }
 0x33a   : > { %v4484_v11 = vadd.f32 %v4483_v58, %v4482_v4 }
 0x33c   : > { %v4486_v42 = vsel %vm4485_vm6, %v4415_v27, %v4484_v11 }
 0x33d   : > { %4487 = vst [vmem:[%s258_s29] sm:$0x3] %v4486_v42 }
 0x33e PF: > { %s14_s14 = sadd.s32 1, %s6220_s14   ;;  %s9529_s12 = smov %s6216_s13 }
 0x33f   : > { %p11_p5 = scmp.ge.s32.totalorder %s14_s14, 4   ;;  %s9530_s13 = smov %s9532_s15 }
 0x341   :  { %13 = sbr.rel (!%p11_p5) target bundleno = 2 (0x2), region = 89 }

</bundles_post_ra>
